<compile_context>
chip_gen: v6e
topology: v6e:2x2x1
jax: 0.10.0
libtpu: 0.0.40
codegen_flags: <defaults>
</compile_context>

<pallas_src>
import functools
import math
from types import SimpleNamespace

import jax
import jax.numpy as jnp
from jax.experimental import pallas as pl
from jax.experimental.pallas import tpu as pltpu


def _round_up(x, m):
    return ((x + m - 1) // m) * m


def _pick_vmem_limit(nbytes):
    """Compute an explicit VMEM budget from the actual tile footprint, capped
    at ~75% of the device's physical VMEM (so a tiling that fits v5e/v6e does
    not over-commit v7x's 64 MiB)."""
    try:
        cap = int(pltpu.get_tpu_info().vmem_capacity_bytes)
    except Exception:  # conservative fallback (v7x per-core VMEM)
        cap = 64 * 1024 * 1024
    hi = (cap * 3) // 4
    want = nbytes + 8 * 1024 * 1024
    return int(max(min(want, hi), min(32 * 1024 * 1024, hi)))


def _rel_layer_vmem_bytes(tile_e, tile_r, D, cd_bytes):
    per_step = (3 * tile_e * D * cd_bytes      # xh, xb, xt edge blocks
                + tile_e * 4                   # edge validity mask (f32)
                + tile_r * tile_e * 2          # one-hot scatter block (bf16)
                + 5 * D * D * cd_bytes         # attn x3 / aggr / res weights
                + D * D * 2                    # block-diagonal head matrix
                + 8 * D * 4                    # packed bias / attn vectors
                + 2 * tile_r * D * cd_bytes)   # residual-in + output blocks
    scratch = (D + tile_r * 2 * D) * 4         # running max + fused accumulator
    return 2 * per_step + scratch              # x2: double-buffered pipeline


def _linear_vmem_bytes(tn, din, dout, cd_bytes):
    per_step = (tn * din * cd_bytes + din * dout * cd_bytes
                + dout * 4 + tn * dout * cd_bytes)
    return 2 * per_step


# ------------------------- kernel 1: relu(x @ wt + b) ------------------------

def _linear_relu_kernel(x_ref, wt_ref, b_ref, o_ref):
    y = jnp.dot(x_ref[...], wt_ref[...], preferred_element_type=jnp.float32)
    o_ref[...] = jnp.maximum(y + b_ref[...], 0.0).astype(o_ref.dtype)


def linear_relu(x, wt, b, out_dtype):
    """relu(x @ wt + b); wt pre-transposed (in, out), b (1, out) f32.
    Row-tiled grid (pipelined) instead of whole-array VMEM residency."""
    n, din = x.shape
    dout = wt.shape[1]
    tn = min(512, _round_up(n, 16))            # 16: safe sublane granule for bf16
    npad = _round_up(n, tn)
    xp = jnp.pad(x, ((0, npad - n), (0, 0)))
    cd_bytes = jnp.dtype(x.dtype).itemsize
    out = pl.pallas_call(
        _linear_relu_kernel,
        out_shape=jax.ShapeDtypeStruct((npad, dout), out_dtype),
        grid_spec=pltpu.PrefetchScalarGridSpec(
            num_scalar_prefetch=0,
            grid=(npad // tn,),
            in_specs=[pl.BlockSpec((tn, din), lambda i: (i, 0)),
                      pl.BlockSpec((din, dout), lambda i: (0, 0)),
                      pl.BlockSpec((1, dout), lambda i: (0, 0))],
            out_specs=pl.BlockSpec((tn, dout), lambda i: (i, 0))),
        compiler_params=pltpu.CompilerParams(
            dimension_semantics=("parallel",),
            vmem_limit_bytes=_pick_vmem_limit(
                _linear_vmem_bytes(tn, din, dout, cd_bytes))),
    )(xp, wt, b)
    return out[:n]


# ---------- kernel 2: fused InGramRelationLayer_v2 + ReLU + residual ---------

def _relation_layer_kernel(
        xh_ref, xb_ref, xt_ref, emask_ref, st_ref,
        wah_ref, wab_ref, wat_ref, wg_ref, rw_ref,
        bhead_ref, vecs_ref, rel_ref,
        o_ref,
        m_scr, acc_scr,
        *, use_res, approx_recip):
    f32 = jnp.float32
    cd = xh_ref.dtype                          # compute (MXU-operand) dtype
    D = xh_ref.shape[1]
    j = pl.program_id(1)                       # edge-tile index (reduction axis)

    @pl.when(j == 0)
    def _init():
        m_scr[...] = jnp.full_like(m_scr, -1e30)
        acc_scr[...] = jnp.zeros_like(acc_scr)

    attn_b = vecs_ref[0:1, :]                  # packed (8, D) vector slab
    attn_vec = vecs_ref[1:2, :]
    aggr_b = vecs_ref[2:3, :]

    # attn_proj on the virtual concat [rel[head] | bin[bins] | rel[tail]]:
    # three (tE, D) x (D, D) matmuls with f32 accumulation.
    z = (jnp.dot(xh_ref[...], wah_ref[...], preferred_element_type=f32)
         + jnp.dot(xb_ref[...], wab_ref[...], preferred_element_type=f32)
         + jnp.dot(xt_ref[...], wat_ref[...], preferred_element_type=f32)
         + attn_b)
    z = jnp.where(z > 0, z, f32(0.2) * z)                       # LeakyReLU(0.2)
    zav = z * attn_vec                                          # * attn_vec

    # Per-head sum broadcast back to width D via the block-diagonal (D, D)
    # 0/1 matrix (stored bf16; exact).  Everything stays lane-dense.
    attn = jnp.dot(zav.astype(cd), bhead_ref[...].astype(cd),
                   preferred_element_type=f32)
    attn = attn + emask_ref[...]               # -1e30 on padded edge rows

    # Online (flash-style) per-column running max across edge tiles.  Softmax
    # ratios are invariant to the per-segment constant, so a global max is
    # exact up to exp() underflow for segments far below the global max.
    m_old = m_scr[...]
    m_new = jnp.maximum(m_old, jnp.max(attn, axis=0, keepdims=True))
    alpha = jnp.exp(m_old - m_new)                              # (1, D)
    p = jnp.exp(attn - m_new)                                   # (tE, D)

    # aggr_proj(emb_rel[tail])                                    (tE, D)
    v = jnp.dot(xt_ref[...], wg_ref[...], preferred_element_type=f32) + aggr_b

    # One fused scatter matmul for numerator AND denominator:
    #   (tR, tE) x (tE, 2D) -> (tR, 2D)
    pv = jnp.concatenate([p * v, p], axis=-1).astype(cd)
    upd = jnp.dot(st_ref[...].astype(cd), pv, preferred_element_type=f32)
    alpha2 = jnp.concatenate([alpha, alpha], axis=-1)           # (1, 2D)
    acc_scr[...] = alpha2 * acc_scr[...] + upd
    m_scr[...] = m_new

    @pl.when(j == pl.num_programs(1) - 1)
    def _finalize():
        acc = acc_scr[...]
        num = acc[:, :D]
        den = acc[:, D:] + f32(1e-16)
        if approx_recip:
            h = num * pl.reciprocal(den, approx=True)           # EUP slot
        else:
            h = num / den                                       # exact (f32 path)
        h = jnp.maximum(h, 0.0)                                 # encoder ReLU
        if use_res:                                             # fused residual
            res = (jnp.dot(rel_ref[...], rw_ref[...], preferred_element_type=f32)
                   + vecs_ref[3:4, :])
            h = h + jnp.maximum(res, 0.0)
        o_ref[...] = h.astype(o_ref.dtype)


def relation_layer(emb_rel_p, xh, xb, xt, emask, st_t, bhead, lp, *,
                   tile_e, tile_r, use_res, approx_recip, vmem_limit):
    Rp, D = emb_rel_p.shape
    Ep = xh.shape[0]
    n_r, n_e = Rp // tile_r, Ep // tile_e

    grid_spec = pltpu.PrefetchScalarGridSpec(
        num_scalar_prefetch=0,
        grid=(n_r, n_e),
        in_specs=[
            pl.BlockSpec((tile_e, D), lambda i, j: (j, 0)),        # emb_rel[head]
            pl.BlockSpec((tile_e, D), lambda i, j: (j, 0)),        # emb_bin[bins]
            pl.BlockSpec((tile_e, D), lambda i, j: (j, 0)),        # emb_rel[tail]
            pl.BlockSpec((tile_e, 1), lambda i, j: (j, 0)),        # edge mask
            pl.BlockSpec((tile_r, tile_e), lambda i, j: (i, j)),   # one-hot (R,E)
            pl.BlockSpec((D, D), lambda i, j: (0, 0)),             # attn W (head)
            pl.BlockSpec((D, D), lambda i, j: (0, 0)),             # attn W (bin)
            pl.BlockSpec((D, D), lambda i, j: (0, 0)),             # attn W (tail)
            pl.BlockSpec((D, D), lambda i, j: (0, 0)),             # aggr W
            pl.BlockSpec((D, D), lambda i, j: (0, 0)),             # res W
            pl.BlockSpec((D, D), lambda i, j: (0, 0)),             # head matrix
            pl.BlockSpec((8, D), lambda i, j: (0, 0)),             # packed vectors
            pl.BlockSpec((tile_r, D), lambda i, j: (i, 0)),        # emb_rel (res)
        ],
        out_specs=pl.BlockSpec((tile_r, D), lambda i, j: (i, 0)),
        scratch_shapes=[
            pltpu.VMEM((1, D), jnp.float32),            # running max
            pltpu.VMEM((tile_r, 2 * D), jnp.float32),   # fused num|den accum
        ],
    )
    return pl.pallas_call(
        functools.partial(_relation_layer_kernel, use_res=use_res,
                          approx_recip=approx_recip),
        out_shape=jax.ShapeDtypeStruct((Rp, D), emb_rel_p.dtype),
        grid_spec=grid_spec,
        input_output_aliases={12: 0},   # new emb_rel reuses the old buffer
        compiler_params=pltpu.CompilerParams(
            dimension_semantics=("parallel", "arbitrary"),
            vmem_limit_bytes=vmem_limit),
    )(xh, xb, xt, emask, st_t,
      lp["attn_wh_t"], lp["attn_wb_t"], lp["attn_wt_t"],
      lp["aggr_w_t"], lp["res_w_t"],
      bhead, lp["vecs"], emb_rel_p)


# --------------------------- parameters (synthetic) ---------------------------

def init_params(key, args):
    gain = math.sqrt(2.0)  # nn.init.calculate_gain('relu')

    def xn(k, shape, fan_in, fan_out):
        std = gain * math.sqrt(2.0 / (fan_in + fan_out))
        return std * jax.random.normal(k, shape, dtype=jnp.float32)

    D = args.hid_dim_rel
    dh = D // args.num_head
    keys = jax.random.split(key, 4 + 4 * args.num_layer_rel)
    p = {
        "rel_emb": xn(keys[0], (args.aug_num_rels, args.rel_emb_dim),
                      args.rel_emb_dim, args.aug_num_rels),
        "rel_proj1_w": xn(keys[1], (D, args.rel_emb_dim), args.rel_emb_dim, D),
        "rel_proj1_b": jnp.zeros((D,), jnp.float32),
        "bin_emb": xn(keys[2], (args.num_bin, args.rel_emb_dim),
                      args.rel_emb_dim, args.num_bin),
        "bin_proj_w": xn(keys[3], (D, args.rel_emb_dim), args.rel_emb_dim, D),
        "bin_proj_b": jnp.zeros((D,), jnp.float32),
        "layers": [],
    }
    for l in range(args.num_layer_rel):
        k0, k1, k2, k3 = keys[4 + 4 * l: 8 + 4 * l]
        p["layers"].append({
            "attn_w": xn(k0, (D, 3 * D), 3 * D, D),
            "attn_b": jnp.zeros((D,), jnp.float32),
            "attn_vec": xn(k1, (1, args.num_head, dh), args.num_head * dh, dh),
            "aggr_w": xn(k2, (D, D), D, D),
            "aggr_b": jnp.zeros((D,), jnp.float32),
            "res_w": xn(k3, (D, D), D, D),
            "res_b": jnp.zeros((D,), jnp.float32),
        })
    return p


def prepare_params(params, args, compute_dtype=jnp.bfloat16):
    """Static, per-call-invariant prep: weight transposes, the 3-way attn-weight
    split, the block-diagonal head matrix (bf16, exact 0/1), the packed (8, D)
    vector slab, and dtype casts for the MXU operands."""
    D = args.hid_dim_rel
    dh = D // args.num_head
    cd, f32 = compute_dtype, jnp.float32
    prep = {
        "rel_emb": params["rel_emb"].astype(cd),
        "bin_emb": params["bin_emb"].astype(cd),
        "rel_proj1_wt": params["rel_proj1_w"].T.astype(cd),
        "rel_proj1_b": params["rel_proj1_b"].reshape(1, -1).astype(f32),
        "bin_proj_wt": params["bin_proj_w"].T.astype(cd),
        "bin_proj_b": params["bin_proj_b"].reshape(1, -1).astype(f32),
        # B[j, d] = 1 iff columns j, d belong to the same head (exact in bf16)
        "bhead": (jnp.arange(D)[:, None] // dh
                  == jnp.arange(D)[None, :] // dh).astype(jnp.bfloat16),
        "layers": [],
    }
    for lp in params["layers"]:
        wa_t = lp["attn_w"].T          # (3D, D)
        vecs = jnp.zeros((8, D), f32)
        vecs = vecs.at[0].set(lp["attn_b"])
        vecs = vecs.at[1].set(lp["attn_vec"].reshape(D))
        vecs = vecs.at[2].set(lp["aggr_b"])
        vecs = vecs.at[3].set(lp["res_b"])
        prep["layers"].append({
            "attn_wh_t": wa_t[:D].astype(cd),
            "attn_wb_t": wa_t[D:2 * D].astype(cd),
            "attn_wt_t": wa_t[2 * D:].astype(cd),
            "aggr_w_t": lp["aggr_w"].T.astype(cd),
            "res_w_t": lp["res_w"].T.astype(cd),
            "vecs": vecs,
        })
    return prep


# ------------------------------- forward (pallas) ----------------------------

def encoder_forward_pallas(prep, triplets, args, *, tile_e=None, tile_r=None,
                           compute_dtype=jnp.bfloat16):
    head, tail, bins = triplets[:, 0], triplets[:, 1], triplets[:, 2]
    R, D = args.aug_num_rels, args.hid_dim_rel
    E = triplets.shape[0]

    # initial projections: relu(Linear(embedding table)) -> compute dtype
    emb_rel = linear_relu(prep["rel_emb"], prep["rel_proj1_wt"],
                          prep["rel_proj1_b"], compute_dtype)
    emb_bin = linear_relu(prep["bin_emb"], prep["bin_proj_wt"],
                          prep["bin_proj_b"], compute_dtype)

    # --- tiling ---------------------------------------------------------------
    if tile_e is None:                       # lane-tile-aligned edge tiles
        tile_e = min(1024, _round_up(E, 128))
    assert tile_e % 128 == 0
    Ep = _round_up(E, tile_e)

    Rp = _round_up(R, 16)
    if tile_r is None:
        # n_r = 1: minimizes re-streaming of edge tensors on single-TC v5e/v6e.
        # On v7x pass tile_r = Rp // 2 so the parallel axis shards over both TCs.
        tile_r = Rp
    assert tile_r % 16 == 0
    Rp = _round_up(Rp, tile_r)

    emb_rel = jnp.pad(emb_rel, ((0, Rp - R), (0, 0)))            # (Rp, D)

    # pre-transposed one-hot scatter matrix (relations x edges), bf16, exact
    rel_ids = jnp.arange(Rp, dtype=head.dtype)
    st_t = (rel_ids[:, None] == head[None, :]).astype(jnp.bfloat16)
    st_t = jnp.pad(st_t, ((0, 0), (0, Ep - E)))                  # (Rp, Ep)

    # additive edge-validity mask: 0 for real edges, -1e30 for padding
    emask = jnp.where(jnp.arange(Ep) < E, 0.0, -1e30).astype(jnp.float32)[:, None]

    # bin gather is layer-invariant -> hoisted out of the layer loop
    xb = jnp.pad(emb_bin[bins], ((0, Ep - E), (0, 0)))

    vmem_limit = _pick_vmem_limit(_rel_layer_vmem_bytes(
        tile_e, tile_r, D, jnp.dtype(compute_dtype).itemsize))
    approx_recip = jnp.dtype(compute_dtype) != jnp.dtype(jnp.float32)

    for lp in prep["layers"]:
        xh = jnp.pad(emb_rel[head], ((0, Ep - E), (0, 0)))
        xt = jnp.pad(emb_rel[tail], ((0, Ep - E), (0, 0)))
        emb_rel = relation_layer(emb_rel, xh, xb, xt, emask, st_t, prep["bhead"],
                                 lp, tile_e=tile_e, tile_r=tile_r,
                                 use_res=args.res_rel, approx_recip=approx_recip,
                                 vmem_limit=vmem_limit)
    return emb_rel[:R]


# ------------------------------ pure-JAX reference ---------------------------

def encoder_forward_ref(params, triplets, args):
    relu = lambda x: jnp.maximum(x, 0.0)
    head, tail, bins = triplets[:, 0], triplets[:, 1], triplets[:, 2]
    D, H, R = args.hid_dim_rel, args.num_head, args.aug_num_rels
    dh = D // H
    emb_rel = relu(params["rel_emb"] @ params["rel_proj1_w"].T + params["rel_proj1_b"])
    emb_bin = relu(params["bin_emb"] @ params["bin_proj_w"].T + params["bin_proj_b"])
    for lp in params["layers"]:
        concat = jnp.concatenate([emb_rel[head], emb_bin[bins], emb_rel[tail]], axis=-1)
        z = concat @ lp["attn_w"].T + lp["attn_b"]
        z = jnp.where(z > 0, z, 0.2 * z).reshape(-1, H, dh)
        attn_raw = (z * lp["attn_vec"]).sum(-1, keepdims=True)
        seg_max = jax.ops.segment_max(attn_raw, head, num_segments=R)
        attn_val = jnp.exp(attn_raw - seg_max[head])
        sums = jax.ops.segment_sum(attn_val, head, num_segments=R)
        beta = attn_val / (sums[head] + 1e-16)
        v = (emb_rel[tail] @ lp["aggr_w"].T + lp["aggr_b"]).reshape(-1, H, dh)
        h = relu(jax.ops.segment_sum(beta * v, head, num_segments=R).reshape(R, D))
        if args.res_rel:
            emb_rel = h + relu(emb_rel @ lp["res_w"].T + lp["res_b"])
        else:
            emb_rel = h
    return emb_rel


# ------------------------------------ main ------------------------------------

if __name__ == "__main__":
    args = SimpleNamespace(
        aug_num_rels=32, rel_emb_dim=32, hid_dim_rel=32, num_bin=8,
        num_layer_rel=2, num_head=8, res_rel=True, max_label_value=10,
        device=None,
    )
    key = jax.random.PRNGKey(0)
    kp, kh, kt, kb = jax.random.split(key, 4)
    params = init_params(kp, args)

    E = 300   # > 128 so multiple edge tiles exercise the online accumulation
    head = jax.random.randint(kh, (E, 1), 0, args.aug_num_rels, dtype=jnp.int32)
    tail = jax.random.randint(kt, (E, 1), 0, args.aug_num_rels, dtype=jnp.int32)
    bins = jax.random.randint(kb, (E, 1), 0, args.num_bin, dtype=jnp.int32)
    relation_triplets = jnp.concatenate([head, tail, bins], axis=1)   # (E, 3)

    # full-precision pure-JAX reference
    with jax.default_matmul_precision("float32"):
        ref = encoder_forward_ref(params, relation_triplets, args)
    ref = jax.block_until_ready(ref)

    # ---- fp32 operand path (tight tolerance), single relation tile (n_r=1) ----
    prep32 = prepare_params(params, args, compute_dtype=jnp.float32)
    fwd32 = jax.jit(lambda p, t: encoder_forward_pallas(
        p, t, args, tile_e=128, compute_dtype=jnp.float32))
    out32 = jax.block_until_ready(fwd32(prep32, relation_triplets))
    assert out32.shape == (args.aug_num_rels, args.hid_dim_rel)
    assert bool(jnp.all(jnp.isfinite(out32)))
    assert bool(jnp.allclose(out32, ref, rtol=1e-3, atol=1e-3)), \
        float(jnp.max(jnp.abs(out32 - ref)))

    # ---- default bf16 MXU-operand path, two relation tiles (v7x-style) ----
    prep16 = prepare_params(params, args)                     # bf16 default
    fwd16 = jax.jit(lambda p, t: encoder_forward_pallas(
        p, t, args, tile_e=128, tile_r=16))
    out16 = jax.block_until_ready(fwd16(prep16, relation_triplets))
    assert out16.shape == (args.aug_num_rels, args.hid_dim_rel)
    assert bool(jnp.all(jnp.isfinite(out16.astype(jnp.float32))))
    assert bool(jnp.allclose(out16.astype(jnp.float32), ref, rtol=1e-1, atol=1e-1)), \
        float(jnp.max(jnp.abs(out16.astype(jnp.float32) - ref)))

    print("KERNEL_OK")
</pallas_src>

<mosaic_0001>
module attributes {stable_mosaic.version = 11 : i64} {
  func.func @_linear_relu_kernel(%arg0: i32, %arg1: memref<16x32xf32, #tpu.memory_space<vmem>>, %arg2: memref<32x32xf32, #tpu.memory_space<vmem>>, %arg3: memref<1x32xf32, #tpu.memory_space<vmem>>, %arg4: memref<16x32xf32, #tpu.memory_space<vmem>>) attributes {dimension_semantics = [#tpu.dimension_semantics<parallel>], iteration_bounds = array<i64: 1>, scalar_prefetch = 0 : i64, scratch_operands = 0 : i64, tpu.core_type = #tpu.core_type<tc>, window_params = [{transform_indices = @transform_0, window_bounds = array<i64: 16, 32>}, {pipeline_mode = #tpu.pipeline_mode<synchronous>, transform_indices = @transform_1, window_bounds = array<i64: 32, 32>}, {pipeline_mode = #tpu.pipeline_mode<synchronous>, transform_indices = @transform_2, window_bounds = array<i64: 1, 32>}, {transform_indices = @transform_3, window_bounds = array<i64: 16, 32>}]} {
    %c0 = arith.constant 0 : index
    %c0_0 = arith.constant 0 : index
    %0 = vector.load %arg1[%c0, %c0_0] : memref<16x32xf32, #tpu.memory_space<vmem>>, vector<16x32xf32>
    %c0_1 = arith.constant 0 : index
    %c0_2 = arith.constant 0 : index
    %1 = vector.load %arg2[%c0_1, %c0_2] : memref<32x32xf32, #tpu.memory_space<vmem>>, vector<32x32xf32>
    %cst = arith.constant dense<0.000000e+00> : vector<16x32xf32>
    %2 = tpu.matmul %0, %1, %cst {dimension_numbers = #tpu.dot_dimension_numbers<[1], [0], [0], [1], [0, 0, 1, 1], [], []>} : vector<16x32xf32>, vector<32x32xf32>, vector<16x32xf32> -> vector<16x32xf32>
    %c0_3 = arith.constant 0 : index
    %c0_4 = arith.constant 0 : index
    %3 = vector.load %arg3[%c0_3, %c0_4] : memref<1x32xf32, #tpu.memory_space<vmem>>, vector<1x32xf32>
    %4 = vector.broadcast %3 : vector<1x32xf32> to vector<16x32xf32>
    %5 = arith.addf %2, %4 : vector<16x32xf32>
    %cst_5 = arith.constant 0.000000e+00 : f32
    %6 = vector.broadcast %cst_5 : f32 to vector<16x32xf32>
    %7 = arith.maximumf %5, %6 : vector<16x32xf32>
    %c0_6 = arith.constant 0 : index
    %c0_7 = arith.constant 0 : index
    %8 = vector.load %arg4[%c0_6, %c0_7] : memref<16x32xf32, #tpu.memory_space<vmem>>, vector<16x32xf32>
    tpu.vector_store %arg4[%c0_6, %c0_7], %7 {strides = array<i32>} : memref<16x32xf32, #tpu.memory_space<vmem>>, vector<16x32xf32>,
    return
  }
  func.func @transform_0(%arg0: i32) -> (i32, i32) {
    %c0_i32 = arith.constant 0 : i32
    %c0_i32_0 = arith.constant 0 : i32
    return %arg0, %c0_i32 : i32, i32
  }
  func.func @transform_1(%arg0: i32) -> (i32, i32) {
    %c0_i32 = arith.constant 0 : i32
    %c0_i32_0 = arith.constant 0 : i32
    %c0_i32_1 = arith.constant 0 : i32
    return %c0_i32, %c0_i32_0 : i32, i32
  }
  func.func @transform_2(%arg0: i32) -> (i32, i32) {
    %c0_i32 = arith.constant 0 : i32
    %c0_i32_0 = arith.constant 0 : i32
    %c0_i32_1 = arith.constant 0 : i32
    return %c0_i32, %c0_i32_0 : i32, i32
  }
  func.func @transform_3(%arg0: i32) -> (i32, i32) {
    %c0_i32 = arith.constant 0 : i32
    %c0_i32_0 = arith.constant 0 : i32
    return %arg0, %c0_i32 : i32, i32
  }
}

module attributes {stable_mosaic.version = 11 : i64} {
  func.func @_linear_relu_kernel(%arg0: i32, %arg1: memref<32x32xf32, #tpu.memory_space<vmem>>, %arg2: memref<32x32xf32, #tpu.memory_space<vmem>>, %arg3: memref<1x32xf32, #tpu.memory_space<vmem>>, %arg4: memref<32x32xf32, #tpu.memory_space<vmem>>) attributes {dimension_semantics = [#tpu.dimension_semantics<parallel>], iteration_bounds = array<i64: 1>, scalar_prefetch = 0 : i64, scratch_operands = 0 : i64, tpu.core_type = #tpu.core_type<tc>, window_params = [{transform_indices = @transform_0, window_bounds = array<i64: 32, 32>}, {pipeline_mode = #tpu.pipeline_mode<synchronous>, transform_indices = @transform_1, window_bounds = array<i64: 32, 32>}, {pipeline_mode = #tpu.pipeline_mode<synchronous>, transform_indices = @transform_2, window_bounds = array<i64: 1, 32>}, {transform_indices = @transform_3, window_bounds = array<i64: 32, 32>}]} {
    %c0 = arith.constant 0 : index
    %c0_0 = arith.constant 0 : index
    %0 = vector.load %arg1[%c0, %c0_0] : memref<32x32xf32, #tpu.memory_space<vmem>>, vector<32x32xf32>
    %c0_1 = arith.constant 0 : index
    %c0_2 = arith.constant 0 : index
    %1 = vector.load %arg2[%c0_1, %c0_2] : memref<32x32xf32, #tpu.memory_space<vmem>>, vector<32x32xf32>
    %cst = arith.constant dense<0.000000e+00> : vector<32x32xf32>
    %2 = tpu.matmul %0, %1, %cst {dimension_numbers = #tpu.dot_dimension_numbers<[1], [0], [0], [1], [0, 0, 1, 1], [], []>} : vector<32x32xf32>, vector<32x32xf32>, vector<32x32xf32> -> vector<32x32xf32>
    %c0_3 = arith.constant 0 : index
    %c0_4 = arith.constant 0 : index
    %3 = vector.load %arg3[%c0_3, %c0_4] : memref<1x32xf32, #tpu.memory_space<vmem>>, vector<1x32xf32>
    %4 = vector.broadcast %3 : vector<1x32xf32> to vector<32x32xf32>
    %5 = arith.addf %2, %4 : vector<32x32xf32>
    %cst_5 = arith.constant 0.000000e+00 : f32
    %6 = vector.broadcast %cst_5 : f32 to vector<32x32xf32>
    %7 = arith.maximumf %5, %6 : vector<32x32xf32>
    %c0_6 = arith.constant 0 : index
    %c0_7 = arith.constant 0 : index
    %8 = vector.load %arg4[%c0_6, %c0_7] : memref<32x32xf32, #tpu.memory_space<vmem>>, vector<32x32xf32>
    tpu.vector_store %arg4[%c0_6, %c0_7], %7 {strides = array<i32>} : memref<32x32xf32, #tpu.memory_space<vmem>>, vector<32x32xf32>,
    return
  }
  func.func @transform_0(%arg0: i32) -> (i32, i32) {
    %c0_i32 = arith.constant 0 : i32
    %c0_i32_0 = arith.constant 0 : i32
    return %arg0, %c0_i32 : i32, i32
  }
  func.func @transform_1(%arg0: i32) -> (i32, i32) {
    %c0_i32 = arith.constant 0 : i32
    %c0_i32_0 = arith.constant 0 : i32
    %c0_i32_1 = arith.constant 0 : i32
    return %c0_i32, %c0_i32_0 : i32, i32
  }
  func.func @transform_2(%arg0: i32) -> (i32, i32) {
    %c0_i32 = arith.constant 0 : i32
    %c0_i32_0 = arith.constant 0 : i32
    %c0_i32_1 = arith.constant 0 : i32
    return %c0_i32, %c0_i32_0 : i32, i32
  }
  func.func @transform_3(%arg0: i32) -> (i32, i32) {
    %c0_i32 = arith.constant 0 : i32
    %c0_i32_0 = arith.constant 0 : i32
    return %arg0, %c0_i32 : i32, i32
  }
}

module attributes {stable_mosaic.version = 11 : i64} {
  func.func @_relation_layer_kernel(%arg0: i32, %arg1: i32, %arg2: memref<128x32xf32, #tpu.memory_space<vmem>>, %arg3: memref<128x32xf32, #tpu.memory_space<vmem>>, %arg4: memref<128x32xf32, #tpu.memory_space<vmem>>, %arg5: memref<128x1xf32, #tpu.memory_space<vmem>>, %arg6: memref<32x128xbf16, #tpu.memory_space<vmem>>, %arg7: memref<32x32xf32, #tpu.memory_space<vmem>>, %arg8: memref<32x32xf32, #tpu.memory_space<vmem>>, %arg9: memref<32x32xf32, #tpu.memory_space<vmem>>, %arg10: memref<32x32xf32, #tpu.memory_space<vmem>>, %arg11: memref<32x32xf32, #tpu.memory_space<vmem>>, %arg12: memref<32x32xbf16, #tpu.memory_space<vmem>>, %arg13: memref<8x32xf32, #tpu.memory_space<vmem>>, %arg14: memref<32x32xf32, #tpu.memory_space<vmem>>, %arg15: memref<32x32xf32, #tpu.memory_space<vmem>>, %arg16: memref<1x32xf32, #tpu.memory_space<vmem>>, %arg17: memref<32x64xf32, #tpu.memory_space<vmem>>) attributes {dimension_semantics = [#tpu.dimension_semantics<parallel>, #tpu.dimension_semantics<arbitrary>], iteration_bounds = array<i64: 1, 3>, scalar_prefetch = 0 : i64, scratch_operands = 2 : i64, tpu.core_type = #tpu.core_type<tc>, window_params = [{transform_indices = @transform_0, window_bounds = array<i64: 128, 32>}, {transform_indices = @transform_1, window_bounds = array<i64: 128, 32>}, {transform_indices = @transform_2, window_bounds = array<i64: 128, 32>}, {transform_indices = @transform_3, window_bounds = array<i64: 128, 1>}, {transform_indices = @transform_4, window_bounds = array<i64: 32, 128>}, {pipeline_mode = #tpu.pipeline_mode<synchronous>, transform_indices = @transform_5, window_bounds = array<i64: 32, 32>}, {pipeline_mode = #tpu.pipeline_mode<synchronous>, transform_indices = @transform_6, window_bounds = array<i64: 32, 32>}, {pipeline_mode = #tpu.pipeline_mode<synchronous>, transform_indices = @transform_7, window_bounds = array<i64: 32, 32>}, {pipeline_mode = #tpu.pipeline_mode<synchronous>, transform_indices = @transform_8, window_bounds = array<i64: 32, 32>}, {pipeline_mode = #tpu.pipeline_mode<synchronous>, transform_indices = @transform_9, window_bounds = array<i64: 32, 32>}, {pipeline_mode = #tpu.pipeline_mode<synchronous>, transform_indices = @transform_10, window_bounds = array<i64: 32, 32>}, {pipeline_mode = #tpu.pipeline_mode<synchronous>, transform_indices = @transform_11, window_bounds = array<i64: 8, 32>}, {transform_indices = @transform_12, window_bounds = array<i64: 32, 32>}, {transform_indices = @transform_13, window_bounds = array<i64: 32, 32>}]} {
    %c0_i32 = arith.constant 0 : i32
    %0 = arith.cmpi eq, %arg1, %c0_i32 : i32
    %1 = arith.extui %0 : i1 to i32
    %c0_i32_0 = arith.constant 0 : i32
    %2 = arith.cmpi ne, %1, %c0_i32_0 : i32
    scf.if %2 {
      %cst_43 = arith.constant -1.000000e+30 : f32
      %61 = vector.broadcast %cst_43 : f32 to vector<1x32xf32>
      %c0_44 = arith.constant 0 : index
      %c0_45 = arith.constant 0 : index
      %62 = vector.load %arg16[%c0_44, %c0_45] : memref<1x32xf32, #tpu.memory_space<vmem>>, vector<1x32xf32>
      tpu.vector_store %arg16[%c0_44, %c0_45], %61 {strides = array<i32>} : memref<1x32xf32, #tpu.memory_space<vmem>>, vector<1x32xf32>,
      %cst_46 = arith.constant 0.000000e+00 : f32
      %63 = vector.broadcast %cst_46 : f32 to vector<32x64xf32>
      %c0_47 = arith.constant 0 : index
      %c0_48 = arith.constant 0 : index
      %64 = vector.load %arg17[%c0_47, %c0_48] : memref<32x64xf32, #tpu.memory_space<vmem>>, vector<32x64xf32>
      tpu.vector_store %arg17[%c0_47, %c0_48], %63 {strides = array<i32>} : memref<32x64xf32, #tpu.memory_space<vmem>>, vector<32x64xf32>,
    } else {
    }
    %c0 = arith.constant 0 : index
    %c0_1 = arith.constant 0 : index
    %3 = vector.load %arg13[%c0, %c0_1] : memref<8x32xf32, #tpu.memory_space<vmem>>, vector<1x32xf32>
    %c1 = arith.constant 1 : index
    %c0_2 = arith.constant 0 : index
    %4 = vector.load %arg13[%c1, %c0_2] : memref<8x32xf32, #tpu.memory_space<vmem>>, vector<1x32xf32>
    %c2 = arith.constant 2 : index
    %c0_3 = arith.constant 0 : index
    %5 = vector.load %arg13[%c2, %c0_3] : memref<8x32xf32, #tpu.memory_space<vmem>>, vector<1x32xf32>
    %c0_4 = arith.constant 0 : index
    %c0_5 = arith.constant 0 : index
    %6 = vector.load %arg2[%c0_4, %c0_5] : memref<128x32xf32, #tpu.memory_space<vmem>>, vector<128x32xf32>
    %c0_6 = arith.constant 0 : index
    %c0_7 = arith.constant 0 : index
    %7 = vector.load %arg7[%c0_6, %c0_7] : memref<32x32xf32, #tpu.memory_space<vmem>>, vector<32x32xf32>
    %cst = arith.constant dense<0.000000e+00> : vector<128x32xf32>
    %8 = tpu.matmul %6, %7, %cst {dimension_numbers = #tpu.dot_dimension_numbers<[1], [0], [0], [1], [0, 0, 1, 1], [], []>} : vector<128x32xf32>, vector<32x32xf32>, vector<128x32xf32> -> vector<128x32xf32>
    %c0_8 = arith.constant 0 : index
    %c0_9 = arith.constant 0 : index
    %9 = vector.load %arg3[%c0_8, %c0_9] : memref<128x32xf32, #tpu.memory_space<vmem>>, vector<128x32xf32>
    %c0_10 = arith.constant 0 : index
    %c0_11 = arith.constant 0 : index
    %10 = vector.load %arg8[%c0_10, %c0_11] : memref<32x32xf32, #tpu.memory_space<vmem>>, vector<32x32xf32>
    %cst_12 = arith.constant dense<0.000000e+00> : vector<128x32xf32>
    %11 = tpu.matmul %9, %10, %cst_12 {dimension_numbers = #tpu.dot_dimension_numbers<[1], [0], [0], [1], [0, 0, 1, 1], [], []>} : vector<128x32xf32>, vector<32x32xf32>, vector<128x32xf32> -> vector<128x32xf32>
    %12 = arith.addf %8, %11 : vector<128x32xf32>
    %c0_13 = arith.constant 0 : index
    %c0_14 = arith.constant 0 : index
    %13 = vector.load %arg4[%c0_13, %c0_14] : memref<128x32xf32, #tpu.memory_space<vmem>>, vector<128x32xf32>
    %c0_15 = arith.constant 0 : index
    %c0_16 = arith.constant 0 : index
    %14 = vector.load %arg9[%c0_15, %c0_16] : memref<32x32xf32, #tpu.memory_space<vmem>>, vector<32x32xf32>
    %cst_17 = arith.constant dense<0.000000e+00> : vector<128x32xf32>
    %15 = tpu.matmul %13, %14, %cst_17 {dimension_numbers = #tpu.dot_dimension_numbers<[1], [0], [0], [1], [0, 0, 1, 1], [], []>} : vector<128x32xf32>, vector<32x32xf32>, vector<128x32xf32> -> vector<128x32xf32>
    %16 = arith.addf %12, %15 : vector<128x32xf32>
    %17 = vector.broadcast %3 : vector<1x32xf32> to vector<128x32xf32>
    %18 = arith.addf %16, %17 : vector<128x32xf32>
    %cst_18 = arith.constant 0.000000e+00 : f32
    %19 = vector.broadcast %cst_18 : f32 to vector<128x32xf32>
    %20 = arith.cmpf ogt, %18, %19 : vector<128x32xf32>
    %cst_19 = arith.constant 2.000000e-01 : f32
    %21 = vector.broadcast %cst_19 : f32 to vector<128x32xf32>
    %22 = arith.mulf %21, %18 : vector<128x32xf32>
    %23 = arith.select %20, %18, %22 : vector<128x32xi1>, vector<128x32xf32>
    %24 = vector.broadcast %4 : vector<1x32xf32> to vector<128x32xf32>
    %25 = arith.mulf %23, %24 : vector<128x32xf32>
    %c0_20 = arith.constant 0 : index
    %c0_21 = arith.constant 0 : index
    %26 = vector.load %arg12[%c0_20, %c0_21] : memref<32x32xbf16, #tpu.memory_space<vmem>>, vector<32x32xbf16>
    %27 = arith.extf %26 : vector<32x32xbf16> to vector<32x32xf32>
    %cst_22 = arith.constant dense<0.000000e+00> : vector<128x32xf32>
    %28 = tpu.matmul %25, %27, %cst_22 {dimension_numbers = #tpu.dot_dimension_numbers<[1], [0], [0], [1], [0, 0, 1, 1], [], []>} : vector<128x32xf32>, vector<32x32xf32>, vector<128x32xf32> -> vector<128x32xf32>
    %c0_23 = arith.constant 0 : index
    %c0_24 = arith.constant 0 : index
    %29 = vector.load %arg5[%c0_23, %c0_24] : memref<128x1xf32, #tpu.memory_space<vmem>>, vector<128x1xf32>
    %30 = vector.broadcast %29 : vector<128x1xf32> to vector<128x32xf32>
    %31 = arith.addf %28, %30 : vector<128x32xf32>
    %c0_25 = arith.constant 0 : index
    %c0_26 = arith.constant 0 : index
    %32 = vector.load %arg16[%c0_25, %c0_26] : memref<1x32xf32, #tpu.memory_space<vmem>>, vector<1x32xf32>
    %cst_27 = arith.constant dense<0xFF800000> : vector<32xf32>
    %33 = vector.multi_reduction <maximumf>, %31, %cst_27 [0] : vector<128x32xf32> to vector<32xf32>
    %34 = vector.shape_cast %33 : vector<32xf32> to vector<1x32xf32>
    %35 = arith.maximumf %32, %34 : vector<1x32xf32>
    %36 = arith.subf %32, %35 : vector<1x32xf32>
    %37 = math.exp %36 : vector<1x32xf32>
    %38 = vector.broadcast %35 : vector<1x32xf32> to vector<128x32xf32>
    %39 = arith.subf %31, %38 : vector<128x32xf32>
    %40 = math.exp %39 : vector<128x32xf32>
    %c0_28 = arith.constant 0 : index
    %c0_29 = arith.constant 0 : index
    %41 = vector.load %arg4[%c0_28, %c0_29] : memref<128x32xf32, #tpu.memory_space<vmem>>, vector<128x32xf32>
    %c0_30 = arith.constant 0 : index
    %c0_31 = arith.constant 0 : index
    %42 = vector.load %arg10[%c0_30, %c0_31] : memref<32x32xf32, #tpu.memory_space<vmem>>, vector<32x32xf32>
    %cst_32 = arith.constant dense<0.000000e+00> : vector<128x32xf32>
    %43 = tpu.matmul %41, %42, %cst_32 {dimension_numbers = #tpu.dot_dimension_numbers<[1], [0], [0], [1], [0, 0, 1, 1], [], []>} : vector<128x32xf32>, vector<32x32xf32>, vector<128x32xf32> -> vector<128x32xf32>
    %44 = vector.broadcast %5 : vector<1x32xf32> to vector<128x32xf32>
    %45 = arith.addf %43, %44 : vector<128x32xf32>
    %46 = arith.mulf %40, %45 : vector<128x32xf32>
    %47 = tpu.concatenate %46, %40 in 1 : vector<128x32xf32>, vector<128x32xf32> -> vector<128x64xf32>
    %c0_33 = arith.constant 0 : index
    %c0_34 = arith.constant 0 : index
    %48 = vector.load %arg6[%c0_33, %c0_34] : memref<32x128xbf16, #tpu.memory_space<vmem>>, vector<32x128xbf16>
    %49 = arith.extf %48 : vector<32x128xbf16> to vector<32x128xf32>
    %cst_35 = arith.constant dense<0.000000e+00> : vector<32x64xf32>
    %50 = tpu.matmul %49, %47, %cst_35 {dimension_numbers = #tpu.dot_dimension_numbers<[1], [0], [0], [1], [0, 0, 1, 1], [], []>} : vector<32x128xf32>, vector<128x64xf32>, vector<32x64xf32> -> vector<32x64xf32>
    %51 = tpu.concatenate %37, %37 in 1 : vector<1x32xf32>, vector<1x32xf32> -> vector<1x64xf32>
    %c0_36 = arith.constant 0 : index
    %c0_37 = arith.constant 0 : index
    %52 = vector.load %arg17[%c0_36, %c0_37] : memref<32x64xf32, #tpu.memory_space<vmem>>, vector<32x64xf32>
    %53 = vector.broadcast %51 : vector<1x64xf32> to vector<32x64xf32>
    %54 = arith.mulf %53, %52 : vector<32x64xf32>
    %55 = arith.addf %54, %50 : vector<32x64xf32>
    %c0_38 = arith.constant 0 : index
    %c0_39 = arith.constant 0 : index
    %56 = vector.load %arg17[%c0_38, %c0_39] : memref<32x64xf32, #tpu.memory_space<vmem>>, vector<32x64xf32>
    tpu.vector_store %arg17[%c0_38, %c0_39], %55 {strides = array<i32>} : memref<32x64xf32, #tpu.memory_space<vmem>>, vector<32x64xf32>,
    %c0_40 = arith.constant 0 : index
    %c0_41 = arith.constant 0 : index
    %57 = vector.load %arg16[%c0_40, %c0_41] : memref<1x32xf32, #tpu.memory_space<vmem>>, vector<1x32xf32>
    tpu.vector_store %arg16[%c0_40, %c0_41], %35 {strides = array<i32>} : memref<1x32xf32, #tpu.memory_space<vmem>>, vector<1x32xf32>,
    %c2_i32 = arith.constant 2 : i32
    %58 = arith.cmpi eq, %arg1, %c2_i32 : i32
    %59 = arith.extui %58 : i1 to i32
    %c0_i32_42 = arith.constant 0 : i32
    %60 = arith.cmpi ne, %59, %c0_i32_42 : i32
    scf.if %60 {
      %c0_43 = arith.constant 0 : index
      %c0_44 = arith.constant 0 : index
      %61 = vector.load %arg17[%c0_43, %c0_44] : memref<32x64xf32, #tpu.memory_space<vmem>>, vector<32x64xf32>
      %62 = vector.extract_strided_slice %61 {offsets = [0, 0], sizes = [32, 32], strides = [1, 1]} : vector<32x64xf32> to vector<32x32xf32>
      %63 = vector.extract_strided_slice %61 {offsets = [0, 32], sizes = [32, 32], strides = [1, 1]} : vector<32x64xf32> to vector<32x32xf32>
      %cst_45 = arith.constant 1.000000e-16 : f32
      %64 = vector.broadcast %cst_45 : f32 to vector<32x32xf32>
      %65 = arith.addf %63, %64 : vector<32x32xf32>
      %66 = arith.divf %62, %65 : vector<32x32xf32>
      %cst_46 = arith.constant 0.000000e+00 : f32
      %67 = vector.broadcast %cst_46 : f32 to vector<32x32xf32>
      %68 = arith.maximumf %66, %67 : vector<32x32xf32>
      %c0_47 = arith.constant 0 : index
      %c0_48 = arith.constant 0 : index
      %69 = vector.load %arg14[%c0_47, %c0_48] : memref<32x32xf32, #tpu.memory_space<vmem>>, vector<32x32xf32>
      %c0_49 = arith.constant 0 : index
      %c0_50 = arith.constant 0 : index
      %70 = vector.load %arg11[%c0_49, %c0_50] : memref<32x32xf32, #tpu.memory_space<vmem>>, vector<32x32xf32>
      %cst_51 = arith.constant dense<0.000000e+00> : vector<32x32xf32>
      %71 = tpu.matmul %69, %70, %cst_51 {dimension_numbers = #tpu.dot_dimension_numbers<[1], [0], [0], [1], [0, 0, 1, 1], [], []>} : vector<32x32xf32>, vector<32x32xf32>, vector<32x32xf32> -> vector<32x32xf32>
      %c3 = arith.constant 3 : index
      %c0_52 = arith.constant 0 : index
      %72 = vector.load %arg13[%c3, %c0_52] : memref<8x32xf32, #tpu.memory_space<vmem>>, vector<1x32xf32>
      %73 = vector.broadcast %72 : vector<1x32xf32> to vector<32x32xf32>
      %74 = arith.addf %71, %73 : vector<32x32xf32>
      %cst_53 = arith.constant 0.000000e+00 : f32
      %75 = vector.broadcast %cst_53 : f32 to vector<32x32xf32>
      %76 = arith.maximumf %74, %75 : vector<32x32xf32>
      %77 = arith.addf %68, %76 : vector<32x32xf32>
      %c0_54 = arith.constant 0 : index
      %c0_55 = arith.constant 0 : index
      %78 = vector.load %arg15[%c0_54, %c0_55] : memref<32x32xf32, #tpu.memory_space<vmem>>, vector<32x32xf32>
      tpu.vector_store %arg15[%c0_54, %c0_55], %77 {strides = array<i32>} : memref<32x32xf32, #tpu.memory_space<vmem>>, vector<32x32xf32>,
    } else {
    }
    return
  }
  func.func @transform_0(%arg0: i32, %arg1: i32) -> (i32, i32) {
    %c0_i32 = arith.constant 0 : i32
    %c0_i32_0 = arith.constant 0 : i32
    return %arg1, %c0_i32 : i32, i32
  }
  func.func @transform_1(%arg0: i32, %arg1: i32) -> (i32, i32) {
    %c0_i32 = arith.constant 0 : i32
    %c0_i32_0 = arith.constant 0 : i32
    return %arg1, %c0_i32 : i32, i32
  }
  func.func @transform_2(%arg0: i32, %arg1: i32) -> (i32, i32) {
    %c0_i32 = arith.constant 0 : i32
    %c0_i32_0 = arith.constant 0 : i32
    return %arg1, %c0_i32 : i32, i32
  }
  func.func @transform_3(%arg0: i32, %arg1: i32) -> (i32, i32) {
    %c0_i32 = arith.constant 0 : i32
    %c0_i32_0 = arith.constant 0 : i32
    return %arg1, %c0_i32 : i32, i32
  }
  func.func @transform_4(%arg0: i32, %arg1: i32) -> (i32, i32) {
    %c0_i32 = arith.constant 0 : i32
    return %arg0, %arg1 : i32, i32
  }
  func.func @transform_5(%arg0: i32, %arg1: i32) -> (i32, i32) {
    %c0_i32 = arith.constant 0 : i32
    %c0_i32_0 = arith.constant 0 : i32
    %c0_i32_1 = arith.constant 0 : i32
    return %c0_i32, %c0_i32_0 : i32, i32
  }
  func.func @transform_6(%arg0: i32, %arg1: i32) -> (i32, i32) {
    %c0_i32 = arith.constant 0 : i32
    %c0_i32_0 = arith.constant 0 : i32
    %c0_i32_1 = arith.constant 0 : i32
    return %c0_i32, %c0_i32_0 : i32, i32
  }
  func.func @transform_7(%arg0: i32, %arg1: i32) -> (i32, i32) {
    %c0_i32 = arith.constant 0 : i32
    %c0_i32_0 = arith.constant 0 : i32
    %c0_i32_1 = arith.constant 0 : i32
    return %c0_i32, %c0_i32_0 : i32, i32
  }
  func.func @transform_8(%arg0: i32, %arg1: i32) -> (i32, i32) {
    %c0_i32 = arith.constant 0 : i32
    %c0_i32_0 = arith.constant 0 : i32
    %c0_i32_1 = arith.constant 0 : i32
    return %c0_i32, %c0_i32_0 : i32, i32
  }
  func.func @transform_9(%arg0: i32, %arg1: i32) -> (i32, i32) {
    %c0_i32 = arith.constant 0 : i32
    %c0_i32_0 = arith.constant 0 : i32
    %c0_i32_1 = arith.constant 0 : i32
    return %c0_i32, %c0_i32_0 : i32, i32
  }
  func.func @transform_10(%arg0: i32, %arg1: i32) -> (i32, i32) {
    %c0_i32 = arith.constant 0 : i32
    %c0_i32_0 = arith.constant 0 : i32
    %c0_i32_1 = arith.constant 0 : i32
    return %c0_i32, %c0_i32_0 : i32, i32
  }
  func.func @transform_11(%arg0: i32, %arg1: i32) -> (i32, i32) {
    %c0_i32 = arith.constant 0 : i32
    %c0_i32_0 = arith.constant 0 : i32
    %c0_i32_1 = arith.constant 0 : i32
    return %c0_i32, %c0_i32_0 : i32, i32
  }
  func.func @transform_12(%arg0: i32, %arg1: i32) -> (i32, i32) {
    %c0_i32 = arith.constant 0 : i32
    %c0_i32_0 = arith.constant 0 : i32
    return %arg0, %c0_i32 : i32, i32
  }
  func.func @transform_13(%arg0: i32, %arg1: i32) -> (i32, i32) {
    %c0_i32 = arith.constant 0 : i32
    %c0_i32_0 = arith.constant 0 : i32
    return %arg0, %c0_i32 : i32, i32
  }
}

module attributes {stable_mosaic.version = 11 : i64} {
  func.func @_relation_layer_kernel(%arg0: i32, %arg1: i32, %arg2: memref<128x32xf32, #tpu.memory_space<vmem>>, %arg3: memref<128x32xf32, #tpu.memory_space<vmem>>, %arg4: memref<128x32xf32, #tpu.memory_space<vmem>>, %arg5: memref<128x1xf32, #tpu.memory_space<vmem>>, %arg6: memref<32x128xbf16, #tpu.memory_space<vmem>>, %arg7: memref<32x32xf32, #tpu.memory_space<vmem>>, %arg8: memref<32x32xf32, #tpu.memory_space<vmem>>, %arg9: memref<32x32xf32, #tpu.memory_space<vmem>>, %arg10: memref<32x32xf32, #tpu.memory_space<vmem>>, %arg11: memref<32x32xf32, #tpu.memory_space<vmem>>, %arg12: memref<32x32xbf16, #tpu.memory_space<vmem>>, %arg13: memref<8x32xf32, #tpu.memory_space<vmem>>, %arg14: memref<32x32xf32, #tpu.memory_space<vmem>>, %arg15: memref<32x32xf32, #tpu.memory_space<vmem>>, %arg16: memref<1x32xf32, #tpu.memory_space<vmem>>, %arg17: memref<32x64xf32, #tpu.memory_space<vmem>>) attributes {dimension_semantics = [#tpu.dimension_semantics<parallel>, #tpu.dimension_semantics<arbitrary>], iteration_bounds = array<i64: 1, 3>, scalar_prefetch = 0 : i64, scratch_operands = 2 : i64, tpu.core_type = #tpu.core_type<tc>, window_params = [{transform_indices = @transform_0, window_bounds = array<i64: 128, 32>}, {transform_indices = @transform_1, window_bounds = array<i64: 128, 32>}, {transform_indices = @transform_2, window_bounds = array<i64: 128, 32>}, {transform_indices = @transform_3, window_bounds = array<i64: 128, 1>}, {transform_indices = @transform_4, window_bounds = array<i64: 32, 128>}, {pipeline_mode = #tpu.pipeline_mode<synchronous>, transform_indices = @transform_5, window_bounds = array<i64: 32, 32>}, {pipeline_mode = #tpu.pipeline_mode<synchronous>, transform_indices = @transform_6, window_bounds = array<i64: 32, 32>}, {pipeline_mode = #tpu.pipeline_mode<synchronous>, transform_indices = @transform_7, window_bounds = array<i64: 32, 32>}, {pipeline_mode = #tpu.pipeline_mode<synchronous>, transform_indices = @transform_8, window_bounds = array<i64: 32, 32>}, {pipeline_mode = #tpu.pipeline_mode<synchronous>, transform_indices = @transform_9, window_bounds = array<i64: 32, 32>}, {pipeline_mode = #tpu.pipeline_mode<synchronous>, transform_indices = @transform_10, window_bounds = array<i64: 32, 32>}, {pipeline_mode = #tpu.pipeline_mode<synchronous>, transform_indices = @transform_11, window_bounds = array<i64: 8, 32>}, {transform_indices = @transform_12, window_bounds = array<i64: 32, 32>}, {transform_indices = @transform_13, window_bounds = array<i64: 32, 32>}]} {
    %c0_i32 = arith.constant 0 : i32
    %0 = arith.cmpi eq, %arg1, %c0_i32 : i32
    %1 = arith.extui %0 : i1 to i32
    %c0_i32_0 = arith.constant 0 : i32
    %2 = arith.cmpi ne, %1, %c0_i32_0 : i32
    scf.if %2 {
      %cst_43 = arith.constant -1.000000e+30 : f32
      %61 = vector.broadcast %cst_43 : f32 to vector<1x32xf32>
      %c0_44 = arith.constant 0 : index
      %c0_45 = arith.constant 0 : index
      %62 = vector.load %arg16[%c0_44, %c0_45] : memref<1x32xf32, #tpu.memory_space<vmem>>, vector<1x32xf32>
      tpu.vector_store %arg16[%c0_44, %c0_45], %61 {strides = array<i32>} : memref<1x32xf32, #tpu.memory_space<vmem>>, vector<1x32xf32>,
      %cst_46 = arith.constant 0.000000e+00 : f32
      %63 = vector.broadcast %cst_46 : f32 to vector<32x64xf32>
      %c0_47 = arith.constant 0 : index
      %c0_48 = arith.constant 0 : index
      %64 = vector.load %arg17[%c0_47, %c0_48] : memref<32x64xf32, #tpu.memory_space<vmem>>, vector<32x64xf32>
      tpu.vector_store %arg17[%c0_47, %c0_48], %63 {strides = array<i32>} : memref<32x64xf32, #tpu.memory_space<vmem>>, vector<32x64xf32>,
    } else {
    }
    %c0 = arith.constant 0 : index
    %c0_1 = arith.constant 0 : index
    %3 = vector.load %arg13[%c0, %c0_1] : memref<8x32xf32, #tpu.memory_space<vmem>>, vector<1x32xf32>
    %c1 = arith.constant 1 : index
    %c0_2 = arith.constant 0 : index
    %4 = vector.load %arg13[%c1, %c0_2] : memref<8x32xf32, #tpu.memory_space<vmem>>, vector<1x32xf32>
    %c2 = arith.constant 2 : index
    %c0_3 = arith.constant 0 : index
    %5 = vector.load %arg13[%c2, %c0_3] : memref<8x32xf32, #tpu.memory_space<vmem>>, vector<1x32xf32>
    %c0_4 = arith.constant 0 : index
    %c0_5 = arith.constant 0 : index
    %6 = vector.load %arg2[%c0_4, %c0_5] : memref<128x32xf32, #tpu.memory_space<vmem>>, vector<128x32xf32>
    %c0_6 = arith.constant 0 : index
    %c0_7 = arith.constant 0 : index
    %7 = vector.load %arg7[%c0_6, %c0_7] : memref<32x32xf32, #tpu.memory_space<vmem>>, vector<32x32xf32>
    %cst = arith.constant dense<0.000000e+00> : vector<128x32xf32>
    %8 = tpu.matmul %6, %7, %cst {dimension_numbers = #tpu.dot_dimension_numbers<[1], [0], [0], [1], [0, 0, 1, 1], [], []>} : vector<128x32xf32>, vector<32x32xf32>, vector<128x32xf32> -> vector<128x32xf32>
    %c0_8 = arith.constant 0 : index
    %c0_9 = arith.constant 0 : index
    %9 = vector.load %arg3[%c0_8, %c0_9] : memref<128x32xf32, #tpu.memory_space<vmem>>, vector<128x32xf32>
    %c0_10 = arith.constant 0 : index
    %c0_11 = arith.constant 0 : index
    %10 = vector.load %arg8[%c0_10, %c0_11] : memref<32x32xf32, #tpu.memory_space<vmem>>, vector<32x32xf32>
    %cst_12 = arith.constant dense<0.000000e+00> : vector<128x32xf32>
    %11 = tpu.matmul %9, %10, %cst_12 {dimension_numbers = #tpu.dot_dimension_numbers<[1], [0], [0], [1], [0, 0, 1, 1], [], []>} : vector<128x32xf32>, vector<32x32xf32>, vector<128x32xf32> -> vector<128x32xf32>
    %12 = arith.addf %8, %11 : vector<128x32xf32>
    %c0_13 = arith.constant 0 : index
    %c0_14 = arith.constant 0 : index
    %13 = vector.load %arg4[%c0_13, %c0_14] : memref<128x32xf32, #tpu.memory_space<vmem>>, vector<128x32xf32>
    %c0_15 = arith.constant 0 : index
    %c0_16 = arith.constant 0 : index
    %14 = vector.load %arg9[%c0_15, %c0_16] : memref<32x32xf32, #tpu.memory_space<vmem>>, vector<32x32xf32>
    %cst_17 = arith.constant dense<0.000000e+00> : vector<128x32xf32>
    %15 = tpu.matmul %13, %14, %cst_17 {dimension_numbers = #tpu.dot_dimension_numbers<[1], [0], [0], [1], [0, 0, 1, 1], [], []>} : vector<128x32xf32>, vector<32x32xf32>, vector<128x32xf32> -> vector<128x32xf32>
    %16 = arith.addf %12, %15 : vector<128x32xf32>
    %17 = vector.broadcast %3 : vector<1x32xf32> to vector<128x32xf32>
    %18 = arith.addf %16, %17 : vector<128x32xf32>
    %cst_18 = arith.constant 0.000000e+00 : f32
    %19 = vector.broadcast %cst_18 : f32 to vector<128x32xf32>
    %20 = arith.cmpf ogt, %18, %19 : vector<128x32xf32>
    %cst_19 = arith.constant 2.000000e-01 : f32
    %21 = vector.broadcast %cst_19 : f32 to vector<128x32xf32>
    %22 = arith.mulf %21, %18 : vector<128x32xf32>
    %23 = arith.select %20, %18, %22 : vector<128x32xi1>, vector<128x32xf32>
    %24 = vector.broadcast %4 : vector<1x32xf32> to vector<128x32xf32>
    %25 = arith.mulf %23, %24 : vector<128x32xf32>
    %c0_20 = arith.constant 0 : index
    %c0_21 = arith.constant 0 : index
    %26 = vector.load %arg12[%c0_20, %c0_21] : memref<32x32xbf16, #tpu.memory_space<vmem>>, vector<32x32xbf16>
    %27 = arith.extf %26 : vector<32x32xbf16> to vector<32x32xf32>
    %cst_22 = arith.constant dense<0.000000e+00> : vector<128x32xf32>
    %28 = tpu.matmul %25, %27, %cst_22 {dimension_numbers = #tpu.dot_dimension_numbers<[1], [0], [0], [1], [0, 0, 1, 1], [], []>} : vector<128x32xf32>, vector<32x32xf32>, vector<128x32xf32> -> vector<128x32xf32>
    %c0_23 = arith.constant 0 : index
    %c0_24 = arith.constant 0 : index
    %29 = vector.load %arg5[%c0_23, %c0_24] : memref<128x1xf32, #tpu.memory_space<vmem>>, vector<128x1xf32>
    %30 = vector.broadcast %29 : vector<128x1xf32> to vector<128x32xf32>
    %31 = arith.addf %28, %30 : vector<128x32xf32>
    %c0_25 = arith.constant 0 : index
    %c0_26 = arith.constant 0 : index
    %32 = vector.load %arg16[%c0_25, %c0_26] : memref<1x32xf32, #tpu.memory_space<vmem>>, vector<1x32xf32>
    %cst_27 = arith.constant dense<0xFF800000> : vector<32xf32>
    %33 = vector.multi_reduction <maximumf>, %31, %cst_27 [0] : vector<128x32xf32> to vector<32xf32>
    %34 = vector.shape_cast %33 : vector<32xf32> to vector<1x32xf32>
    %35 = arith.maximumf %32, %34 : vector<1x32xf32>
    %36 = arith.subf %32, %35 : vector<1x32xf32>
    %37 = math.exp %36 : vector<1x32xf32>
    %38 = vector.broadcast %35 : vector<1x32xf32> to vector<128x32xf32>
    %39 = arith.subf %31, %38 : vector<128x32xf32>
    %40 = math.exp %39 : vector<128x32xf32>
    %c0_28 = arith.constant 0 : index
    %c0_29 = arith.constant 0 : index
    %41 = vector.load %arg4[%c0_28, %c0_29] : memref<128x32xf32, #tpu.memory_space<vmem>>, vector<128x32xf32>
    %c0_30 = arith.constant 0 : index
    %c0_31 = arith.constant 0 : index
    %42 = vector.load %arg10[%c0_30, %c0_31] : memref<32x32xf32, #tpu.memory_space<vmem>>, vector<32x32xf32>
    %cst_32 = arith.constant dense<0.000000e+00> : vector<128x32xf32>
    %43 = tpu.matmul %41, %42, %cst_32 {dimension_numbers = #tpu.dot_dimension_numbers<[1], [0], [0], [1], [0, 0, 1, 1], [], []>} : vector<128x32xf32>, vector<32x32xf32>, vector<128x32xf32> -> vector<128x32xf32>
    %44 = vector.broadcast %5 : vector<1x32xf32> to vector<128x32xf32>
    %45 = arith.addf %43, %44 : vector<128x32xf32>
    %46 = arith.mulf %40, %45 : vector<128x32xf32>
    %47 = tpu.concatenate %46, %40 in 1 : vector<128x32xf32>, vector<128x32xf32> -> vector<128x64xf32>
    %c0_33 = arith.constant 0 : index
    %c0_34 = arith.constant 0 : index
    %48 = vector.load %arg6[%c0_33, %c0_34] : memref<32x128xbf16, #tpu.memory_space<vmem>>, vector<32x128xbf16>
    %49 = arith.extf %48 : vector<32x128xbf16> to vector<32x128xf32>
    %cst_35 = arith.constant dense<0.000000e+00> : vector<32x64xf32>
    %50 = tpu.matmul %49, %47, %cst_35 {dimension_numbers = #tpu.dot_dimension_numbers<[1], [0], [0], [1], [0, 0, 1, 1], [], []>} : vector<32x128xf32>, vector<128x64xf32>, vector<32x64xf32> -> vector<32x64xf32>
    %51 = tpu.concatenate %37, %37 in 1 : vector<1x32xf32>, vector<1x32xf32> -> vector<1x64xf32>
    %c0_36 = arith.constant 0 : index
    %c0_37 = arith.constant 0 : index
    %52 = vector.load %arg17[%c0_36, %c0_37] : memref<32x64xf32, #tpu.memory_space<vmem>>, vector<32x64xf32>
    %53 = vector.broadcast %51 : vector<1x64xf32> to vector<32x64xf32>
    %54 = arith.mulf %53, %52 : vector<32x64xf32>
    %55 = arith.addf %54, %50 : vector<32x64xf32>
    %c0_38 = arith.constant 0 : index
    %c0_39 = arith.constant 0 : index
    %56 = vector.load %arg17[%c0_38, %c0_39] : memref<32x64xf32, #tpu.memory_space<vmem>>, vector<32x64xf32>
    tpu.vector_store %arg17[%c0_38, %c0_39], %55 {strides = array<i32>} : memref<32x64xf32, #tpu.memory_space<vmem>>, vector<32x64xf32>,
    %c0_40 = arith.constant 0 : index
    %c0_41 = arith.constant 0 : index
    %57 = vector.load %arg16[%c0_40, %c0_41] : memref<1x32xf32, #tpu.memory_space<vmem>>, vector<1x32xf32>
    tpu.vector_store %arg16[%c0_40, %c0_41], %35 {strides = array<i32>} : memref<1x32xf32, #tpu.memory_space<vmem>>, vector<1x32xf32>,
    %c2_i32 = arith.constant 2 : i32
    %58 = arith.cmpi eq, %arg1, %c2_i32 : i32
    %59 = arith.extui %58 : i1 to i32
    %c0_i32_42 = arith.constant 0 : i32
    %60 = arith.cmpi ne, %59, %c0_i32_42 : i32
    scf.if %60 {
      %c0_43 = arith.constant 0 : index
      %c0_44 = arith.constant 0 : index
      %61 = vector.load %arg17[%c0_43, %c0_44] : memref<32x64xf32, #tpu.memory_space<vmem>>, vector<32x64xf32>
      %62 = vector.extract_strided_slice %61 {offsets = [0, 0], sizes = [32, 32], strides = [1, 1]} : vector<32x64xf32> to vector<32x32xf32>
      %63 = vector.extract_strided_slice %61 {offsets = [0, 32], sizes = [32, 32], strides = [1, 1]} : vector<32x64xf32> to vector<32x32xf32>
      %cst_45 = arith.constant 1.000000e-16 : f32
      %64 = vector.broadcast %cst_45 : f32 to vector<32x32xf32>
      %65 = arith.addf %63, %64 : vector<32x32xf32>
      %66 = arith.divf %62, %65 : vector<32x32xf32>
      %cst_46 = arith.constant 0.000000e+00 : f32
      %67 = vector.broadcast %cst_46 : f32 to vector<32x32xf32>
      %68 = arith.maximumf %66, %67 : vector<32x32xf32>
      %c0_47 = arith.constant 0 : index
      %c0_48 = arith.constant 0 : index
      %69 = vector.load %arg14[%c0_47, %c0_48] : memref<32x32xf32, #tpu.memory_space<vmem>>, vector<32x32xf32>
      %c0_49 = arith.constant 0 : index
      %c0_50 = arith.constant 0 : index
      %70 = vector.load %arg11[%c0_49, %c0_50] : memref<32x32xf32, #tpu.memory_space<vmem>>, vector<32x32xf32>
      %cst_51 = arith.constant dense<0.000000e+00> : vector<32x32xf32>
      %71 = tpu.matmul %69, %70, %cst_51 {dimension_numbers = #tpu.dot_dimension_numbers<[1], [0], [0], [1], [0, 0, 1, 1], [], []>} : vector<32x32xf32>, vector<32x32xf32>, vector<32x32xf32> -> vector<32x32xf32>
      %c3 = arith.constant 3 : index
      %c0_52 = arith.constant 0 : index
      %72 = vector.load %arg13[%c3, %c0_52] : memref<8x32xf32, #tpu.memory_space<vmem>>, vector<1x32xf32>
      %73 = vector.broadcast %72 : vector<1x32xf32> to vector<32x32xf32>
      %74 = arith.addf %71, %73 : vector<32x32xf32>
      %cst_53 = arith.constant 0.000000e+00 : f32
      %75 = vector.broadcast %cst_53 : f32 to vector<32x32xf32>
      %76 = arith.maximumf %74, %75 : vector<32x32xf32>
      %77 = arith.addf %68, %76 : vector<32x32xf32>
      %c0_54 = arith.constant 0 : index
      %c0_55 = arith.constant 0 : index
      %78 = vector.load %arg15[%c0_54, %c0_55] : memref<32x32xf32, #tpu.memory_space<vmem>>, vector<32x32xf32>
      tpu.vector_store %arg15[%c0_54, %c0_55], %77 {strides = array<i32>} : memref<32x32xf32, #tpu.memory_space<vmem>>, vector<32x32xf32>,
    } else {
    }
    return
  }
  func.func @transform_0(%arg0: i32, %arg1: i32) -> (i32, i32) {
    %c0_i32 = arith.constant 0 : i32
    %c0_i32_0 = arith.constant 0 : i32
    return %arg1, %c0_i32 : i32, i32
  }
  func.func @transform_1(%arg0: i32, %arg1: i32) -> (i32, i32) {
    %c0_i32 = arith.constant 0 : i32
    %c0_i32_0 = arith.constant 0 : i32
    return %arg1, %c0_i32 : i32, i32
  }
  func.func @transform_2(%arg0: i32, %arg1: i32) -> (i32, i32) {
    %c0_i32 = arith.constant 0 : i32
    %c0_i32_0 = arith.constant 0 : i32
    return %arg1, %c0_i32 : i32, i32
  }
  func.func @transform_3(%arg0: i32, %arg1: i32) -> (i32, i32) {
    %c0_i32 = arith.constant 0 : i32
    %c0_i32_0 = arith.constant 0 : i32
    return %arg1, %c0_i32 : i32, i32
  }
  func.func @transform_4(%arg0: i32, %arg1: i32) -> (i32, i32) {
    %c0_i32 = arith.constant 0 : i32
    return %arg0, %arg1 : i32, i32
  }
  func.func @transform_5(%arg0: i32, %arg1: i32) -> (i32, i32) {
    %c0_i32 = arith.constant 0 : i32
    %c0_i32_0 = arith.constant 0 : i32
    %c0_i32_1 = arith.constant 0 : i32
    return %c0_i32, %c0_i32_0 : i32, i32
  }
  func.func @transform_6(%arg0: i32, %arg1: i32) -> (i32, i32) {
    %c0_i32 = arith.constant 0 : i32
    %c0_i32_0 = arith.constant 0 : i32
    %c0_i32_1 = arith.constant 0 : i32
    return %c0_i32, %c0_i32_0 : i32, i32
  }
  func.func @transform_7(%arg0: i32, %arg1: i32) -> (i32, i32) {
    %c0_i32 = arith.constant 0 : i32
    %c0_i32_0 = arith.constant 0 : i32
    %c0_i32_1 = arith.constant 0 : i32
    return %c0_i32, %c0_i32_0 : i32, i32
  }
  func.func @transform_8(%arg0: i32, %arg1: i32) -> (i32, i32) {
    %c0_i32 = arith.constant 0 : i32
    %c0_i32_0 = arith.constant 0 : i32
    %c0_i32_1 = arith.constant 0 : i32
    return %c0_i32, %c0_i32_0 : i32, i32
  }
  func.func @transform_9(%arg0: i32, %arg1: i32) -> (i32, i32) {
    %c0_i32 = arith.constant 0 : i32
    %c0_i32_0 = arith.constant 0 : i32
    %c0_i32_1 = arith.constant 0 : i32
    return %c0_i32, %c0_i32_0 : i32, i32
  }
  func.func @transform_10(%arg0: i32, %arg1: i32) -> (i32, i32) {
    %c0_i32 = arith.constant 0 : i32
    %c0_i32_0 = arith.constant 0 : i32
    %c0_i32_1 = arith.constant 0 : i32
    return %c0_i32, %c0_i32_0 : i32, i32
  }
  func.func @transform_11(%arg0: i32, %arg1: i32) -> (i32, i32) {
    %c0_i32 = arith.constant 0 : i32
    %c0_i32_0 = arith.constant 0 : i32
    %c0_i32_1 = arith.constant 0 : i32
    return %c0_i32, %c0_i32_0 : i32, i32
  }
  func.func @transform_12(%arg0: i32, %arg1: i32) -> (i32, i32) {
    %c0_i32 = arith.constant 0 : i32
    %c0_i32_0 = arith.constant 0 : i32
    return %arg0, %c0_i32 : i32, i32
  }
  func.func @transform_13(%arg0: i32, %arg1: i32) -> (i32, i32) {
    %c0_i32 = arith.constant 0 : i32
    %c0_i32_0 = arith.constant 0 : i32
    return %arg0, %c0_i32 : i32, i32
  }
}

</mosaic_0001>

<bundles_post_ra>
// kernel: _lambda_.5
= control target key start
LH: loop header
LB: loop body
LE: loop exit
PB: predicated region body
PF: predicated region fallthrough
CT: control target
= control target key end

     0   :  { %8 = vsyncpa [#allocation3], 0  ;;  %s177_s12 = smov [#allocation2]   ;;  %s222_s0 = inlined_call_operand.vmem [shape: f32[16,32], index: 0, kind: input, shape index: {}]   ;;  %s223_s1 = inlined_call_operand.hbm [shape: f32[32,32], index: 1, kind: input, shape index: {}]   ;;  %s224_s2 = inlined_call_operand.vmem [shape: f32[1,32], index: 2, kind: input, shape index: {}]   ;;  %s225_s3 = inlined_call_operand.vmem [shape: f32[16,32], index: 3, kind: output, shape index: {}]  }
   0x1   :  { %s16_s13 = sshll.u32 %s177_s12, 4  ;;  %s17_s13 = int_to_ptr.vmem [resolvable:$true] %s16_s13 }
   0x2   :  { %s163_s14 = scalar_lea.vmem %s17_s13, 512  ;;  %p168_p1 = scmp.lt.s32.totalorder %s17_s13, %s17_s13 }
   0x3   :  { %p164_p0 = scmp.ne.s32.totalorder %s17_s13, %s163_s14  ;;  %p169_p2 = scmp.lt.s32.totalorder %s163_s14, %s163_s14 }
   0x5   :  { %p170_p3 = por %p169_p2, %p168_p1 }
   0x7   :  { %p171_p4 = pnand %p170_p3, %p164_p0 }
   0x9   :  { %174 = shalt.err (!%p171_p4)
}
   0xa   :  { %s178_s15 = smov 128   ;;  %s179_s16 = smov 8  }
   0xb   :  { %22 = dma.hbm_to_vmem [thread:$0]  %s223_s1, 512, %s17_s13, [#allocation3], %s178_s15, %s178_s15, %s179_s16  }
   0xc   :  { %175 = dma.done.wait [#allocation3], 512  }
   0xd   :  { %176 = vsyncadd [#allocation3], 4294966784  ;;  %vm41_vm0 = vcmask 261120   ;;  %v33_v0 = vld [vmem:[#allocation2 + $0x18] sm:$0xff]  ;;  %v32_v1 = vld [vmem:[#allocation2 + $0x10] sm:$0xff] }
   0xe   :  { %141 = vmatprep.subr.mxu0 %v33_v0  ;;  %v28_v2 = vld [vmem:[%s222_s0] sm:$0xff]  ;;  %v31_v3 = vld [vmem:[#allocation2 + $0x8] sm:$0xff] }
   0xf   :  { %142 = vmatpush3.msra.mxu0 %v33_v0  ;;  %149 = vmatprep.mubr.msk.f32.mxu0 %vm41_vm0, %v28_v2  ;;  %v30_v4 = vld [vmem:[#allocation2] sm:$0xff]  ;;  %v29_v5 = vld [vmem:[%s222_s0 + $0x8] sm:$0xff] }
  0x10   :  { %143 = vmatprep.subr.mxu0 %v32_v1  ;;  %v132_v6 = vld [vmem:[%s224_s2] ss:$0 sm:$0xff] }
  0x11   :  { %144 = vmatpush3.msra.mxu0 %v32_v1 }
  0x12   :  { %145 = vmatprep.subr.mxu0 %v31_v3 }
  0x13   :  { %146 = vmatpush3.msra.mxu0 %v31_v3 }
  0x14   :  { %147 = vmatprep.subr.mxu0 %v30_v4 }
  0x15   :  { %148 = vmatpush3.msra.mxu0 %v30_v4 }
  0x16   :  { %150 = vmatmul.mubr.msk.f32.vlgmr.msra.gmra.mxu0 %vm41_vm0, %v29_v5 }
  0xd6   :  { %v151_v7 = vpop.f32.mrf.mxu0 }
  0xd7   :  { %v120_v8 = vadd.f32 %v151_v7, %v132_v6 }
  0xd8   :  { %v114_v9 = vpop.f32.mrf.mxu0 }
  0xd9   :  { %v124_v10 = vmax.f32 %v120_v8, 0.0  ;;  %v115_v11 = vadd.f32 %v132_v6, %v114_v9 }
  0xdb   :  { %126 = vst.msk [vmem:[%s225_s3 + $0x8] sm:$0xff] %vm41_vm0, %v124_v10  ;;  %v123_v12 = vmax.f32 %v115_v11, 0.0 }
  0xdd   :  { %125 = vst.msk [vmem:[%s225_s3] sm:$0xff] %vm41_vm0, %v123_v12 }
  0xde   :  { %131 = vsyncpa [#allocation3], 1 }

// kernel: _lambda_.4
= control target key start
LH: loop header
LB: loop body
LE: loop exit
PB: predicated region body
PF: predicated region fallthrough
CT: control target
= control target key end

     0   :  { %vm29_vm0 = vcmask 261120   ;;  %s241_s1 = inlined_call_operand.vmem [shape: f32[32,32], index: 1, kind: input, shape index: {}]   ;;  %s242_s0 = inlined_call_operand.vmem [shape: f32[32,32], index: 0, kind: input, shape index: {}]   ;;  %s243_s2 = inlined_call_operand.vmem [shape: f32[1,32], index: 2, kind: input, shape index: {}]   ;;  %s244_s3 = inlined_call_operand.vmem [shape: f32[32,32], index: 3, kind: output, shape index: {}]  }
   0x1   :  { %v21_v0 = vld [vmem:[%s241_s1 + $0x18] sm:$0xff]  ;;  %v20_v1 = vld [vmem:[%s241_s1 + $0x10] sm:$0xff]  ;;  %v19_v2 = vld [vmem:[%s241_s1 + $0x8] sm:$0xff] }
   0x2   :  { %152 = vmatprep.subr.mxu0 %v21_v0  ;;  %166 = vmatprep.subr.mxu1 %v21_v0  ;;  %v18_v3 = vld [vmem:[%s241_s1] sm:$0xff]  ;;  %v16_v5 = vld [vmem:[%s242_s0 + $0x10] sm:$0xff]  ;;  %v15_v6 = vld [vmem:[%s242_s0 + $0x8] sm:$0xff] }
   0x3   :  { %153 = vmatpush3.msra.mxu0 %v21_v0  ;;  %170 = vmatpush3.msra.mxu1 %v21_v0  ;;  %v14_v4 = vld [vmem:[%s242_s0] sm:$0xff]  ;;  %v17_v7 = vld [vmem:[%s242_s0 + $0x18] sm:$0xff] }
   0x4   :  { %154 = vmatprep.subr.mxu0 %v20_v1  ;;  %167 = vmatprep.subr.mxu1 %v20_v1  ;;  %v139_v8 = vld [vmem:[%s243_s2] ss:$0 sm:$0xff] }
   0x5   :  { %155 = vmatpush3.msra.mxu0 %v20_v1  ;;  %171 = vmatpush3.msra.mxu1 %v20_v1 }
   0x6   :  { %156 = vmatprep.subr.mxu0 %v19_v2  ;;  %168 = vmatprep.subr.mxu1 %v19_v2 }
   0x7   :  { %157 = vmatpush3.msra.mxu0 %v19_v2  ;;  %172 = vmatpush3.msra.mxu1 %v19_v2 }
   0x8   :  { %158 = vmatprep.subr.mxu0 %v18_v3  ;;  %169 = vmatprep.subr.mxu1 %v18_v3 }
   0x9   :  { %159 = vmatpush3.msra.mxu0 %v18_v3  ;;  %173 = vmatpush3.msra.mxu1 %v18_v3 }
   0xa   :  { %160 = vmatprep.mubr.msk.f32.mxu0 %vm29_vm0, %v14_v4  ;;  %163 = vmatprep.mubr.msk.f32.mxu1 %vm29_vm0, %v16_v5 }
   0xb   :  { %161 = vmatmul.mubr.msk.f32.vlgmr.msra.gmra.mxu0 %vm29_vm0, %v15_v6  ;;  %164 = vmatmul.mubr.msk.f32.vlgmr.msra.gmra.mxu1 %vm29_vm0, %v17_v7 }
  0xcb   :  { %v162_v9 = vpop.f32.mrf.mxu0  ;;  %v165_v10 = vpop.f32.mrf.mxu1 }
  0xcc   :  { %v114_v11 = vadd.f32 %v162_v9, %v139_v8  ;;  %v124_v12 = vadd.f32 %v165_v10, %v139_v8 }
  0xcd   :  { %v108_v13 = vpop.f32.mrf.mxu0  ;;  %v118_v14 = vpop.f32.mrf.mxu1 }
  0xce   :  { %v128_v15 = vmax.f32 %v114_v11, 0.0  ;;  %v130_v16 = vmax.f32 %v124_v12, 0.0  ;;  %v109_v17 = vadd.f32 %v139_v8, %v108_v13  ;;  %v119_v18 = vadd.f32 %v139_v8, %v118_v14 }
  0xd0   :  { %132 = vst.msk [vmem:[%s244_s3 + $0x8] sm:$0xff] %vm29_vm0, %v128_v15  ;;  %134 = vst.msk [vmem:[%s244_s3 + $0x18] sm:$0xff] %vm29_vm0, %v130_v16  ;;  %v127_v19 = vmax.f32 %v109_v17, 0.0  ;;  %v129_v20 = vmax.f32 %v119_v18, 0.0 }
  0xd2   :  { %131 = vst.msk [vmem:[%s244_s3] sm:$0xff] %vm29_vm0, %v127_v19  ;;  %133 = vst.msk [vmem:[%s244_s3 + $0x10] sm:$0xff] %vm29_vm0, %v129_v20 }

// kernel: _lambda_.6
= control target key start
LH: loop header
LB: loop body
LE: loop exit
PB: predicated region body
PF: predicated region fallthrough
CT: control target
= control target key end

     0   :  { %s3816_s0 = inlined_call_operand.vmem [shape: f32[384,32], index: 0, kind: input, shape index: {}]   ;;  %s3817_s1 = inlined_call_operand.vmem [shape: f32[384,32], index: 1, kind: input, shape index: {}]   ;;  %s3818_s2 = inlined_call_operand.vmem [shape: f32[384,32], index: 2, kind: input, shape index: {}]   ;;  %s3819_s3 = inlined_call_operand.vmem [shape: f32[384,1], index: 3, kind: input, shape index: {}]   ;;  %s3820_s4 = inlined_call_operand.vmem [shape: bf16[32,384], index: 4, kind: input, shape index: {}]   ;;  %s3821_s5 = inlined_call_operand.vmem [shape: f32[32,32], index: 5, kind: input, shape index: {}]   ;;  %s3822_s6 = inlined_call_operand.vmem [shape: f32[32,32], index: 6, kind: input, shape index: {}]   ;;  %s3823_s7 = inlined_call_operand.vmem [shape: f32[32,32], index: 7, kind: input, shape index: {}]   ;;  %s3824_s8 = inlined_call_operand.vmem [shape: f32[32,32], index: 8, kind: input, shape index: {}]   ;;  %s3825_s9 = inlined_call_operand.vmem [shape: f32[32,32], index: 9, kind: input, shape index: {}]   ;;  %s3826_s10 = inlined_call_operand.vmem [shape: bf16[32,32], index: 10, kind: input, shape index: {}]   ;;  %s3827_s11 = inlined_call_operand.vmem [shape: f32[8,32], index: 11, kind: input, shape index: {}]   ;;  %s3828_s12 = inlined_call_operand.vmem [shape: f32[32,32], index: 12, kind: input, shape index: {}, may-alias: {12,13}]   ;;  %s3829_s13 = inlined_call_operand.vmem [shape: f32[32,32], index: 13, kind: output, shape index: {}, may-alias: {12,13}]  }
   0x1   :  { %3832 = sst [smem:[#allocation8_spill]] %s3820_s4 }
   0x2   :  { %s3133_s25 = smov 0   ;;  %s3135_s26 = smov 0  }
   0x3   :  { %s3137_s27 = smov 0   ;;  %s3139_s28 = smov 0  }
   0x4   :  { %s3141_s29 = smov 0  }
   0x5 LB: > { %3833 = sst [smem:[#allocation5_spill]] %s3052_s28  ;;  %s32_s30 = sadd.s32 1, %s3052_s28  ;;  %s3056_s29 = sphi %s3141_s29, %s23_s29   ;;  %s3052_s28 = sphi %s3139_s28, %s3839_s28   ;;  %s3048_s27 = sphi %s3137_s27, %s3838_s27   ;;  %s3044_s26 = sphi %s3135_s26, %s3841_s26   ;;  %s3040_s25 = sphi %s3133_s25, %s3840_s25  }
   0x6   : > { %p33_p0 = scmp.ge.s32.totalorder %s32_s30, 3  ;;  %p155_p1 = scmp.ne.s32.totalorder %s3044_s26, %s3040_s25 }
   0x7   : > { %p156_p2 = scmp.eq.s32.totalorder %s3056_s29, 0  ;;  %s148_s15 = sadd.s32 1, %s3044_s26 }
   0x8   : > { %s3843_s30 = smov (%p33_p0, %s32_s30), 0  ;;  %p2448_p5 = scmp.ge.s32.totalorder %s3056_s29, 3 }
   0x9   : > { %3834 = sst [smem:[#allocation6_spill]] %s3843_s30  ;;  %p157_p3 = por %p156_p2, %p155_p1 }
   0xa   : > { %s144_s14 = ssub.s32 %s3052_s28, %s3843_s30 }
   0xb   : > { %p146_p4 = scmp.eq.s32.totalorder %s144_s14, 0  ;;  %410 = sbr.rel (%p2448_p5) target bundleno = 28 (0x1c), region = 48 }
   0xd   : > { %s3168_s16 = scalar_select %p146_p4, %s3044_s26, %s148_s15  }
   0xf   : > { %3835 = sst [smem:[#allocation7_spill]] %s3168_s16 }
  0x10   : > { %449 = sbr.rel (!%p157_p3) target bundleno = 28 (0x1c), region = 68  ;;  %s451_s17 = sand.u32 (%p157_p3), 1, %s3044_s26  }
  0x11   : > { %s2450_s18 = sshll.u32 (%p157_p3), %s3052_s28, 2  ;;  %s2449_s19 = sshll.u32 (%p157_p3), %s451_s17, 4 }
  0x12   : > { %s3836_s4 = sld [smem:[#allocation8_spill]] (%p157_p3)  ;;  %s453_s23 = scalar_lea.vmem (%p157_p3), [#allocation4], %s2449_s19 }
  0x18   : > { %s458_s22 = scalar_lea.vmem %s3836_s4, %s2450_s18 }
  0x19   : > { %v475_v0 = vld [vmem:[%s458_s22] sm:$0xf]  ;;  %v477_v1 = vld [vmem:[%s458_s22 + $0xc] sm:$0xf]  ;;  %v479_v2 = vld [vmem:[%s458_s22 + $0x18] sm:$0xf] }
  0x1a   : > { %476 = vst [vmem:[%s453_s23] sm:$0xf] %v475_v0  ;;  %478 = vst [vmem:[%s453_s23 + $0x4] sm:$0xf] %v477_v1  ;;  %v481_v3 = vld [vmem:[%s458_s22 + $0x24] sm:$0xf] }
  0x1b   : > { %480 = vst [vmem:[%s453_s23 + $0x8] sm:$0xf] %v479_v2  ;;  %482 = vst [vmem:[%s453_s23 + $0xc] sm:$0xf] %v481_v3 }
  0x1c PF: > { %p2451_p6 = scmp.ge.s32.totalorder %s3056_s29, 1  ;;  %p513_p7 = scmp.lt.s32.totalorder %s3056_s29, 4 }
  0x1e   : > { %p514_p8 = pnand %p2451_p6, %p513_p7 }
  0x1f   : > { %s520_s24 = sand.u32 (!%p514_p8), 1, %s3040_s25   ;;  %s2453_s14 = sshll.u32 (!%p514_p8), %s3048_s27, 4 }
  0x20   : > { %517 = sbr.rel (%p514_p8) target bundleno = 1114 (0x45a), region = 109  ;;  %s3180_s15 = sshll.u32 (!%p514_p8), %s520_s24, 4 }
  0x21   : > { %p589_p9 = scmp.lt.s32.totalorder (!%p514_p8), %s2453_s14, 47  ;;  %p2461_p10 = scmp.ne.s32.totalorder (!%p514_p8), %s3048_s27, 0 }
  0x25   : > { %s3845_s14 = smov (!%p589_p9, %s2453_s14), 47  ;;  %628 = sbr.rel (%p2461_p10) target bundleno = 46 (0x2e), region = 117 }
  0x26   : > { %s2454_s17 = sshll.u32 %s3845_s14, 3  ;;  %s522_s14 = scalar_lea.vmem [#allocation4], %s3180_s15 }
  0x27   : > { %s3185_s20 = scalar_lea.vmem %s3816_s0, %s2454_s17  ;;  %s3190_s23 = scalar_lea.vmem %s3817_s1, %s2454_s17 }
  0x28   : > { %s3195_s25 = scalar_lea.vmem %s3818_s2, %s2454_s17  ;;  %s3200_s16 = scalar_lea.vmem %s3819_s3, %s2454_s17 }
  0x2a   : > { %vm629_vm0 = vcmask 253952   ;;  %vm631_vm1 = vcmask 523264   ;;  %v3058_v4 = vmov -1e+30   ;;  %v3059_v5 = vmov 0.0  }
  0x2b   : > { %630 = vst.msk [vmem:[#allocation2] sm:$0x1] %vm629_vm0, %v3058_v4 }
  0x2c   : > { %632 = vst.msk [vmem:[#allocation3] sm:$0xff] %vm631_vm1, %v3059_v5  ;;  %633 = vst.msk [vmem:[#allocation3 + $0x8] sm:$0xff] %vm631_vm1, %v3059_v5 }
  0x2d   : > { %634 = vst.msk [vmem:[#allocation3 + $0x10] sm:$0xff] %vm631_vm1, %v3059_v5  ;;  %635 = vst.msk [vmem:[#allocation3 + $0x18] sm:$0xff] %vm631_vm1, %v3059_v5 }
  0x2e PF: > { %v678_v6 = vld [vmem:[%s3822_s6 + $0x18] sm:$0xff]  ;;  %v677_v7 = vld [vmem:[%s3822_s6 + $0x10] sm:$0xff]  ;;  %v676_v8 = vld [vmem:[%s3822_s6 + $0x8] sm:$0xff]  ;;  %vm679_vm2 = vcmask 261120   ;;  %p2545_p11 = scmp.ne.s32.totalorder %s3048_s27, 2 }
  0x2f   : > { %2701 = vmatprep.subr.mxu0 %v678_v6  ;;  %2913 = vmatprep.subr.mxu1 %v678_v6  ;;  %v675_v9 = vld [vmem:[%s3822_s6] sm:$0xff]  ;;  %v669_v11 = vld [vmem:[%s3190_s23 + $0x50] sm:$0xff]  ;;  %v660_v12 = vld [vmem:[%s3190_s23 + $0x8] sm:$0xff]  ;;  %s3062_s15 = smov (!%p2545_p11), 96  }
  0x30   : > { %2702 = vmatpush3.msra.mxu0 %v678_v6  ;;  %2917 = vmatpush3.msra.mxu1 %v678_v6  ;;  %v659_v10 = vld [vmem:[%s3190_s23] sm:$0xff]  ;;  %v670_v13 = vld [vmem:[%s3190_s23 + $0x58] sm:$0xff]  ;;  %v661_v15 = vld [vmem:[%s3190_s23 + $0x10] sm:$0xff] }
  0x31   : > { %2703 = vmatprep.subr.mxu0 %v677_v7  ;;  %2914 = vmatprep.subr.mxu1 %v677_v7  ;;  %v1085_v14 = vld [vmem:[%s3823_s7 + $0x18] sm:$0xff]  ;;  %v671_v16 = vld [vmem:[%s3190_s23 + $0x60] sm:$0xff]  ;;  %v1084_v18 = vld [vmem:[%s3823_s7 + $0x10] sm:$0xff] }
  0x32   : > { %2704 = vmatpush3.msra.mxu0 %v677_v7  ;;  %2918 = vmatpush3.msra.mxu1 %v677_v7  ;;  %v658_v17 = vld [vmem:[%s3821_s5 + $0x18] sm:$0xff]  ;;  %v672_v20 = vld [vmem:[%s3190_s23 + $0x68] sm:$0xff]  ;;  %v657_v21 = vld [vmem:[%s3821_s5 + $0x10] sm:$0xff] }
  0x33   : > { %2705 = vmatprep.subr.mxu0 %v676_v8  ;;  %2915 = vmatprep.subr.mxu1 %v676_v8  ;;  %v662_v19 = vld [vmem:[%s3190_s23 + $0x18] sm:$0xff]  ;;  %v663_v22 = vld [vmem:[%s3190_s23 + $0x20] sm:$0xff]  ;;  %v673_v23 = vld [vmem:[%s3190_s23 + $0x70] sm:$0xff] }
  0x34   : > { %2706 = vmatpush3.msra.mxu0 %v676_v8  ;;  %2919 = vmatpush3.msra.mxu1 %v676_v8  ;;  %v664_v24 = vld [vmem:[%s3190_s23 + $0x28] sm:$0xff]  ;;  %v674_v25 = vld [vmem:[%s3190_s23 + $0x78] sm:$0xff]  ;;  %v665_v28 = vld [vmem:[%s3190_s23 + $0x30] sm:$0xff] }
  0x35   : > { %2707 = vmatprep.subr.mxu0 %v675_v9  ;;  %2916 = vmatprep.subr.mxu1 %v675_v9  ;;  %v656_v26 = vld [vmem:[%s3821_s5 + $0x8] sm:$0xff]  ;;  %v655_v29 = vld [vmem:[%s3821_s5] sm:$0xff]  ;;  %v666_v31 = vld [vmem:[%s3190_s23 + $0x38] sm:$0xff] }
  0x36   : > { %2708 = vmatpush3.msra.mxu0 %v675_v9  ;;  %2920 = vmatpush3.msra.mxu1 %v675_v9  ;;  %v1083_v27 = vld [vmem:[%s3823_s7 + $0x8] sm:$0xff]  ;;  %v639_v30 = vld [vmem:[%s3185_s20] sm:$0xff]  ;;  %v641_v34 = vld [vmem:[%s3185_s20 + $0x10] sm:$0xff] }
  0x37   : > { %2709 = vmatprep.mubr.msk.f32.mxu0 %vm679_vm2, %v659_v10  ;;  %2724 = vmatprep.mubr.msk.f32.mxu1 %vm679_vm2, %v669_v11  ;;  %v640_v32 = vld [vmem:[%s3185_s20 + $0x8] sm:$0xff]  ;;  %v667_v33 = vld [vmem:[%s3190_s23 + $0x40] sm:$0xff]  ;;  %v642_v37 = vld [vmem:[%s3185_s20 + $0x18] sm:$0xff]  ;;  %v3060_v10 = vmov 0  }
  0x38   : > { %2710 = vmatmul.mubr.msk.f32.vlgmr.msra.gmra.mxu0 %vm679_vm2, %v660_v12  ;;  %2725 = vmatmul.mubr.msk.f32.vlgmr.msra.gmra.mxu1 %vm679_vm2, %v670_v13  ;;  %v1082_v35 = vld [vmem:[%s3823_s7] sm:$0xff]  ;;  %v668_v36 = vld [vmem:[%s3190_s23 + $0x48] sm:$0xff]  ;;  %v645_v42 = vld [vmem:[%s3185_s20 + $0x30] sm:$0xff] }
  0x39   : > { %2765 = vmatprep.subr.mxu0 %v1085_v14  ;;  %2712 = vmatprep.mubr.msk.f32.mxu0 %vm679_vm2, %v661_v15  ;;  %v643_v38 = vld [vmem:[%s3185_s20 + $0x20] sm:$0xff]  ;;  %v644_v40 = vld [vmem:[%s3185_s20 + $0x28] sm:$0xff]  ;;  %v3290_v43 = vld [vmem:[%s3195_s25 + $0x10] sm:$0xff] }
  0x3a   : > { %2766 = vmatpush3.msra.mxu0 %v1085_v14  ;;  %2727 = vmatprep.mubr.msk.f32.mxu1 %vm679_vm2, %v671_v16  ;;  %v1066_v39 = vld [vmem:[%s3195_s25] sm:$0xff]  ;;  %v3286_v41 = vld [vmem:[%s3195_s25 + $0x8] sm:$0xff]  ;;  %v646_v44 = vld [vmem:[%s3185_s20 + $0x38] sm:$0xff] }
  0x3b   : > { %2733 = vmatprep.subr.mxu1 %v658_v17  ;;  %2767 = vmatprep.subr.mxu0 %v1084_v18  ;;  %v3300_v45 = vld [vmem:[%s3195_s25 + $0x18] sm:$0xff]  ;;  %v647_v46 = vld [vmem:[%s3185_s20 + $0x40] sm:$0xff]  ;;  %v648_v48 = vld [vmem:[%s3185_s20 + $0x48] sm:$0xff] }
  0x3c   : > { %2713 = vmatmul.mubr.msk.f32.gmra.mxu0 %vm679_vm2, %v662_v19  ;;  %2728 = vmatmul.mubr.msk.f32.gmra.mxu1 %vm679_vm2, %v672_v20  ;;  %v3304_v47 = vld [vmem:[%s3195_s25 + $0x20] sm:$0xff]  ;;  %v3314_v49 = vld [vmem:[%s3195_s25 + $0x28] sm:$0xff]  ;;  %v649_v50 = vld [vmem:[%s3185_s20 + $0x50] sm:$0xff] }
  0x3d   : > { %2734 = vmatpush3.msra.mxu1 %v658_v17  ;;  %2768 = vmatpush3.msra.mxu0 %v1084_v18  ;;  %v3318_v51 = vld [vmem:[%s3195_s25 + $0x30] sm:$0xff]  ;;  %v650_v52 = vld [vmem:[%s3185_s20 + $0x58] sm:$0xff]  ;;  %v651_v54 = vld [vmem:[%s3185_s20 + $0x60] sm:$0xff] }
  0x3e   : > { %2735 = vmatprep.subr.mxu1 %v657_v21  ;;  %2715 = vmatprep.mubr.msk.f32.mxu0 %vm679_vm2, %v663_v22  ;;  %v3328_v53 = vld [vmem:[%s3195_s25 + $0x38] sm:$0xff]  ;;  %v3332_v55 = vld [vmem:[%s3195_s25 + $0x40] sm:$0xff]  ;;  %v652_v56 = vld [vmem:[%s3185_s20 + $0x68] sm:$0xff] }
  0x3f   : > { %2730 = vmatprep.mubr.msk.f32.mxu1 %vm679_vm2, %v673_v23  ;;  %2736 = vmatpush3.msra.mxu1 %v657_v21  ;;  %v3342_v57 = vld [vmem:[%s3195_s25 + $0x48] sm:$0xff]  ;;  %v653_v58 = vld [vmem:[%s3185_s20 + $0x70] sm:$0xff]  ;;  %v654_v60 = vld [vmem:[%s3185_s20 + $0x78] sm:$0xff] }
  0x40   : > { %2716 = vmatmul.mubr.msk.f32.gmra.mxu0 %vm679_vm2, %v664_v24  ;;  %2731 = vmatmul.mubr.msk.f32.gmra.mxu1 %vm679_vm2, %v674_v25  ;;  %v3346_v59 = vld [vmem:[%s3195_s25 + $0x50] sm:$0xff]  ;;  %v3356_v61 = vld [vmem:[%s3195_s25 + $0x58] sm:$0xff]  ;;  %v3359_v62 = vld [vmem:[%s3195_s25 + $0x60] sm:$0xff] }
  0x41   : > { %2737 = vmatprep.subr.mxu1 %v656_v26  ;;  %2769 = vmatprep.subr.mxu0 %v1083_v27  ;;  %v3367_v63 = vld [vmem:[%s3195_s25 + $0x68] sm:$0xff]  ;;  %v3370_v0 = vld [vmem:[%s3195_s25 + $0x70] sm:$0xff]  ;;  %v3377_v1 = vld [vmem:[%s3195_s25 + $0x78] sm:$0xff]  ;;  %s3061_s25 = smov 32  }
  0x42   : > { %2738 = vmatpush3.msra.mxu1 %v656_v26  ;;  %2718 = vmatprep.mubr.msk.f32.mxu0 %vm679_vm2, %v665_v28  ;;  %v2571_v2 = vld [vmem:[%s3826_s10 + $0x8] sm:$0xff]   ;;  %v2556_v5 = vld [vmem:[%s3826_s10] sm:$0xff]   ;;  %v1779_v8 = vld [vmem:[%s3824_s8 + $0x18] sm:$0xff] }
  0x43   : > { %2739 = vmatprep.subr.mxu1 %v655_v29  ;;  %2741 = vmatprep.mubr.msk.f32.mxu1 %vm679_vm2, %v639_v30  ;;  %v2562_v3 = vunpack.c.h.bf16 %v2571_v2  ;;  %v2561_v4 = vunpack.c.l.bf16 %v2571_v2  ;;  %v2558_v6 = vunpack.c.h.bf16 %v2556_v5  ;;  %v2557_v7 = vunpack.c.l.bf16 %v2556_v5  ;;  %v1778_v9 = vld [vmem:[%s3824_s8 + $0x10] sm:$0xff]  ;;  %v1391_v12 = vld [vmem:[%s3200_s16] sm:$0xff]  ;;  %v1777_v13 = vld [vmem:[%s3824_s8 + $0x8] sm:$0xff] }
  0x44   : > { %2740 = vmatpush3.msra.mxu1 %v655_v29  ;;  %2770 = vmatpush3.msra.mxu0 %v1083_v27  ;;  %v1393_v11 = vld [vmem:[%s3200_s16 + $0x10] sm:$0xff]  ;;  %v1776_v14 = vld [vmem:[%s3824_s8] sm:$0xff]  ;;  %v1394_v15 = vld [vmem:[%s3200_s16 + $0x18] sm:$0xff] }
  0x45   : > { %2719 = vmatmul.mubr.msk.f32.gmra.mxu0 %vm679_vm2, %v666_v31  ;;  %2742 = vmatmul.mubr.msk.f32.vlgmr.msra.gmra.mxu1 %vm679_vm2, %v640_v32  ;;  %v1392_v16 = vld [vmem:[%s3200_s16 + $0x8] sm:$0xff]  ;;  %v1395_v18 = vld [vmem:[%s3200_s16 + $0x20] sm:$0xff]  ;;  %v1398_v19 = vld [vmem:[%s3200_s16 + $0x38] sm:$0xff] }
  0x46   : > { %2721 = vmatprep.mubr.msk.f32.mxu0 %vm679_vm2, %v667_v33  ;;  %2744 = vmatprep.mubr.msk.f32.mxu1 %vm679_vm2, %v641_v34  ;;  %v1396_v17 = vld [vmem:[%s3200_s16 + $0x28] sm:$0xff]  ;;  %v1397_v20 = vld [vmem:[%s3200_s16 + $0x30] sm:$0xff]  ;;  %v1399_v22 = vld [vmem:[%s3200_s16 + $0x40] sm:$0xff] }
  0x47   : > { %2771 = vmatprep.subr.mxu0 %v1082_v35  ;;  %2797 = vmatprep.subr.mxu1 %v2562_v3  ;;  %v1400_v21 = vld [vmem:[%s3200_s16 + $0x48] sm:$0xff]  ;;  %v1402_v23 = vld [vmem:[%s3200_s16 + $0x58] sm:$0xff]  ;;  %v1401_v24 = vld [vmem:[%s3200_s16 + $0x50] sm:$0xff] }
  0x48   : > { %2772 = vmatpush3.msra.mxu0 %v1082_v35  ;;  %2798 = vmatpush3.msra.mxu1 %v2562_v3  ;;  %v1404_v25 = vld [vmem:[%s3200_s16 + $0x68] sm:$0xff]  ;;  %v1403_v26 = vld [vmem:[%s3200_s16 + $0x60] sm:$0xff]  ;;  %v1406_v27 = vld [vmem:[%s3200_s16 + $0x78] sm:$0xff] }
  0x49   : > { %2722 = vmatmul.mubr.msk.f32.gmra.mxu0 %vm679_vm2, %v668_v36  ;;  %2745 = vmatmul.mubr.msk.f32.gmra.mxu1 %vm679_vm2, %v642_v37  ;;  %v1405_v28 = vld [vmem:[%s3200_s16 + $0x70] sm:$0xff] }
  0x4a   : > { %2747 = vmatprep.mubr.msk.f32.mxu1 %vm679_vm2, %v643_v38  ;;  %2773 = vmatprep.mubr.msk.f32.mxu0 %vm679_vm2, %v1066_v39 }
  0x4b   : > { %2799 = vmatprep.subr.mxu1 %v2561_v4  ;;  %2829 = vmatprep.subr.mxu0 %v1779_v8 }
  0x4c   : > { %2800 = vmatpush3.msra.mxu1 %v2561_v4  ;;  %2975 = vset.pattern.permute.xlu1 %v3060_v10 }
  0x4d   : > { %2748 = vmatmul.mubr.msk.f32.gmra.mxu1 %vm679_vm2, %v644_v40  ;;  %2774 = vmatmul.mubr.msk.f32.vlgmr.msra.gmra.mxu0 %vm679_vm2, %v3286_v41 }
  0x4e   : > { %2750 = vmatprep.mubr.msk.f32.mxu1 %vm679_vm2, %v645_v42  ;;  %2776 = vmatprep.mubr.msk.f32.mxu0 %vm679_vm2, %v3290_v43 }
  0x4f   : > { %2801 = vmatprep.subr.mxu1 %v2558_v6  ;;  %2830 = vmatpush3.msra.mxu0 %v1779_v8 }
  0x50   : > { %2802 = vmatpush3.msra.mxu1 %v2558_v6  ;;  %2974 = vset.pattern.permute.xlu0 %v3060_v10  ;;  %v3470_v6 = vld [vmem:[%s3827_s11 + $0x1] ss:$0 sm:$0xff] }
  0x51   : > { %2751 = vmatmul.mubr.msk.f32.gmra.mxu1 %vm679_vm2, %v646_v44  ;;  %2777 = vmatmul.mubr.msk.f32.gmra.mxu0 %vm679_vm2, %v3300_v45 }
  0x52   : > { %2753 = vmatprep.mubr.msk.f32.mxu1 %vm679_vm2, %v647_v46  ;;  %2779 = vmatprep.mubr.msk.f32.mxu0 %vm679_vm2, %v3304_v47 }
  0x53   : > { %2803 = vmatprep.subr.mxu1 %v2557_v7  ;;  %2831 = vmatprep.subr.mxu0 %v1778_v9 }
  0x54   : > { %2804 = vmatpush3.msra.mxu1 %v2557_v7  ;;  %1419 = vperm.xlu1 %2975, %v1393_v11  }
  0x55   : > { %2754 = vmatmul.mubr.msk.f32.gmra.mxu1 %vm679_vm2, %v648_v48  ;;  %2780 = vmatmul.mubr.msk.f32.gmra.mxu0 %vm679_vm2, %v3314_v49 }
  0x56   : > { %2756 = vmatprep.mubr.msk.f32.mxu1 %vm679_vm2, %v649_v50  ;;  %2782 = vmatprep.mubr.msk.f32.mxu0 %vm679_vm2, %v3318_v51 }
  0x57   : > { %2832 = vmatpush3.msra.mxu0 %v1778_v9  ;;  %1409 = vperm.xlu0 %2974, %v1391_v12  }
  0x58   : > { %2833 = vmatprep.subr.mxu0 %v1777_v13  ;;  %1424 = vperm.xlu1 %2975, %v1394_v15  }
  0x59   : > { %2757 = vmatmul.mubr.msk.f32.gmra.mxu1 %vm679_vm2, %v650_v52  ;;  %2783 = vmatmul.mubr.msk.f32.gmra.mxu0 %vm679_vm2, %v3328_v53 }
  0x5a   : > { %2759 = vmatprep.mubr.msk.f32.mxu1 %vm679_vm2, %v651_v54  ;;  %2785 = vmatprep.mubr.msk.f32.mxu0 %vm679_vm2, %v3332_v55 }
  0x5b   : > { %2834 = vmatpush3.msra.mxu0 %v1777_v13  ;;  %1414 = vperm.xlu0 %2974, %v1392_v16  }
  0x5c   : > { %2835 = vmatprep.subr.mxu0 %v1776_v14  ;;  %1434 = vperm.xlu1 %2975, %v1396_v17  }
  0x5d   : > { %2760 = vmatmul.mubr.msk.f32.gmra.mxu1 %vm679_vm2, %v652_v56  ;;  %2786 = vmatmul.mubr.msk.f32.gmra.mxu0 %vm679_vm2, %v3342_v57 }
  0x5e   : > { %2762 = vmatprep.mubr.msk.f32.mxu1 %vm679_vm2, %v653_v58  ;;  %2788 = vmatprep.mubr.msk.f32.mxu0 %vm679_vm2, %v3346_v59 }
  0x5f   : > { %2836 = vmatpush3.msra.mxu0 %v1776_v14  ;;  %1429 = vperm.xlu0 %2974, %v1395_v18  }
  0x60   : > { %1444 = vperm.xlu1 %2975, %v1398_v19  }
  0x61   : > { %2763 = vmatmul.mubr.msk.f32.gmra.mxu1 %vm679_vm2, %v654_v60  ;;  %2789 = vmatmul.mubr.msk.f32.gmra.mxu0 %vm679_vm2, %v3356_v61 }
  0x62   : > { %2791 = vmatprep.mubr.msk.f32.mxu0 %vm679_vm2, %v3359_v62 }
  0x63   : > { %1439 = vperm.xlu0 %2974, %v1397_v20  }
  0x64   : > { %1454 = vperm.xlu1 %2975, %v1400_v21  }
  0x65   : > { %2792 = vmatmul.mubr.msk.f32.gmra.mxu0 %vm679_vm2, %v3367_v63 }
  0x66   : > { %2794 = vmatprep.mubr.msk.f32.mxu0 %vm679_vm2, %v3370_v0 }
  0x67   : > { %1449 = vperm.xlu0 %2974, %v1399_v22  }
  0x68   : > { %1464 = vperm.xlu1 %2975, %v1402_v23  }
  0x69   : > { %2795 = vmatmul.mubr.msk.f32.gmra.mxu0 %vm679_vm2, %v3377_v1 }
  0x6a   : > { %2837 = vmatprep.mubr.msk.f32.mxu0 %vm679_vm2, %v1066_v39 }
  0x6b   : > { %1459 = vperm.xlu0 %2974, %v1401_v24  }
  0x6c   : > { %1474 = vperm.xlu1 %2975, %v1404_v25  }
  0x6d   : > { %2838 = vmatmul.mubr.msk.f32.vlgmr.msra.gmra.mxu0 %vm679_vm2, %v3286_v41 }
  0x6e   : > { %2840 = vmatprep.mubr.msk.f32.mxu0 %vm679_vm2, %v3290_v43 }
  0x6f   : > { %1469 = vperm.xlu0 %2974, %v1403_v26  }
  0x70   : > { %1484 = vperm.xlu1 %2975, %v1406_v27  }
  0x71   : > { %2841 = vmatmul.mubr.msk.f32.gmra.mxu0 %vm679_vm2, %v3300_v45 }
  0x72   : > { %2843 = vmatprep.mubr.msk.f32.mxu0 %vm679_vm2, %v3304_v47 }
  0x73   : > { %1479 = vperm.xlu0 %2974, %v1405_v28  }
  0x75   : > { %2844 = vmatmul.mubr.msk.f32.gmra.mxu0 %vm679_vm2, %v3314_v49 }
  0x76   : > { %2846 = vmatprep.mubr.msk.f32.mxu0 %vm679_vm2, %v3318_v51  ;;  %v3463_v51 = vld [vmem:[%s3827_s11] ss:$0 sm:$0xff] }
  0x79   : > { %2847 = vmatmul.mubr.msk.f32.gmra.mxu0 %vm679_vm2, %v3328_v53 }
  0x7a   : > { %2849 = vmatprep.mubr.msk.f32.mxu0 %vm679_vm2, %v3332_v55 }
  0x7d   : > { %2850 = vmatmul.mubr.msk.f32.gmra.mxu0 %vm679_vm2, %v3342_v57 }
  0x7e   : > { %2852 = vmatprep.mubr.msk.f32.mxu0 %vm679_vm2, %v3346_v59 }
  0x81   : > { %2853 = vmatmul.mubr.msk.f32.gmra.mxu0 %vm679_vm2, %v3356_v61 }
  0x82   : > { %2855 = vmatprep.mubr.msk.f32.mxu0 %vm679_vm2, %v3359_v62 }
  0x85   : > { %2856 = vmatmul.mubr.msk.f32.gmra.mxu0 %vm679_vm2, %v3367_v63 }
  0x86   : > { %2858 = vmatprep.mubr.msk.f32.mxu0 %vm679_vm2, %v3370_v0 }
  0x89   : > { %2859 = vmatmul.mubr.msk.f32.gmra.mxu0 %vm679_vm2, %v3377_v1 }
  0xf8   : > { %v2711_v29 = vpop.f32.mrf.mxu0  ;;  %v3446_v30 = vpop.f32.mrf.mxu1 }
  0xfa   : > { %v794_v31 = vpop.f32.mrf.mxu0  ;;  %v3448_v32 = vpop.f32.mrf.mxu1 }
  0xfc   : > { %v2714_v33 = vpop.f32.mrf.mxu0  ;;  %v3450_v34 = vpop.f32.mrf.mxu1 }
  0xfe   : > { %v804_v35 = vpop.f32.mrf.mxu0  ;;  %v3452_v36 = vpop.f32.mrf.mxu1 }
 0x100   : > { %v2717_v37 = vpop.f32.mrf.mxu0  ;;  %v3454_v38 = vpop.f32.mrf.mxu1 }
 0x102   : > { %v814_v39 = vpop.f32.mrf.mxu0  ;;  %v3456_v40 = vpop.f32.mrf.mxu1 }
 0x105   : > { %v2720_v41 = vpop.f32.mrf.mxu0  ;;  %v2743_v42 = vpop.f32.mrf.mxu1 }
 0x106   : > { %v993_v49 = vadd.f32 %v2743_v42, %v2711_v29 }
 0x107   : > { %v824_v43 = vpop.f32.mrf.mxu0  ;;  %v987_v44 = vpop.f32.mrf.mxu1 }
 0x108   : > { %v988_v53 = vadd.f32 %v987_v44, %v794_v31 }
 0x109   : > { %v2723_v45 = vpop.f32.mrf.mxu0  ;;  %v2746_v46 = vpop.f32.mrf.mxu1 }
 0x10a   : > { %v1003_v59 = vadd.f32 %v2746_v46, %v2714_v33 }
 0x10b   : > { %v3458_v47 = vpop.f32.mrf.mxu0  ;;  %v997_v48 = vpop.f32.mrf.mxu1 }
 0x10c   : > { %v998_v0 = vadd.f32 %v997_v48, %v804_v35 }
 0x10d   : > { %v2749_v50 = vpop.f32.mrf.mxu1  ;;  %v2775_v52 = vpop.f32.mrf.mxu0 }
 0x10e   : > { %v1280_v54 = vadd.f32 %v2775_v52, %v993_v49  ;;  %v1013_v4 = vadd.f32 %v2749_v50, %v2717_v37 }
 0x10f   : > { %v1007_v55 = vpop.f32.mrf.mxu1  ;;  %v1200_v56 = vpop.f32.mrf.mxu0 }
 0x110   : > { %v1300_v57 = vadd.f32 %v3463_v51, %v1280_v54  ;;  %v1279_v58 = vadd.f32 %v1200_v56, %v988_v53  ;;  %v1008_v12 = vadd.f32 %v1007_v55, %v814_v39 }
 0x111   : > { %v2752_v60 = vpop.f32.mrf.mxu1  ;;  %v2778_v61 = vpop.f32.mrf.mxu0 }
 0x112   : > { %vm1316_vm3 = vcmp.gt.f32.partialorder %v1300_v57, 0.0  ;;  %v1332_v62 = vmul.f32 0.2, %v1300_v57  ;;  %v1299_v63 = vadd.f32 %v3463_v51, %v1279_v58  ;;  %v1282_v1 = vadd.f32 %v2778_v61, %v1003_v59 }
 0x113   : > { %v1017_v2 = vpop.f32.mrf.mxu1  ;;  %v1210_v3 = vpop.f32.mrf.mxu0  ;;  %v1023_v23 = vadd.f32 %v2752_v60, %v2720_v41 }
 0x114   : > { %vm1315_vm4 = vcmp.gt.f32.partialorder %v1299_v63, 0.0  ;;  %v1331_v5 = vmul.f32 0.2, %v1299_v63  ;;  %v1348_v7 = vsel %vm1316_vm3, %v1300_v57, %v1332_v62  ;;  %v1302_v8 = vadd.f32 %v3463_v51, %v1282_v1 }
 0x115   : > { %v1281_v9 = vadd.f32 %v1210_v3, %v998_v0  ;;  %v2755_v10 = vpop.f32.mrf.mxu1  ;;  %v2781_v11 = vpop.f32.mrf.mxu0  ;;  %v1368_v20 = vmul.f32 %v3470_v6, %v1348_v7  ;;  %v1018_v27 = vadd.f32 %v1017_v2, %v824_v43 }
 0x116   : > { %v1347_v13 = vsel %vm1315_vm4, %v1299_v63, %v1331_v5  ;;  %v1284_v14 = vadd.f32 %v2781_v11, %v1013_v4  ;;  %v1334_v15 = vmul.f32 0.2, %v1302_v8  ;;  %vm1318_vm5 = vcmp.gt.f32.partialorder %v1302_v8, 0.0 }
 0x117   : > { %v1301_v16 = vadd.f32 %v3463_v51, %v1281_v9  ;;  %v1027_v17 = vpop.f32.mrf.mxu1  ;;  %v1220_v18 = vpop.f32.mrf.mxu0  ;;  %v1367_v19 = vmul.f32 %v3470_v6, %v1347_v13  ;;  %v1033_v42 = vadd.f32 %v2755_v10, %v2723_v45  ;;  %vm2148_vm4 = vcmask 253952  }
 0x118   : > { %v1304_v21 = vadd.f32 %v3463_v51, %v1284_v14  ;;  %v1283_v22 = vadd.f32 %v1220_v18, %v1008_v12  ;;  %v1350_v29 = vsel %vm1318_vm5, %v1302_v8, %v1334_v15  ;;  %v1028_v50 = vadd.f32 %v1027_v17, %v3458_v47 }
 0x119   : > { %vm1317_vm6 = vcmp.gt.f32.partialorder %v1301_v16, 0.0  ;;  %v1333_v24 = vmul.f32 0.2, %v1301_v16  ;;  %v2758_v25 = vpop.f32.mrf.mxu1  ;;  %v2784_v26 = vpop.f32.mrf.mxu0  ;;  %2805 = vmatprep.mubr.msk.f32.mxu1 %vm679_vm2, %v1367_v19  ;;  %v1370_v54 = vmul.f32 %v3470_v6, %v1350_v29  ;;  %vm2143_vm5 = vcmask 523264  }
 0x11a   : > { %v1303_v28 = vadd.f32 %v3463_v51, %v1283_v22  ;;  %2806 = vmatmul.mubr.msk.f32.vlgmr.msra.gmra.mxu1 %vm679_vm2, %v1368_v20  ;;  %v1336_v33 = vmul.f32 0.2, %v1304_v21  ;;  %v1286_v35 = vadd.f32 %v2784_v26, %v1023_v23  ;;  %vm1320_vm7 = vcmp.gt.f32.partialorder %v1304_v21, 0.0 }
 0x11b   : > { %v1349_v31 = vsel %vm1317_vm6, %v1301_v16, %v1333_v24  ;;  %v1037_v37 = vpop.f32.mrf.mxu1  ;;  %v1230_v39 = vpop.f32.mrf.mxu0  ;;  %v1043_v61 = vadd.f32 %v2758_v25, %v3446_v30 }
 0x11c   : > { %vm1319_vm8 = vcmp.gt.f32.partialorder %v1303_v28, 0.0  ;;  %v1335_v41 = vmul.f32 0.2, %v1303_v28  ;;  %v1306_v44 = vadd.f32 %v3463_v51, %v1286_v35  ;;  %v1285_v46 = vadd.f32 %v1230_v39, %v1018_v27 }
 0x11d   : > { %v2761_v48 = vpop.f32.mrf.mxu1  ;;  %v2787_v49 = vpop.f32.mrf.mxu0  ;;  %v1369_v43 = vmul.f32 %v3470_v6, %v1349_v31  ;;  %v1352_v55 = vsel %vm1320_vm7, %v1304_v21, %v1336_v33  ;;  %v1038_v0 = vadd.f32 %v1037_v37, %v3448_v32 }
 0x11e   : > { %v1351_v52 = vsel %vm1319_vm8, %v1303_v28, %v1335_v41  ;;  %v1288_v53 = vadd.f32 %v2787_v49, %v1033_v42  ;;  %v1338_v56 = vmul.f32 0.2, %v1306_v44  ;;  %v1305_v45 = vadd.f32 %v3463_v51, %v1285_v46 }
 0x11f   : > { %2808 = vmatprep.mubr.msk.f32.mxu1 %vm679_vm2, %v1369_v43  ;;  %v1240_v57 = vpop.f32.mrf.mxu0  ;;  %v1371_v58 = vmul.f32 %v3470_v6, %v1351_v52  ;;  %vm1322_vm9 = vcmp.gt.f32.partialorder %v1306_v44, 0.0  ;;  %v1047_v60 = vpop.f32.mrf.mxu1  ;;  %v1372_v2 = vmul.f32 %v3470_v6, %v1352_v55  ;;  %v1053_v9 = vadd.f32 %v2761_v48, %v3450_v34 }
 0x120   : > { %v1308_v59 = vadd.f32 %v3463_v51, %v1288_v53  ;;  %2809 = vmatmul.mubr.msk.f32.gmra.mxu1 %vm679_vm2, %v1370_v54  ;;  %v1287_v47 = vadd.f32 %v1240_v57, %v1028_v50  ;;  %vm1321_vm10 = vcmp.gt.f32.partialorder %v1305_v45, 0.0  ;;  %v1337_v62 = vmul.f32 0.2, %v1305_v45  ;;  %v1410_v57 = vpop.permute.xlu0 %1409 }
 0x121   : > { %v2790_v63 = vpop.f32.mrf.mxu0  ;;  %2811 = vmatprep.mubr.msk.f32.mxu1 %vm679_vm2, %v1371_v58  ;;  %v1354_v3 = vsel %vm1322_vm9, %v1306_v44, %v1338_v56  ;;  %v2764_v10 = vpop.f32.mrf.mxu1  ;;  %v1048_v14 = vadd.f32 %v1047_v60, %v3452_v36 }
 0x122   : > { %v1307_v1 = vadd.f32 %v3463_v51, %v1287_v47  ;;  %v1353_v4 = vsel %vm1321_vm10, %v1305_v45, %v1337_v62  ;;  %v1340_v5 = vmul.f32 0.2, %v1308_v59  ;;  %v1290_v7 = vadd.f32 %v2790_v63, %v1043_v61  ;;  %v1420_v45 = vpop.permute.xlu1 %1419 }
 0x123   : > { %v1250_v8 = vpop.f32.mrf.mxu0  ;;  %vm1324_vm11 = vcmp.gt.f32.partialorder %v1308_v59, 0.0  ;;  %v1373_v13 = vmul.f32 %v3470_v6, %v1353_v4  ;;  %v1374_v17 = vmul.f32 %v3470_v6, %v1354_v3  ;;  %v1063_v22 = vadd.f32 %v2764_v10, %v3454_v38  ;;  %v1057_v23 = vpop.f32.mrf.mxu1 }
 0x124   : > { %vm1323_vm12 = vcmp.gt.f32.partialorder %v1307_v1, 0.0  ;;  %v1339_v30 = vmul.f32 0.2, %v1307_v1  ;;  %2812 = vmatmul.mubr.msk.f32.gmra.mxu1 %vm679_vm2, %v1372_v2  ;;  %v1310_v11 = vadd.f32 %v3463_v51, %v1290_v7  ;;  %v1289_v32 = vadd.f32 %v1250_v8, %v1038_v0 }
 0x125   : > { %v2793_v12 = vpop.f32.mrf.mxu0  ;;  %v1356_v18 = vsel %vm1324_vm11, %v1308_v59, %v1340_v5  ;;  %2814 = vmatprep.mubr.msk.f32.mxu1 %vm679_vm2, %v1373_v13  ;;  %v1058_v38 = vadd.f32 %v1057_v23, %v3456_v40  ;;  %v1415_v59 = vpop.permute.xlu0 %1414 }
 0x126   : > { %v1355_v15 = vsel %vm1323_vm12, %v1307_v1, %v1339_v30  ;;  %v1292_v16 = vadd.f32 %v2793_v12, %v1053_v9  ;;  %v1342_v34 = vmul.f32 0.2, %v1310_v11  ;;  %v1309_v19 = vadd.f32 %v3463_v51, %v1289_v32  ;;  %v1425_v58 = vpop.permute.xlu1 %1424 }
 0x127   : > { %v1260_v20 = vpop.f32.mrf.mxu0  ;;  %v1375_v21 = vmul.f32 %v3470_v6, %v1355_v15  ;;  %vm1326_vm13 = vcmp.gt.f32.partialorder %v1310_v11, 0.0  ;;  %v1376_v29 = vmul.f32 %v3470_v6, %v1356_v18 }
 0x128   : > { %v1312_v24 = vadd.f32 %v3463_v51, %v1292_v16  ;;  %2815 = vmatmul.mubr.msk.f32.gmra.mxu1 %vm679_vm2, %v1374_v17  ;;  %v1291_v36 = vadd.f32 %v1260_v20, %v1048_v14  ;;  %vm1325_vm14 = vcmp.gt.f32.partialorder %v1309_v19, 0.0  ;;  %v1341_v25 = vmul.f32 0.2, %v1309_v19 }
 0x129   : > { %v2796_v26 = vpop.f32.mrf.mxu0  ;;  %2817 = vmatprep.mubr.msk.f32.mxu1 %vm679_vm2, %v1375_v21  ;;  %v1358_v31 = vsel %vm1326_vm13, %v1310_v11, %v1342_v34  ;;  %v1430_v61 = vpop.permute.xlu0 %1429 }
 0x12a   : > { %v1311_v27 = vadd.f32 %v3463_v51, %v1291_v36  ;;  %v1294_v28 = vadd.f32 %v2796_v26, %v1063_v22  ;;  %v1357_v33 = vsel %vm1325_vm14, %v1309_v19, %v1341_v25  ;;  %v1344_v35 = vmul.f32 0.2, %v1312_v24  ;;  %v1435_v60 = vpop.permute.xlu1 %1434 }
 0x12b   : > { %v1270_v37 = vpop.f32.mrf.mxu0  ;;  %vm1328_vm15 = vcmp.gt.f32.partialorder %v1312_v24, 0.0  ;;  %v1377_v44 = vmul.f32 %v3470_v6, %v1357_v33  ;;  %v1378_v48 = vmul.f32 %v3470_v6, %v1358_v31 }
 0x12c   : > { %vm1327_vm0 = vcmp.gt.f32.partialorder %v1311_v27, 0.0  ;;  %v1343_v39 = vmul.f32 0.2, %v1311_v27  ;;  %v1314_v42 = vadd.f32 %v3463_v51, %v1294_v28  ;;  %2818 = vmatmul.mubr.msk.f32.gmra.mxu1 %vm679_vm2, %v1376_v29  ;;  %v1293_v41 = vadd.f32 %v1270_v37, %v1058_v38 }
 0x12d   : > { %v1360_v49 = vsel %vm1328_vm15, %v1312_v24, %v1344_v35  ;;  %2820 = vmatprep.mubr.msk.f32.mxu1 %vm679_vm2, %v1377_v44  ;;  %v1440_v1 = vpop.permute.xlu0 %1439 }
 0x12e   : > { %v1359_v46 = vsel %vm1327_vm0, %v1311_v27, %v1343_v39  ;;  %v1346_v43 = vmul.f32 0.2, %v1314_v42  ;;  %v1313_v40 = vadd.f32 %v3463_v51, %v1293_v41  ;;  %vm1330_vm1 = vcmp.gt.f32.partialorder %v1314_v42, 0.0  ;;  %v1445_v63 = vpop.permute.xlu1 %1444 }
 0x12f   : > { %v1379_v50 = vmul.f32 %v3470_v6, %v1359_v46  ;;  %v1380_v53 = vmul.f32 %v3470_v6, %v1360_v49 }
 0x130   : > { %2821 = vmatmul.mubr.msk.f32.gmra.mxu1 %vm679_vm2, %v1378_v48  ;;  %vm1329_vm3 = vcmp.gt.f32.partialorder %v1313_v40, 0.0  ;;  %v1345_v52 = vmul.f32 0.2, %v1313_v40  ;;  %v1362_v54 = vsel %vm1330_vm1, %v1314_v42, %v1346_v43 }
 0x131   : > { %2823 = vmatprep.mubr.msk.f32.mxu1 %vm679_vm2, %v1379_v50  ;;  %v1382_v51 = vmul.f32 %v3470_v6, %v1362_v54  ;;  %v1450_v7 = vpop.permute.xlu0 %1449 }
 0x132   : > { %v1361_v55 = vsel %vm1329_vm3, %v1313_v40, %v1345_v52  ;;  %v1455_v4 = vpop.permute.xlu1 %1454 }
 0x133   : > { %v1381_v56 = vmul.f32 %v3470_v6, %v1361_v55 }
 0x134   : > { %2824 = vmatmul.mubr.msk.f32.gmra.mxu1 %vm679_vm2, %v1380_v53 }
 0x135   : > { %2826 = vmatprep.mubr.msk.f32.mxu1 %vm679_vm2, %v1381_v56  ;;  %v1460_v10 = vpop.permute.xlu0 %1459 }
 0x136   : > { %v1465_v9 = vpop.permute.xlu1 %1464 }
 0x138   : > { %2827 = vmatmul.mubr.msk.f32.gmra.mxu1 %vm679_vm2, %v1382_v51 }
 0x139   : > { %v1470_v20 = vpop.permute.xlu0 %1469 }
 0x13a   : > { %v1475_v13 = vpop.permute.xlu1 %1474 }
 0x13d   : > { %v1480_v53 = vpop.permute.xlu0 %1479 }
 0x13e   : > { %v1485_v42 = vpop.permute.xlu1 %1484 }
 0x1da   : > { %v2807_v47 = vpop.f32.mrf.mxu1 }
 0x1db   : > { %v3527_v14 = vadd.f32 %v2807_v47, %v1415_v59 }
 0x1dc   : > { %v1601_v62 = vpop.f32.mrf.mxu1 }
 0x1dd   : > { %v3529_v15 = vadd.f32 %v1601_v62, %v1410_v57  ;;  %v1682_v27 = vsel %vm679_vm2, %v3527_v14, -inf }
 0x1df   : > { %v1681_v28 = vsel %vm679_vm2, %v3529_v15, -inf }
 0x1e0   : > { %v2810_v0 = vpop.f32.mrf.mxu1 }
 0x1e1   : > { %v3539_v21 = vadd.f32 %v2810_v0, %v1425_v58 }
 0x1e2   : > { %v1611_v2 = vpop.f32.mrf.mxu1 }
 0x1e3   : > { %v3541_v22 = vadd.f32 %v1611_v2, %v1420_v45  ;;  %v1684_v41 = vsel %vm679_vm2, %v3539_v21, -inf }
 0x1e4   : > { %v2813_v3 = vpop.f32.mrf.mxu1 }
 0x1e5   : > { %v3531_v16 = vadd.f32 %v2813_v3, %v1435_v60  ;;  %v1683_v44 = vsel %vm679_vm2, %v3541_v22, -inf }
 0x1e6   : > { %v1621_v5 = vpop.f32.mrf.mxu1 }
 0x1e7   : > { %v3525_v12 = vadd.f32 %v1621_v5, %v1430_v61  ;;  %v1687_v29 = vsel %vm679_vm2, %v3531_v16, -inf }
 0x1e8   : > { %v2816_v8 = vpop.f32.mrf.mxu1  ;;  %v1688_v54 = vmax.f32 %v1682_v27, %v1687_v29 }
 0x1e9   : > { %v3533_v17 = vadd.f32 %v2816_v8, %v1445_v63  ;;  %v1685_v36 = vsel %vm679_vm2, %v3525_v12, -inf }
 0x1ea   : > { %v1631_v6 = vpop.f32.mrf.mxu1  ;;  %v1686_v46 = vmax.f32 %v1681_v28, %v1685_v36 }
 0x1eb   : > { %v3535_v34 = vadd.f32 %v1631_v6, %v1440_v1  ;;  %v1691_v31 = vsel %vm679_vm2, %v3533_v17, -inf  ;;  %v1723_v6 = vlaneseq }
 0x1ec   : > { %v2819_v30 = vpop.f32.mrf.mxu1  ;;  %v1692_v55 = vmax.f32 %v1684_v41, %v1691_v31 }
 0x1ed   : > { %v3543_v23 = vadd.f32 %v2819_v30, %v1455_v4  ;;  %v1689_v33 = vsel %vm679_vm2, %v3535_v34, -inf }
 0x1ee   : > { %v1641_v11 = vpop.f32.mrf.mxu1  ;;  %v1690_v56 = vmax.f32 %v1683_v44, %v1689_v33 }
 0x1ef   : > { %v3537_v19 = vadd.f32 %v1641_v11, %v1450_v7  ;;  %v1695_v48 = vsel %vm679_vm2, %v3543_v23, -inf }
 0x1f0   : > { %v2822_v32 = vpop.f32.mrf.mxu1  ;;  %v1696_v60 = vmax.f32 %v1688_v54, %v1695_v48 }
 0x1f1   : > { %v3547_v25 = vadd.f32 %v2822_v32, %v1465_v9  ;;  %v1693_v35 = vsel %vm679_vm2, %v3537_v19, -inf  ;;  %v3577_v32 = vld [vmem:[#allocation2] sm:$0x1] }
 0x1f2   : > { %v1651_v18 = vpop.f32.mrf.mxu1  ;;  %v1694_v51 = vmax.f32 %v1686_v46, %v1693_v35 }
 0x1f3   : > { %v3549_v26 = vadd.f32 %v1651_v18, %v1460_v10  ;;  %v1699_v43 = vsel %vm679_vm2, %v3547_v25, -inf  ;;  %v1724_v10 = vshrl.u32 %v1723_v6, 7  ;;  %v3675_v6 = vpop.f32.mrf.mxu0 }
 0x1f4   : > { %v2825_v24 = vpop.f32.mrf.mxu1  ;;  %v1700_v47 = vmax.f32 %v1692_v55, %v1699_v43 }
 0x1f5   : > { %v1667_v37 = vadd.f32 %v2825_v24, %v1475_v13  ;;  %v1697_v40 = vsel %vm679_vm2, %v3549_v26, -inf  ;;  %v3579_v18 = vsub.s32 0, %v1724_v10 }
 0x1f6   : > { %v1661_v38 = vpop.f32.mrf.mxu1  ;;  %v1698_v61 = vmax.f32 %v1690_v56, %v1697_v40 }
 0x1f7   : > { %v1662_v39 = vadd.f32 %v1661_v38, %v1470_v20  ;;  %v1703_v57 = vsel %vm679_vm2, %v1667_v37, -inf }
 0x1f8   : > { %v2828_v49 = vpop.f32.mrf.mxu1  ;;  %v1704_v0 = vmax.f32 %v1696_v60, %v1703_v57 }
 0x1f9   : > { %v1701_v50 = vsel %vm679_vm2, %v1662_v39, -inf  ;;  %v1677_v52 = vadd.f32 %v2828_v49, %v1485_v42 }
 0x1fa   : > { %v1671_v45 = vpop.f32.mrf.mxu1  ;;  %v1702_v62 = vmax.f32 %v1694_v51, %v1701_v50 }
 0x1fb   : > { %v1707_v58 = vsel %vm679_vm2, %v1677_v52, -inf  ;;  %v1672_v59 = vadd.f32 %v1671_v45, %v1480_v53 }
 0x1fc   : > { %v1708_v1 = vmax.f32 %v1700_v47, %v1707_v58  ;;  %v1709_v3 = vmax.f32 %v1702_v62, %v1704_v0 }
 0x1fd   : > { %v1705_v63 = vsel %vm679_vm2, %v1672_v59, -inf }
 0x1fe   : > { %v1706_v2 = vmax.f32 %v1698_v61, %v1705_v63 }
 0x200   : > { %v1710_v4 = vmax.f32 %v1706_v2, %v1708_v1  ;;  %v3653_v1 = vld [vmem:[%s522_s14] sm:$0xff]  }
 0x201   : > { %v2565_v2 = vunpack.c.l.bf16 %v3653_v1 }
 0x202   : > { %v1711_v5 = vmax.f32 %v1709_v3, %v1710_v4 }
 0x203   : > { %2893 = vmatprep.mubr.f32.mxu1 %v2565_v2 }
 0x204   : > { %v1712_v7 = vrot.slane %v1711_v5, 4 }
 0x206   : > { %v1713_v8 = vmax.f32 %v1711_v5, %v1712_v7 }
 0x208   : > { %v1714_v9 = vrot.slane %v1713_v8, 2 }
 0x20a   : > { %v1715_v30 = vmax.f32 %v1713_v8, %v1714_v9  ;;  %v3677_v9 = vpop.f32.mrf.mxu0 }
 0x20c   : > { %v1716_v11 = vrot.slane %v1715_v30, 1 }
 0x20e   : > { %v1717_v13 = vmax.f32 %v1715_v30, %v1716_v11  ;;  %v3679_v30 = vpop.f32.mrf.mxu0 }
 0x210   : > { %v3582_v20 = vmax.f32 %v3577_v32, %v1717_v13  ;;  %v3681_v10 = vpop.f32.mrf.mxu0 }
 0x212   : > { %v1726_v24 = vrot.slane %v3582_v20, %v3579_v18  ;;  %2149 = vst.msk [vmem:[#allocation2] sm:$0x1] %vm2148_vm4, %v3582_v20  ;;  %v2845_v11 = vpop.f32.mrf.mxu0 }
 0x214   : > { %v1742_v36 = vsub.f32 %v1672_v59, %v1726_v24  ;;  %v1740_v28 = vsub.f32 %v1662_v39, %v1726_v24  ;;  %v1743_v29 = vsub.f32 %v1677_v52, %v1726_v24  ;;  %v1738_v31 = vsub.f32 %v3549_v26, %v1726_v24 }
 0x215   : > { %v1741_v33 = vsub.f32 %v1667_v37, %v1726_v24  ;;  %v1736_v41 = vsub.f32 %v3537_v19, %v1726_v24  ;;  %v1739_v46 = vsub.f32 %v3547_v25, %v1726_v24  ;;  %v1734_v39 = vsub.f32 %v3535_v34, %v1726_v24 }
 0x216   : > { %v1772_v27 = vmul.f32 1.442695, %v1742_v36  ;;  %v1768_v38 = vmul.f32 1.442695, %v1740_v28  ;;  %v1774_v35 = vmul.f32 1.442695, %v1743_v29  ;;  %v1737_v37 = vsub.f32 %v3543_v23, %v1726_v24 }
 0x217   : > { %v1764_v44 = vmul.f32 1.442695, %v1738_v31  ;;  %v1770_v48 = vmul.f32 1.442695, %v1741_v33  ;;  %v1760_v26 = vmul.f32 1.442695, %v1736_v41  ;;  %v1732_v19 = vsub.f32 %v3525_v12, %v1726_v24 }
 0x218   : > { %2976 = vpow2.f32 %v1772_v27  ;;  %v1766_v49 = vmul.f32 1.442695, %v1739_v46  ;;  %v1756_v43 = vmul.f32 1.442695, %v1734_v39  ;;  %v1735_v40 = vsub.f32 %v3533_v17, %v1726_v24  ;;  %v3688_v33 = vld [vmem:[%s3827_s11 + $0x2] ss:$0 sm:$0xff] }
 0x219   : > { %2978 = vpow2.f32 %v1768_v38  ;;  %v1762_v50 = vmul.f32 1.442695, %v1737_v37  ;;  %v1730_v25 = vsub.f32 %v3541_v22, %v1726_v24  ;;  %v1752_v52 = vmul.f32 1.442695, %v1732_v19 }
 0x21a   : > { %2980 = vpow2.f32 %v1774_v35  ;;  %v1733_v34 = vsub.f32 %v3531_v16, %v1726_v24  ;;  %v1758_v54 = vmul.f32 1.442695, %v1735_v40  ;;  %v1728_v12 = vsub.f32 %v3529_v15, %v1726_v24 }
 0x21b   : > { %2982 = vpow2.f32 %v1764_v44  ;;  %v1748_v17 = vmul.f32 1.442695, %v1730_v25  ;;  %v1731_v55 = vsub.f32 %v3539_v21, %v1726_v24  ;;  %v1729_v51 = vsub.f32 %v3527_v14, %v1726_v24 }
 0x21c   : > { %2984 = vpow2.f32 %v1770_v48  ;;  %v1754_v56 = vmul.f32 1.442695, %v1733_v34  ;;  %v1744_v45 = vmul.f32 1.442695, %v1728_v12  ;;  %v1719_v21 = vsub.f32 %v3577_v32, %v3582_v20  ;;  %v3683_v32 = vpop.f32.mrf.mxu0 }
 0x21d   : > { %2986 = vpow2.f32 %v1760_v26  ;;  %v1750_v57 = vmul.f32 1.442695, %v1731_v55  ;;  %v1746_v59 = vmul.f32 1.442695, %v1729_v51 }
 0x21e   : > { %2988 = vpow2.f32 %v1766_v49  ;;  %v1720_v60 = vmul.f32 1.442695, %v1719_v21  ;;  %v2848_v13 = vpop.f32.mrf.mxu0 }
 0x21f   : > { %2990 = vpow2.f32 %v1756_v43 }
 0x220   : > { %2992 = vpow2.f32 %v1762_v50  ;;  %v1880_v20 = vpop.f32.mrf.mxu0 }
 0x221   : > { %2994 = vpow2.f32 %v1752_v52  ;;  %v1881_v2 = vadd.f32 %v3688_v33, %v1880_v20 }
 0x222   : > { %2996 = vpow2.f32 %v1758_v54  ;;  %v2851_v24 = vpop.f32.mrf.mxu0 }
 0x223   : > { %2998 = vpow2.f32 %v1748_v17  ;;  %v1896_v12 = vadd.f32 %v2851_v24, %v3688_v33  ;;  %v1876_v24 = vadd.f32 %v2845_v11, %v3688_v33  ;;  %v1866_v11 = vadd.f32 %v3679_v30, %v3688_v33 }
 0x224   : > { %3000 = vpow2.f32 %v1754_v56  ;;  %v1890_v36 = vpop.f32.mrf.mxu0  ;;  %v1856_v30 = vadd.f32 %v3675_v6, %v3688_v33 }
 0x225   : > { %v3588_v42 = vpop.eup %2976  ;;  %3002 = vpow2.f32 %v1744_v45  ;;  %v1891_v51 = vadd.f32 %v3688_v33, %v1890_v36 }
 0x226   : > { %1989 = vrot.lane.b32.xlu1 %v3588_v42, %s3061_s25  ;;  %v3599_v53 = vpop.eup %2978  ;;  %3004 = vpow2.f32 %v1750_v57  ;;  %v2854_v27 = vpop.f32.mrf.mxu0  ;;  %v1886_v57 = vadd.f32 %v2848_v13, %v3688_v33 }
 0x227   : > { %v3602_v23 = vpop.eup %2980  ;;  %3006 = vpow2.f32 %v1746_v59  ;;  %v1906_v40 = vadd.f32 %v2854_v27, %v3688_v33 }
 0x228   : > { %1991 = vrot.lane.b32.xlu0 %v3602_v23, %s3061_s25  ;;  %v3609_v22 = vpop.eup %2982  ;;  %3008 = vpow2.f32 %v1720_v60  ;;  %v1900_v28 = vpop.f32.mrf.mxu0 }
 0x229   : > { %v3612_v16 = vpop.eup %2984  ;;  %v1901_v54 = vadd.f32 %v3688_v33, %v1900_v28  ;;  %v1871_v28 = vadd.f32 %v3688_v33, %v3683_v32 }
 0x22a   : > { %1985 = vrot.lane.b32.xlu1 %v3599_v53, %s3061_s25  ;;  %v3619_v15 = vpop.eup %2986  ;;  %v2857_v29 = vpop.f32.mrf.mxu0 }
 0x22b   : > { %v3623_v58 = vpop.eup %2988  ;;  %v1916_v48 = vadd.f32 %v2857_v29, %v3688_v33  ;;  %v1939_v45 = vmul.f32 %v3609_v22, %v1901_v54 }
 0x22c   : > { %1987 = vrot.lane.b32.xlu0 %v3612_v16, %s3061_s25  ;;  %v3629_v14 = vpop.eup %2990  ;;  %v1910_v31 = vpop.f32.mrf.mxu0  ;;  %v1940_v17 = vmul.f32 %v3623_v58, %v1906_v40  ;;  %v2128_v40 = vld [vmem:[#allocation3 + $0x8] sm:$0xff] }
 0x22d   : > { %v3631_v47 = vpop.eup %2992  ;;  %v1911_v49 = vadd.f32 %v3688_v33, %v1910_v31  ;;  %v1942_v50 = vmul.f32 %v3612_v16, %v1916_v48  ;;  %v1935_v20 = vmul.f32 %v3629_v14, %v1881_v2 }
 0x22e   : > { %1981 = vrot.lane.b32.xlu1 %v3609_v22, %s3061_s25  ;;  %v3637_v61 = vpop.eup %2994  ;;  %v2860_v38 = vpop.f32.mrf.mxu0  ;;  %v1938_v21 = vmul.f32 %v3631_v47, %v1896_v12 }
 0x22f   : > { %v3639_v62 = vpop.eup %2996  ;;  %v1926_v44 = vadd.f32 %v2860_v38, %v3688_v33  ;;  %v1861_v38 = vadd.f32 %v3688_v33, %v3681_v10  ;;  %v1933_v32 = vmul.f32 %v3637_v61, %v1871_v28  ;;  %v1851_v10 = vadd.f32 %v3688_v33, %v3677_v9 }
 0x230   : > { %1983 = vrot.lane.b32.xlu0 %v3623_v58, %s3061_s25  ;;  %v3645_v63 = vpop.eup %2998  ;;  %v1920_v41 = vpop.f32.mrf.mxu0  ;;  %v1936_v13 = vmul.f32 %v3639_v62, %v1886_v57 }
 0x231   : > { %v3647_v0 = vpop.eup %3000  ;;  %v1921_v46 = vadd.f32 %v3688_v33, %v1920_v41  ;;  %v1944_v39 = vmul.f32 %v3602_v23, %v1926_v44  ;;  %v1941_v23 = vmul.f32 %v3599_v53, %v1911_v49 }
 0x232   : > { %1977 = vrot.lane.b32.xlu1 %v3619_v15, %s3061_s25  ;;  %v3658_v3 = vpop.eup %3002 }
 0x233   : > { %v3660_v4 = vpop.eup %3004  ;;  %v1943_v19 = vmul.f32 %v3588_v42, %v1921_v46 }
 0x234   : > { %1979 = vrot.lane.b32.xlu0 %v3631_v47, %s3061_s25  ;;  %v3666_v5 = vpop.eup %3006 }
 0x235   : > { %v3668_v7 = vpop.eup %3008  ;;  %v1930_v48 = vmul.f32 %v3666_v5, %v1856_v30 }
 0x236   : > { %1973 = vrot.lane.b32.xlu1 %v3629_v14, %s3061_s25  ;;  %v2122_v8 = vrot.slane %v3668_v7, %v3579_v18 }
 0x238   : > { %1975 = vrot.lane.b32.xlu0 %v3639_v62, %s3061_s25  ;;  %v1934_v62 = vmul.f32 %v3647_v0, %v1876_v24 }
 0x23a   : > { %1969 = vrot.lane.b32.xlu1 %v3637_v61, %s3061_s25  ;;  %v1931_v61 = vmul.f32 %v3645_v63, %v1861_v38 }
 0x23c   : > { %1971 = vrot.lane.b32.xlu0 %v3647_v0, %s3061_s25  ;;  %v1932_v0 = vmul.f32 %v3660_v4, %v1866_v11 }
 0x23e   : > { %1965 = vrot.lane.b32.xlu1 %v3645_v63, %s3061_s25  ;;  %v2566_v63 = vunpack.c.h.bf16 %v3653_v1 }
 0x240   : > { %1967 = vrot.lane.b32.xlu0 %v3660_v4, %s3061_s25 }
 0x242   : > { %1961 = vrot.lane.b32.xlu1 %v3658_v3, %s3061_s25 }
 0x244   : > { %1963 = vrot.lane.b32.xlu0 %v3666_v5, %s3061_s25 }
 0x248   : > { %2123 = vrot.lane.b32.xlu0 %v2122_v8, %s3061_s25  ;;  %v1937_v8 = vmul.f32 %v3619_v15, %v1891_v51 }
 0x298   : > { %v1990_v35 = vpop.permute.xlu1 %1989 }
 0x299   : > { %v2023_v25 = vsel %vm679_vm2, %v1943_v19, %v1990_v35 }
 0x29a   : > { %v1992_v37 = vpop.permute.xlu0 %1991 }
 0x29b   : > { %v2024_v43 = vsel %vm679_vm2, %v1944_v39, %v1992_v37  ;;  %v1929_v37 = vmul.f32 %v3658_v3, %v1851_v10 }
 0x29c   : > { %v1986_v26 = vpop.permute.xlu1 %1985  ;;  %2861 = vmatprep.subr.mxu1 %v2024_v43 }
 0x29d   : > { %2862 = vmatpush3.msra.mxu1 %v2024_v43  ;;  %v2021_v55 = vsel %vm679_vm2, %v1941_v23, %v1986_v26  ;;  %v2572_v26 = vld [vmem:[%s522_s14 + $0x8] sm:$0xff]  }
 0x29e   : > { %2863 = vmatprep.subr.mxu1 %v2023_v25  ;;  %v1988_v34 = vpop.permute.xlu0 %1987  ;;  %v2569_v5 = vunpack.c.l.bf16 %v2572_v26  ;;  %v2570_v49 = vunpack.c.h.bf16 %v2572_v26 }
 0x29f   : > { %2864 = vmatpush3.msra.mxu1 %v2023_v25  ;;  %v2022_v42 = vsel %vm679_vm2, %v1942_v50, %v1988_v34  ;;  %v2127_v50 = vld [vmem:[#allocation3] sm:$0xff] }
 0x2a0   : > { %v1982_v52 = vpop.permute.xlu1 %1981  ;;  %2865 = vmatprep.subr.mxu1 %v2022_v42 }
 0x2a1   : > { %2866 = vmatpush3.msra.mxu1 %v2022_v42  ;;  %v2019_v58 = vsel %vm679_vm2, %v1939_v45, %v1982_v52  ;;  %v2130_v52 = vld [vmem:[#allocation3 + $0x18] sm:$0xff]  ;;  %v2129_v42 = vld [vmem:[#allocation3 + $0x10] sm:$0xff] }
 0x2a2   : > { %2867 = vmatprep.subr.mxu1 %v2021_v55  ;;  %v1984_v16 = vpop.permute.xlu0 %1983 }
 0x2a3   : > { %2868 = vmatpush3.msra.mxu1 %v2021_v55  ;;  %v2020_v53 = vsel %vm679_vm2, %v1940_v17, %v1984_v16 }
 0x2a4   : > { %v1978_v56 = vpop.permute.xlu1 %1977  ;;  %2869 = vmatprep.subr.mxu1 %v2020_v53 }
 0x2a5   : > { %2870 = vmatpush3.msra.mxu1 %v2020_v53  ;;  %v2017_v47 = vsel %vm679_vm2, %v1937_v8, %v1978_v56 }
 0x2a6   : > { %2871 = vmatprep.subr.mxu1 %v2019_v58  ;;  %v1980_v60 = vpop.permute.xlu0 %1979 }
 0x2a7   : > { %2872 = vmatpush3.msra.mxu1 %v2019_v58  ;;  %v2018_v22 = vsel %vm679_vm2, %v1938_v21, %v1980_v60 }
 0x2a8   : > { %v1974_v59 = vpop.permute.xlu1 %1973  ;;  %2873 = vmatprep.subr.mxu1 %v2018_v22 }
 0x2a9   : > { %2874 = vmatpush3.msra.mxu1 %v2018_v22  ;;  %v2015_v29 = vsel %vm679_vm2, %v1935_v20, %v1974_v59 }
 0x2aa   : > { %2875 = vmatprep.subr.mxu1 %v2017_v47  ;;  %v1976_v36 = vpop.permute.xlu0 %1975 }
 0x2ab   : > { %2876 = vmatpush3.msra.mxu1 %v2017_v47  ;;  %v2016_v15 = vsel %vm679_vm2, %v1936_v13, %v1976_v36 }
 0x2ac   : > { %v1970_v27 = vpop.permute.xlu1 %1969  ;;  %2877 = vmatprep.subr.mxu1 %v2016_v15 }
 0x2ad   : > { %2878 = vmatpush3.msra.mxu1 %v2016_v15  ;;  %v2013_v41 = vsel %vm679_vm2, %v1933_v32, %v1970_v27 }
 0x2ae   : > { %2879 = vmatprep.subr.mxu1 %v2015_v29  ;;  %v1972_v31 = vpop.permute.xlu0 %1971 }
 0x2af   : > { %2880 = vmatpush3.msra.mxu1 %v2015_v29  ;;  %v2014_v14 = vsel %vm679_vm2, %v1934_v62, %v1972_v31 }
 0x2b0   : > { %2881 = vmatprep.subr.mxu1 %v2014_v14  ;;  %v1966_v35 = vpop.permute.xlu1 %1965 }
 0x2b1   : > { %2882 = vmatpush3.msra.mxu1 %v2014_v14  ;;  %v2011_v4 = vsel %vm679_vm2, %v1931_v61, %v1966_v35 }
 0x2b2   : > { %2883 = vmatprep.subr.mxu1 %v2013_v41  ;;  %v1968_v44 = vpop.permute.xlu0 %1967 }
 0x2b3   : > { %2884 = vmatpush3.msra.mxu1 %v2013_v41  ;;  %v2012_v46 = vsel %vm679_vm2, %v1932_v0, %v1968_v44 }
 0x2b4   : > { %2885 = vmatprep.subr.mxu1 %v2012_v46  ;;  %v1962_v39 = vpop.permute.xlu1 %1961 }
 0x2b5   : > { %2886 = vmatpush3.msra.mxu1 %v2012_v46  ;;  %v2009_v33 = vsel %vm679_vm2, %v1929_v37, %v1962_v39 }
 0x2b6   : > { %2887 = vmatprep.subr.mxu1 %v2011_v4  ;;  %v1964_v6 = vpop.permute.xlu0 %1963 }
 0x2b7   : > { %2888 = vmatpush3.msra.mxu1 %v2011_v4  ;;  %v2010_v9 = vsel %vm679_vm2, %v1930_v48, %v1964_v6 }
 0x2b8   : > { %2889 = vmatprep.subr.mxu1 %v2010_v9 }
 0x2b9   : > { %2890 = vmatpush3.msra.mxu1 %v2010_v9 }
 0x2ba   : > { %2891 = vmatprep.subr.mxu1 %v2009_v33  ;;  %v2124_v19 = vpop.permute.xlu0 %2123 }
 0x2bb   : > { %2892 = vmatpush3.msra.mxu1 %v2009_v33  ;;  %v2126_v3 = vsel %vm679_vm2, %v3668_v7, %v2124_v19 }
 0x2bc   : > { %2894 = vmatmul.mubr.f32.vlgmr.msra.gmra.mxu1 %v2566_v63  ;;  %v2134_v43 = vrot.slane %v2126_v3, %v3579_v18 }
 0x2bd   : > { %2896 = vmatprep.mubr.f32.mxu1 %v2569_v5 }
 0x2be   : > { %v2136_v25 = vmul.f32 %v2134_v43, %v2128_v40  ;;  %v2135_v54 = vmul.f32 %v2134_v43, %v2127_v50  ;;  %v2138_v17 = vmul.f32 %v2134_v43, %v2130_v52  ;;  %v2137_v56 = vmul.f32 %v2134_v43, %v2129_v42 }
 0x2c0   : > { %2897 = vmatmul.mubr.f32.gmra.mxu1 %v2570_v49 }
 0x37c   : > { %v2895_v1 = vpop.f32.mrf.mxu1 }
 0x37d   : > { %v2140_v34 = vadd.f32 %v2895_v1, %v2136_v25 }
 0x37e   : > { %v2099_v23 = vpop.f32.mrf.mxu1 }
 0x37f   : > { %2145 = vst.msk [vmem:[#allocation3 + $0x8] sm:$0xff] %vm2143_vm5, %v2140_v34  ;;  %v2139_v12 = vadd.f32 %v2135_v54, %v2099_v23 }
 0x380   : > { %v2898_v55 = vpop.f32.mrf.mxu1 }
 0x381   : > { %2144 = vst.msk [vmem:[#allocation3] sm:$0xff] %vm2143_vm5, %v2139_v12  ;;  %v2142_v7 = vadd.f32 %v2898_v55, %v2138_v17  ;;  %2153 = sbr.rel (%p2545_p11) target bundleno = 1114 (0x45a), region = 121 }
 0x382   : > { %v2109_v18 = vpop.f32.mrf.mxu1 }
 0x383   : > { %2147 = vst.msk [vmem:[#allocation3 + $0x18] sm:$0xff] %vm2143_vm5, %v2142_v7  ;;  %v2141_v16 = vadd.f32 %v2137_v56, %v2109_v18 }
 0x385   : > { %2146 = vst.msk [vmem:[#allocation3 + $0x10] sm:$0xff] %vm2143_vm5, %v2141_v16 }
 0x386   : > { %v2197_v51 = vld [vmem:[%s3825_s9 + $0x18] sm:$0xff]  ;;  %v2196_v45 = vld [vmem:[%s3825_s9 + $0x10] sm:$0xff]  ;;  %v2195_v53 = vld [vmem:[%s3825_s9 + $0x8] sm:$0xff] }
 0x387   : > { %2899 = vmatprep.subr.mxu0 %v2197_v51  ;;  %2921 = vmatprep.subr.mxu1 %v2197_v51  ;;  %v2194_v57 = vld [vmem:[%s3825_s9] sm:$0xff]  ;;  %v2192_v60 = vld [vmem:[%s3828_s12 + $0x10] sm:$0xff]  ;;  %v2191_v2 = vld [vmem:[%s3828_s12 + $0x8] sm:$0xff] }
 0x388   : > { %2900 = vmatpush3.msra.mxu0 %v2197_v51  ;;  %2925 = vmatpush3.msra.mxu1 %v2197_v51  ;;  %v2154_v58 = vld [vmem:[#allocation3] sm:$0xff]  ;;  %v2193_v8 = vld [vmem:[%s3828_s12 + $0x18] sm:$0xff]  ;;  %v2155_v47 = vld [vmem:[#allocation3 + $0x8] sm:$0xff] }
 0x389   : > { %2901 = vmatprep.subr.mxu0 %v2196_v45  ;;  %2922 = vmatprep.subr.mxu1 %v2196_v45  ;;  %v2190_v59 = vld [vmem:[%s3828_s12] sm:$0xff]  ;;  %v2158_v24 = vadd.f32 1e-16, %v2154_v58  ;;  %v2159_v27 = vadd.f32 1e-16, %v2155_v47 }
 0x38a   : > { %2902 = vmatpush3.msra.mxu0 %v2196_v45  ;;  %2926 = vmatpush3.msra.mxu1 %v2196_v45  ;;  %v2157_v13 = vld [vmem:[#allocation3 + $0x18] sm:$0xff]  ;;  %v2546_v35 = vld [vmem:[%s3827_s11 + $0x3] ss:$0 sm:$0xff] }
 0x38b   : > { %2903 = vmatprep.subr.mxu0 %v2195_v53  ;;  %2923 = vmatprep.subr.mxu1 %v2195_v53  ;;  %v2161_v36 = vadd.f32 1e-16, %v2157_v13 }
 0x38c   : > { %v2156_v21 = vld [vmem:[#allocation3 + $0x10] sm:$0xff]  ;;  %2904 = vmatpush3.msra.mxu0 %v2195_v53  ;;  %2927 = vmatpush3.msra.mxu1 %v2195_v53 }
 0x38d   : > { %2905 = vmatprep.subr.mxu0 %v2194_v57  ;;  %2924 = vmatprep.subr.mxu1 %v2194_v57  ;;  %v2160_v22 = vadd.f32 1e-16, %v2156_v21 }
 0x38e   : > { %2906 = vmatpush3.msra.mxu0 %v2194_v57  ;;  %2928 = vmatpush3.msra.mxu1 %v2194_v57 }
 0x38f   : > { %2907 = vmatprep.mubr.msk.f32.mxu0 %vm679_vm2, %v2190_v59  ;;  %2910 = vmatprep.mubr.msk.f32.mxu1 %vm679_vm2, %v2192_v60 }
 0x390   : > { %2908 = vmatmul.mubr.msk.f32.vlgmr.msra.gmra.mxu0 %vm679_vm2, %v2191_v2  ;;  %2911 = vmatmul.mubr.msk.f32.vlgmr.msra.gmra.mxu1 %vm679_vm2, %v2193_v8 }
 0x391   : > { %2170 = vrot.lane.b32.xlu1 %v2160_v22, %s3062_s15  ;;  %2166 = vrot.lane.b32.xlu0 %v2158_v24, %s3062_s15 }
 0x395   : > { %2172 = vrot.lane.b32.xlu1 %v2161_v36, %s3062_s15  ;;  %2168 = vrot.lane.b32.xlu0 %v2159_v27, %s3062_s15 }
 0x403   : > { %v2171_v28 = vpop.permute.xlu1 %2170  ;;  %v2167_v20 = vpop.permute.xlu0 %2166 }
 0x407   : > { %v2173_v15 = vpop.permute.xlu1 %2172  ;;  %v2169_v11 = vpop.permute.xlu0 %2168 }
 0x408   : > { %3010 = vrcp.f32 %v2173_v15 }
 0x409   : > { %3012 = vrcp.f32 %v2169_v11 }
 0x40a   : > { %3014 = vrcp.f32 %v2171_v28 }
 0x40b   : > { %3016 = vrcp.f32 %v2167_v20 }
 0x415   : > { %v3011_v62 = vpop.eup %3010 }
 0x416   : > { %v3013_v29 = vpop.eup %3012  ;;  %v2185_v14 = vmul.f32 %v3011_v62, %v2157_v13 }
 0x417   : > { %v3015_v31 = vpop.eup %3014  ;;  %v2181_v32 = vmul.f32 %v3013_v29, %v2155_v47 }
 0x418   : > { %v3017_v38 = vpop.eup %3016  ;;  %v2183_v44 = vmul.f32 %v3015_v31, %v2156_v21  ;;  %v2189_v46 = vmax.f32 %v2185_v14, 0.0 }
 0x419   : > { %v2179_v41 = vmul.f32 %v3017_v38, %v2154_v58  ;;  %v2187_v10 = vmax.f32 %v2181_v32, 0.0 }
 0x41a   : > { %v2188_v33 = vmax.f32 %v2183_v44, 0.0 }
 0x41b   : > { %v2186_v63 = vmax.f32 %v2179_v41, 0.0 }
 0x450   : > { %v2909_v30 = vpop.f32.mrf.mxu0  ;;  %v2912_v0 = vpop.f32.mrf.mxu1 }
 0x451   : > { %v2287_v61 = vadd.f32 %v2909_v30, %v2546_v35  ;;  %v2297_v48 = vadd.f32 %v2912_v0, %v2546_v35 }
 0x452   : > { %v2281_v4 = vpop.f32.mrf.mxu0  ;;  %v2291_v6 = vpop.f32.mrf.mxu1 }
 0x453   : > { %v2301_v39 = vmax.f32 %v2287_v61, 0.0  ;;  %v2303_v26 = vmax.f32 %v2297_v48, 0.0  ;;  %v2282_v37 = vadd.f32 %v2546_v35, %v2281_v4  ;;  %v2292_v9 = vadd.f32 %v2546_v35, %v2291_v6 }
 0x455   : > { %v2305_v5 = vadd.f32 %v2301_v39, %v2187_v10  ;;  %v2307_v49 = vadd.f32 %v2303_v26, %v2189_v46  ;;  %v2300_v19 = vmax.f32 %v2282_v37, 0.0  ;;  %v2302_v3 = vmax.f32 %v2292_v9, 0.0 }
 0x457   : > { %2309 = vst.msk [vmem:[%s3829_s13 + $0x8] sm:$0xff] %vm679_vm2, %v2305_v5  ;;  %2311 = vst.msk [vmem:[%s3829_s13 + $0x18] sm:$0xff] %vm679_vm2, %v2307_v49  ;;  %v2304_v43 = vadd.f32 %v2300_v19, %v2186_v63  ;;  %v2306_v40 = vadd.f32 %v2302_v3, %v2188_v33 }
 0x459   : > { %2308 = vst.msk [vmem:[%s3829_s13] sm:$0xff] %vm679_vm2, %v2304_v43  ;;  %2310 = vst.msk [vmem:[%s3829_s13 + $0x10] sm:$0xff] %vm679_vm2, %v2306_v40 }
 0x45a PF: > { %s23_s29 = sadd.s32 1, %s3056_s29   ;;  %s3837_s23 = sld [smem:[#allocation7_spill]] }
 0x45b   : > { %p20_p12 = scmp.ge.s32.totalorder %s23_s29, 5   ;;  %s3838_s27 = sld [smem:[#allocation5_spill]] }
 0x45c   : > { %s3839_s28 = sld [smem:[#allocation6_spill]]  ;;  %s3840_s25 = smov %s3044_s26 }
 0x45d   :  { %22 = sbr.rel (!%p20_p12) target bundleno = 5 (0x5), region = 171 }
 0x460   : > { %s3841_s26 = smov %s3837_s23 }

// kernel: _lambda_.7
= control target key start
LH: loop header
LB: loop body
LE: loop exit
PB: predicated region body
PF: predicated region fallthrough
CT: control target
= control target key end

     0   :  { %s3918_s0 = inlined_call_operand.vmem [shape: f32[384,32], index: 0, kind: input, shape index: {}]   ;;  %s3919_s1 = inlined_call_operand.vmem [shape: f32[384,32], index: 1, kind: input, shape index: {}]   ;;  %s3920_s2 = inlined_call_operand.vmem [shape: f32[384,32], index: 2, kind: input, shape index: {}]   ;;  %s3921_s3 = inlined_call_operand.vmem [shape: f32[384,1], index: 3, kind: input, shape index: {}]   ;;  %s3922_s4 = inlined_call_operand.vmem [shape: bf16[32,384], index: 4, kind: input, shape index: {}]   ;;  %s3923_s5 = inlined_call_operand.vmem [shape: f32[32,32], index: 5, kind: input, shape index: {}]   ;;  %s3924_s6 = inlined_call_operand.vmem [shape: f32[32,32], index: 6, kind: input, shape index: {}]   ;;  %s3925_s7 = inlined_call_operand.vmem [shape: f32[32,32], index: 7, kind: input, shape index: {}]   ;;  %s3926_s8 = inlined_call_operand.vmem [shape: f32[32,32], index: 8, kind: input, shape index: {}]   ;;  %s3927_s9 = inlined_call_operand.vmem [shape: f32[32,32], index: 9, kind: input, shape index: {}]   ;;  %s3928_s10 = inlined_call_operand.vmem [shape: bf16[32,32], index: 10, kind: input, shape index: {}]   ;;  %s3929_s11 = inlined_call_operand.vmem [shape: f32[8,32], index: 11, kind: input, shape index: {}]   ;;  %s3930_s12 = inlined_call_operand.hbm [shape: f32[32,32], index: 12, kind: input, shape index: {}, may-alias: {12,13}]   ;;  %s3931_s13 = inlined_call_operand.hbm [shape: f32[32,32], index: 13, kind: output, shape index: {}, may-alias: {12,13}]  }
   0x1   :  { %3936 = sst [smem:[#allocation13_spill]] %s3927_s9 }
   0x2   :  { %3937 = sst [smem:[#allocation14_spill]] %s3929_s11 }
   0x3   :  { %3938 = sst [smem:[#allocation15_spill]] %s3931_s13 }
   0x4   :  { %18 = vsyncpa [#allocation6], 0 }
   0x5   :  { %19 = vsyncpa [#allocation7], 0  ;;  %s3212_s25 = smov 0   ;;  %s3214_s26 = smov 0  }
   0x6   :  { %s3216_s27 = smov 0   ;;  %s3218_s28 = smov 0  }
   0x7   :  { %s3220_s29 = smov 0  }
   0x8 LB: > { %s3932_s30 = sadd.s32 4294967295, %s3129_s29   ;;  %s34_s14 = sadd.s32 1, %s3125_s28  ;;  %s3129_s29 = sphi %s3220_s29, %s25_s29   ;;  %s3125_s28 = sphi %s3218_s28, %s3955_s28   ;;  %s3121_s27 = sphi %s3216_s27, %s3954_s27   ;;  %s3117_s26 = sphi %s3214_s26, %s3953_s26   ;;  %s3113_s25 = sphi %s3212_s25, %s3952_s25  }
   0x9   : > { %p35_p0 = scmp.ge.s32.totalorder %s34_s14, 3  ;;  %s150_s15 = sadd.s32 1, %s3117_s26 }
   0xa   : > { %p157_p1 = scmp.ne.s32.totalorder %s3117_s26, %s3113_s25  ;;  %p158_p2 = scmp.eq.s32.totalorder %s3129_s29, 0 }
   0xb   : > { %s3957_s14 = smov (%p35_p0, %s34_s14), 0  ;;  %p2438_p4 = scmp.ge.s32.totalorder %s3129_s29, 1 }
   0xc   : > { %3939 = sst [smem:[#allocation11_spill]] %s3957_s14  ;;  %p3245_p3 = por %p158_p2, %p157_p1 }
   0xd   : > { %s146_s17 = ssub.s32 %s3125_s28, %s3957_s14  ;;  %p373_p5 = scmp.lt.s32.totalorder %s3129_s29, 4 }
   0xe   : > { %p148_p6 = scmp.eq.s32.totalorder %s146_s17, 0  ;;  %p3259_p8 = scmp.eq.s32.totalorder %s3932_s30, 0 }
   0xf   : > { %p3253_p7 = pnand %p2438_p4, %p373_p5  ;;  %s3131_s21 = smov [#allocation5]  }
  0x10   : > { %s3264_s20 = scalar_select %p148_p6, %s3117_s26, %s150_s15  }
  0x11   : > { %p2930_p9 = pneg %p3253_p7  ;;  %s409_s22 = sshll.u32 %s3131_s21, 4  ;;  %s410_s22 = int_to_ptr.vmem [resolvable:$true] %s409_s22 }
  0x12   : > { %3943 = sst [smem:[#allocation12_spill]] %s3264_s20  ;;  %s3044_s23 = scalar_lea.vmem %s410_s22, 512 }
  0x13   : > { %p2931_p10 = pnand %p3259_p8, %p2930_p9  ;;  %p3045_p12 = scmp.ne.s32.totalorder %s410_s22, %s3044_s23 }
  0x14   : > { %p3052_p1 = scmp.lt.s32.totalorder %s410_s22, %s410_s22  ;;  %p3053_p2 = scmp.lt.s32.totalorder %s3044_s23, %s3044_s23 }
  0x15   : > { %p3035_p11 = pneg %p2931_p10 }
  0x16   : > { %p3054_p4 = por %p3053_p2, %p3052_p1 }
  0x17   : > { %p3047_p13 = pnand %p3045_p12, %p3035_p11 }
  0x19   : > { %p3048_p0 = pneg %p3047_p13 }
  0x1b   : > { %p3055_p5 = pnand %p3054_p4, %p3048_p0 }
  0x1d   : > { %3058 = shalt.err (!%p3055_p5)
}
  0x1e   : > { %s3132_s24 = smov 128   ;;  %s3133_s15 = smov 8  }
  0x1f   : > { %2933 = dma.hbm_to_vmem [thread:$0]  (!%p2931_p10), %s3930_s12, 512, %s410_s22, [#allocation6], %s3132_s24, %s3132_s24, %s3133_s15  }
  0x20   : > { %p2440_p6 = scmp.ge.s32.totalorder %s3129_s29, 3 }
  0x22   : > { %419 = sbr.rel (%p2440_p6) target bundleno = 45 (0x2d), region = 48 }
  0x27   : > { %458 = sbr.rel (!%p3245_p3) target bundleno = 45 (0x2d), region = 68  ;;  %s460_s21 = sand.u32 (%p3245_p3), 1, %s3117_s26  }
  0x28   : > { %s2442_s14 = sshll.u32 (%p3245_p3), %s3125_s28, 2  ;;  %s2441_s23 = sshll.u32 (%p3245_p3), %s460_s21, 4 }
  0x29   : > { %s467_s9 = scalar_lea.vmem (%p3245_p3), %s3922_s4, %s2442_s14  ;;  %s462_s11 = scalar_lea.vmem (%p3245_p3), [#allocation4], %s2441_s23 }
  0x2a   : > { %v484_v0 = vld [vmem:[%s467_s9] sm:$0xf] (%p3245_p3)  ;;  %v486_v1 = vld [vmem:[%s467_s9 + $0xc] sm:$0xf] (%p3245_p3)  ;;  %v488_v2 = vld [vmem:[%s467_s9 + $0x18] sm:$0xf] (%p3245_p3) }
  0x2b   : > { %485 = vst [vmem:[%s462_s11] sm:$0xf] (%p3245_p3), %v484_v0  ;;  %487 = vst [vmem:[%s462_s11 + $0x4] sm:$0xf] (%p3245_p3), %v486_v1  ;;  %v490_v3 = vld [vmem:[%s467_s9 + $0x24] sm:$0xf] (%p3245_p3) }
  0x2c   : > { %489 = vst [vmem:[%s462_s11 + $0x8] sm:$0xf] %v488_v2  ;;  %491 = vst [vmem:[%s462_s11 + $0xc] sm:$0xf] %v490_v3 }
  0x2d PF: > { %526 = sbr.rel (%p3253_p7) target bundleno = 1152 (0x480), region = 109  ;;  %s529_s30 = sand.u32 (!%p3253_p7), 1, %s3113_s25  }
  0x2e   : > { %s3284_s16 = sshll.u32 (!%p3253_p7), %s529_s30, 4 }
  0x2f   : > { %s531_s13 = scalar_lea.vmem (!%p3253_p7), [#allocation4], %s3284_s16 }
  0x32   : > { %3104 = dma.done.wait (%p3259_p8), [#allocation6], 512  }
  0x33   : > { %3106 = vsyncadd (%p3259_p8), [#allocation6], 4294966784  ;;  %s2446_s9 = sshll.u32 %s3121_s27, 4  ;;  %p2454_p7 = scmp.ne.s32.totalorder %s3121_s27, 0 }
  0x34   : > { %p592_p3 = scmp.lt.s32.totalorder %s2446_s9, 47 }
  0x35   : > { %621 = sbr.rel (%p2454_p7) target bundleno = 62 (0x3e), region = 121 }
  0x36   : > { %s3959_s9 = smov (!%p592_p3, %s2446_s9), 47 }
  0x37   : > { %s2447_s11 = sshll.u32 %s3959_s9, 3 }
  0x38   : > { %s3295_s20 = scalar_lea.vmem %s3918_s0, %s2447_s11  ;;  %s3300_s24 = scalar_lea.vmem %s3919_s1, %s2447_s11 }
  0x39   : > { %s3305_s19 = scalar_lea.vmem %s3920_s2, %s2447_s11  ;;  %s3310_s30 = scalar_lea.vmem %s3921_s3, %s2447_s11 }
  0x3a   : > { %vm622_vm0 = vcmask 253952   ;;  %vm624_vm1 = vcmask 523264   ;;  %v3134_v4 = vmov -1e+30   ;;  %v3135_v5 = vmov 0.0  }
  0x3b   : > { %623 = vst.msk [vmem:[#allocation2] sm:$0x1] %vm622_vm0, %v3134_v4 }
  0x3c   : > { %625 = vst.msk [vmem:[#allocation3] sm:$0xff] %vm624_vm1, %v3135_v5  ;;  %626 = vst.msk [vmem:[#allocation3 + $0x8] sm:$0xff] %vm624_vm1, %v3135_v5 }
  0x3d   : > { %627 = vst.msk [vmem:[#allocation3 + $0x10] sm:$0xff] %vm624_vm1, %v3135_v5  ;;  %628 = vst.msk [vmem:[#allocation3 + $0x18] sm:$0xff] %vm624_vm1, %v3135_v5 }
  0x3e PF: > { %v671_v6 = vld [vmem:[%s3924_s6 + $0x18] sm:$0xff]  ;;  %v670_v7 = vld [vmem:[%s3924_s6 + $0x10] sm:$0xff]  ;;  %v669_v8 = vld [vmem:[%s3924_s6 + $0x8] sm:$0xff]  ;;  %vm672_vm2 = vcmask 261120   ;;  %p2538_p8 = scmp.ne.s32.totalorder %s3121_s27, 2 }
  0x3f   : > { %2694 = vmatprep.subr.mxu0 %v671_v6  ;;  %2906 = vmatprep.subr.mxu1 %v671_v6  ;;  %v668_v9 = vld [vmem:[%s3924_s6] sm:$0xff]  ;;  %v662_v11 = vld [vmem:[%s3300_s24 + $0x50] sm:$0xff]  ;;  %v653_v12 = vld [vmem:[%s3300_s24 + $0x8] sm:$0xff]  ;;  %s3945_s17 = sld [smem:[#allocation13_spill]] (!%p2538_p8) }
  0x40   : > { %2695 = vmatpush3.msra.mxu0 %v671_v6  ;;  %2910 = vmatpush3.msra.mxu1 %v671_v6  ;;  %v652_v10 = vld [vmem:[%s3300_s24] sm:$0xff]  ;;  %v663_v13 = vld [vmem:[%s3300_s24 + $0x58] sm:$0xff]  ;;  %v654_v15 = vld [vmem:[%s3300_s24 + $0x10] sm:$0xff] }
  0x41   : > { %2696 = vmatprep.subr.mxu0 %v670_v7  ;;  %2907 = vmatprep.subr.mxu1 %v670_v7  ;;  %v1078_v14 = vld [vmem:[%s3925_s7 + $0x18] sm:$0xff]  ;;  %v664_v16 = vld [vmem:[%s3300_s24 + $0x60] sm:$0xff]  ;;  %v1077_v18 = vld [vmem:[%s3925_s7 + $0x10] sm:$0xff] }
  0x42   : > { %2697 = vmatpush3.msra.mxu0 %v670_v7  ;;  %2911 = vmatpush3.msra.mxu1 %v670_v7  ;;  %v651_v17 = vld [vmem:[%s3923_s5 + $0x18] sm:$0xff]  ;;  %v665_v20 = vld [vmem:[%s3300_s24 + $0x68] sm:$0xff]  ;;  %v650_v21 = vld [vmem:[%s3923_s5 + $0x10] sm:$0xff] }
  0x43   : > { %2698 = vmatprep.subr.mxu0 %v669_v8  ;;  %2908 = vmatprep.subr.mxu1 %v669_v8  ;;  %v655_v19 = vld [vmem:[%s3300_s24 + $0x18] sm:$0xff]  ;;  %v656_v22 = vld [vmem:[%s3300_s24 + $0x20] sm:$0xff]  ;;  %v666_v23 = vld [vmem:[%s3300_s24 + $0x70] sm:$0xff] }
  0x44   : > { %2699 = vmatpush3.msra.mxu0 %v669_v8  ;;  %2912 = vmatpush3.msra.mxu1 %v669_v8  ;;  %v657_v24 = vld [vmem:[%s3300_s24 + $0x28] sm:$0xff]  ;;  %v667_v25 = vld [vmem:[%s3300_s24 + $0x78] sm:$0xff]  ;;  %v658_v28 = vld [vmem:[%s3300_s24 + $0x30] sm:$0xff] }
  0x45   : > { %2700 = vmatprep.subr.mxu0 %v668_v9  ;;  %2909 = vmatprep.subr.mxu1 %v668_v9  ;;  %v649_v26 = vld [vmem:[%s3923_s5 + $0x8] sm:$0xff]  ;;  %v648_v29 = vld [vmem:[%s3923_s5] sm:$0xff]  ;;  %v659_v31 = vld [vmem:[%s3300_s24 + $0x38] sm:$0xff] }
  0x46   : > { %2701 = vmatpush3.msra.mxu0 %v668_v9  ;;  %2913 = vmatpush3.msra.mxu1 %v668_v9  ;;  %v1076_v27 = vld [vmem:[%s3925_s7 + $0x8] sm:$0xff]  ;;  %v632_v30 = vld [vmem:[%s3295_s20] sm:$0xff]  ;;  %v634_v34 = vld [vmem:[%s3295_s20 + $0x10] sm:$0xff] }
  0x47   : > { %2702 = vmatprep.mubr.msk.f32.mxu0 %vm672_vm2, %v652_v10  ;;  %2717 = vmatprep.mubr.msk.f32.mxu1 %vm672_vm2, %v662_v11  ;;  %v633_v32 = vld [vmem:[%s3295_s20 + $0x8] sm:$0xff]  ;;  %v660_v33 = vld [vmem:[%s3300_s24 + $0x40] sm:$0xff]  ;;  %v635_v37 = vld [vmem:[%s3295_s20 + $0x18] sm:$0xff]  ;;  %v3136_v10 = vmov 0  }
  0x48   : > { %2703 = vmatmul.mubr.msk.f32.vlgmr.msra.gmra.mxu0 %vm672_vm2, %v653_v12  ;;  %2718 = vmatmul.mubr.msk.f32.vlgmr.msra.gmra.mxu1 %vm672_vm2, %v663_v13  ;;  %v1075_v35 = vld [vmem:[%s3925_s7] sm:$0xff]  ;;  %v661_v36 = vld [vmem:[%s3300_s24 + $0x48] sm:$0xff]  ;;  %v638_v42 = vld [vmem:[%s3295_s20 + $0x30] sm:$0xff]  ;;  %s3946_s24 = sld [smem:[#allocation14_spill]] (!%p2538_p8) }
  0x49   : > { %2758 = vmatprep.subr.mxu0 %v1078_v14  ;;  %2705 = vmatprep.mubr.msk.f32.mxu0 %vm672_vm2, %v654_v15  ;;  %v636_v38 = vld [vmem:[%s3295_s20 + $0x20] sm:$0xff]  ;;  %v637_v40 = vld [vmem:[%s3295_s20 + $0x28] sm:$0xff]  ;;  %v3399_v43 = vld [vmem:[%s3305_s19 + $0x10] sm:$0xff] }
  0x4a   : > { %2759 = vmatpush3.msra.mxu0 %v1078_v14  ;;  %2720 = vmatprep.mubr.msk.f32.mxu1 %vm672_vm2, %v664_v16  ;;  %v1059_v39 = vld [vmem:[%s3305_s19] sm:$0xff]  ;;  %v3395_v41 = vld [vmem:[%s3305_s19 + $0x8] sm:$0xff]  ;;  %v639_v44 = vld [vmem:[%s3295_s20 + $0x38] sm:$0xff] }
  0x4b   : > { %2726 = vmatprep.subr.mxu1 %v651_v17  ;;  %2760 = vmatprep.subr.mxu0 %v1077_v18  ;;  %v3409_v45 = vld [vmem:[%s3305_s19 + $0x18] sm:$0xff]  ;;  %v640_v46 = vld [vmem:[%s3295_s20 + $0x40] sm:$0xff]  ;;  %v641_v48 = vld [vmem:[%s3295_s20 + $0x48] sm:$0xff] }
  0x4c   : > { %2706 = vmatmul.mubr.msk.f32.gmra.mxu0 %vm672_vm2, %v655_v19  ;;  %2721 = vmatmul.mubr.msk.f32.gmra.mxu1 %vm672_vm2, %v665_v20  ;;  %v3413_v47 = vld [vmem:[%s3305_s19 + $0x20] sm:$0xff]  ;;  %v3423_v49 = vld [vmem:[%s3305_s19 + $0x28] sm:$0xff]  ;;  %v642_v50 = vld [vmem:[%s3295_s20 + $0x50] sm:$0xff] }
  0x4d   : > { %2727 = vmatpush3.msra.mxu1 %v651_v17  ;;  %2761 = vmatpush3.msra.mxu0 %v1077_v18  ;;  %v3427_v51 = vld [vmem:[%s3305_s19 + $0x30] sm:$0xff]  ;;  %v643_v52 = vld [vmem:[%s3295_s20 + $0x58] sm:$0xff]  ;;  %v644_v54 = vld [vmem:[%s3295_s20 + $0x60] sm:$0xff] }
  0x4e   : > { %2728 = vmatprep.subr.mxu1 %v650_v21  ;;  %2708 = vmatprep.mubr.msk.f32.mxu0 %vm672_vm2, %v656_v22  ;;  %v3437_v53 = vld [vmem:[%s3305_s19 + $0x38] sm:$0xff]  ;;  %v3441_v55 = vld [vmem:[%s3305_s19 + $0x40] sm:$0xff]  ;;  %v645_v56 = vld [vmem:[%s3295_s20 + $0x68] sm:$0xff] }
  0x4f   : > { %2723 = vmatprep.mubr.msk.f32.mxu1 %vm672_vm2, %v666_v23  ;;  %2729 = vmatpush3.msra.mxu1 %v650_v21  ;;  %v3451_v57 = vld [vmem:[%s3305_s19 + $0x48] sm:$0xff]  ;;  %v646_v58 = vld [vmem:[%s3295_s20 + $0x70] sm:$0xff]  ;;  %v647_v60 = vld [vmem:[%s3295_s20 + $0x78] sm:$0xff]  ;;  %s3944_s20 = sld [smem:[#allocation14_spill]] }
  0x50   : > { %2709 = vmatmul.mubr.msk.f32.gmra.mxu0 %vm672_vm2, %v657_v24  ;;  %2724 = vmatmul.mubr.msk.f32.gmra.mxu1 %vm672_vm2, %v667_v25  ;;  %v3455_v59 = vld [vmem:[%s3305_s19 + $0x50] sm:$0xff]  ;;  %v3465_v61 = vld [vmem:[%s3305_s19 + $0x58] sm:$0xff]  ;;  %v3468_v62 = vld [vmem:[%s3305_s19 + $0x60] sm:$0xff] }
  0x51   : > { %2730 = vmatprep.subr.mxu1 %v649_v26  ;;  %2762 = vmatprep.subr.mxu0 %v1076_v27  ;;  %v3476_v63 = vld [vmem:[%s3305_s19 + $0x68] sm:$0xff]  ;;  %v3479_v0 = vld [vmem:[%s3305_s19 + $0x70] sm:$0xff]  ;;  %v3486_v1 = vld [vmem:[%s3305_s19 + $0x78] sm:$0xff]  ;;  %s3137_s19 = smov 32  }
  0x52   : > { %2731 = vmatpush3.msra.mxu1 %v649_v26  ;;  %2711 = vmatprep.mubr.msk.f32.mxu0 %vm672_vm2, %v658_v28  ;;  %v2564_v2 = vld [vmem:[%s3928_s10 + $0x8] sm:$0xff]   ;;  %v2549_v5 = vld [vmem:[%s3928_s10] sm:$0xff]   ;;  %v1772_v8 = vld [vmem:[%s3926_s8 + $0x18] sm:$0xff] }
  0x53   : > { %2732 = vmatprep.subr.mxu1 %v648_v29  ;;  %2734 = vmatprep.mubr.msk.f32.mxu1 %vm672_vm2, %v632_v30  ;;  %v2555_v3 = vunpack.c.h.bf16 %v2564_v2  ;;  %v2554_v4 = vunpack.c.l.bf16 %v2564_v2  ;;  %v2551_v6 = vunpack.c.h.bf16 %v2549_v5  ;;  %v2550_v7 = vunpack.c.l.bf16 %v2549_v5  ;;  %v1771_v9 = vld [vmem:[%s3926_s8 + $0x10] sm:$0xff]  ;;  %v1384_v12 = vld [vmem:[%s3310_s30] sm:$0xff]  ;;  %v1770_v13 = vld [vmem:[%s3926_s8 + $0x8] sm:$0xff] }
  0x54   : > { %2733 = vmatpush3.msra.mxu1 %v648_v29  ;;  %2763 = vmatpush3.msra.mxu0 %v1076_v27  ;;  %v1386_v11 = vld [vmem:[%s3310_s30 + $0x10] sm:$0xff]  ;;  %v1769_v14 = vld [vmem:[%s3926_s8] sm:$0xff]  ;;  %v1387_v15 = vld [vmem:[%s3310_s30 + $0x18] sm:$0xff] }
  0x55   : > { %2712 = vmatmul.mubr.msk.f32.gmra.mxu0 %vm672_vm2, %v659_v31  ;;  %2735 = vmatmul.mubr.msk.f32.vlgmr.msra.gmra.mxu1 %vm672_vm2, %v633_v32  ;;  %v1385_v16 = vld [vmem:[%s3310_s30 + $0x8] sm:$0xff]  ;;  %v1388_v18 = vld [vmem:[%s3310_s30 + $0x20] sm:$0xff]  ;;  %v1391_v19 = vld [vmem:[%s3310_s30 + $0x38] sm:$0xff] }
  0x56   : > { %2714 = vmatprep.mubr.msk.f32.mxu0 %vm672_vm2, %v660_v33  ;;  %2737 = vmatprep.mubr.msk.f32.mxu1 %vm672_vm2, %v634_v34  ;;  %v1389_v17 = vld [vmem:[%s3310_s30 + $0x28] sm:$0xff]  ;;  %v1390_v20 = vld [vmem:[%s3310_s30 + $0x30] sm:$0xff]  ;;  %v1392_v22 = vld [vmem:[%s3310_s30 + $0x40] sm:$0xff] }
  0x57   : > { %2764 = vmatprep.subr.mxu0 %v1075_v35  ;;  %2790 = vmatprep.subr.mxu1 %v2555_v3  ;;  %v1393_v21 = vld [vmem:[%s3310_s30 + $0x48] sm:$0xff]  ;;  %v1395_v23 = vld [vmem:[%s3310_s30 + $0x58] sm:$0xff]  ;;  %v1394_v24 = vld [vmem:[%s3310_s30 + $0x50] sm:$0xff] }
  0x58   : > { %2765 = vmatpush3.msra.mxu0 %v1075_v35  ;;  %2791 = vmatpush3.msra.mxu1 %v2555_v3  ;;  %v1397_v25 = vld [vmem:[%s3310_s30 + $0x68] sm:$0xff]  ;;  %v1396_v26 = vld [vmem:[%s3310_s30 + $0x60] sm:$0xff]  ;;  %v1399_v27 = vld [vmem:[%s3310_s30 + $0x78] sm:$0xff] }
  0x59   : > { %2715 = vmatmul.mubr.msk.f32.gmra.mxu0 %vm672_vm2, %v661_v36  ;;  %2738 = vmatmul.mubr.msk.f32.gmra.mxu1 %vm672_vm2, %v635_v37  ;;  %v1398_v28 = vld [vmem:[%s3310_s30 + $0x70] sm:$0xff]  ;;  %s3138_s30 = smov (!%p2538_p8), 96  }
  0x5a   : > { %2740 = vmatprep.mubr.msk.f32.mxu1 %vm672_vm2, %v636_v38  ;;  %2766 = vmatprep.mubr.msk.f32.mxu0 %vm672_vm2, %v1059_v39 }
  0x5b   : > { %2792 = vmatprep.subr.mxu1 %v2554_v4  ;;  %2822 = vmatprep.subr.mxu0 %v1772_v8 }
  0x5c   : > { %2793 = vmatpush3.msra.mxu1 %v2554_v4  ;;  %2990 = vset.pattern.permute.xlu1 %v3136_v10 }
  0x5d   : > { %2741 = vmatmul.mubr.msk.f32.gmra.mxu1 %vm672_vm2, %v637_v40  ;;  %2767 = vmatmul.mubr.msk.f32.vlgmr.msra.gmra.mxu0 %vm672_vm2, %v3395_v41 }
  0x5e   : > { %2743 = vmatprep.mubr.msk.f32.mxu1 %vm672_vm2, %v638_v42  ;;  %2769 = vmatprep.mubr.msk.f32.mxu0 %vm672_vm2, %v3399_v43 }
  0x5f   : > { %2794 = vmatprep.subr.mxu1 %v2551_v6  ;;  %2823 = vmatpush3.msra.mxu0 %v1772_v8 }
  0x60   : > { %2795 = vmatpush3.msra.mxu1 %v2551_v6  ;;  %2989 = vset.pattern.permute.xlu0 %v3136_v10  ;;  %v3579_v6 = vld [vmem:[%s3944_s20 + $0x1] ss:$0 sm:$0xff] }
  0x61   : > { %2744 = vmatmul.mubr.msk.f32.gmra.mxu1 %vm672_vm2, %v639_v44  ;;  %2770 = vmatmul.mubr.msk.f32.gmra.mxu0 %vm672_vm2, %v3409_v45 }
  0x62   : > { %2746 = vmatprep.mubr.msk.f32.mxu1 %vm672_vm2, %v640_v46  ;;  %2772 = vmatprep.mubr.msk.f32.mxu0 %vm672_vm2, %v3413_v47 }
  0x63   : > { %2796 = vmatprep.subr.mxu1 %v2550_v7  ;;  %2824 = vmatprep.subr.mxu0 %v1771_v9 }
  0x64   : > { %2797 = vmatpush3.msra.mxu1 %v2550_v7  ;;  %1412 = vperm.xlu1 %2990, %v1386_v11  }
  0x65   : > { %2747 = vmatmul.mubr.msk.f32.gmra.mxu1 %vm672_vm2, %v641_v48  ;;  %2773 = vmatmul.mubr.msk.f32.gmra.mxu0 %vm672_vm2, %v3423_v49 }
  0x66   : > { %2749 = vmatprep.mubr.msk.f32.mxu1 %vm672_vm2, %v642_v50  ;;  %2775 = vmatprep.mubr.msk.f32.mxu0 %vm672_vm2, %v3427_v51 }
  0x67   : > { %2825 = vmatpush3.msra.mxu0 %v1771_v9  ;;  %1402 = vperm.xlu0 %2989, %v1384_v12  }
  0x68   : > { %2826 = vmatprep.subr.mxu0 %v1770_v13  ;;  %1417 = vperm.xlu1 %2990, %v1387_v15  }
  0x69   : > { %2750 = vmatmul.mubr.msk.f32.gmra.mxu1 %vm672_vm2, %v643_v52  ;;  %2776 = vmatmul.mubr.msk.f32.gmra.mxu0 %vm672_vm2, %v3437_v53 }
  0x6a   : > { %2752 = vmatprep.mubr.msk.f32.mxu1 %vm672_vm2, %v644_v54  ;;  %2778 = vmatprep.mubr.msk.f32.mxu0 %vm672_vm2, %v3441_v55 }
  0x6b   : > { %2827 = vmatpush3.msra.mxu0 %v1770_v13  ;;  %1407 = vperm.xlu0 %2989, %v1385_v16  }
  0x6c   : > { %2828 = vmatprep.subr.mxu0 %v1769_v14  ;;  %1427 = vperm.xlu1 %2990, %v1389_v17  }
  0x6d   : > { %2753 = vmatmul.mubr.msk.f32.gmra.mxu1 %vm672_vm2, %v645_v56  ;;  %2779 = vmatmul.mubr.msk.f32.gmra.mxu0 %vm672_vm2, %v3451_v57 }
  0x6e   : > { %2755 = vmatprep.mubr.msk.f32.mxu1 %vm672_vm2, %v646_v58  ;;  %2781 = vmatprep.mubr.msk.f32.mxu0 %vm672_vm2, %v3455_v59 }
  0x6f   : > { %2829 = vmatpush3.msra.mxu0 %v1769_v14  ;;  %1422 = vperm.xlu0 %2989, %v1388_v18  }
  0x70   : > { %1437 = vperm.xlu1 %2990, %v1391_v19  }
  0x71   : > { %2756 = vmatmul.mubr.msk.f32.gmra.mxu1 %vm672_vm2, %v647_v60  ;;  %2782 = vmatmul.mubr.msk.f32.gmra.mxu0 %vm672_vm2, %v3465_v61 }
  0x72   : > { %2784 = vmatprep.mubr.msk.f32.mxu0 %vm672_vm2, %v3468_v62 }
  0x73   : > { %1432 = vperm.xlu0 %2989, %v1390_v20  }
  0x74   : > { %1447 = vperm.xlu1 %2990, %v1393_v21  }
  0x75   : > { %2785 = vmatmul.mubr.msk.f32.gmra.mxu0 %vm672_vm2, %v3476_v63 }
  0x76   : > { %2787 = vmatprep.mubr.msk.f32.mxu0 %vm672_vm2, %v3479_v0 }
  0x77   : > { %1442 = vperm.xlu0 %2989, %v1392_v22  }
  0x78   : > { %1457 = vperm.xlu1 %2990, %v1395_v23  }
  0x79   : > { %2788 = vmatmul.mubr.msk.f32.gmra.mxu0 %vm672_vm2, %v3486_v1 }
  0x7a   : > { %2830 = vmatprep.mubr.msk.f32.mxu0 %vm672_vm2, %v1059_v39 }
  0x7b   : > { %1452 = vperm.xlu0 %2989, %v1394_v24  }
  0x7c   : > { %1467 = vperm.xlu1 %2990, %v1397_v25  }
  0x7d   : > { %2831 = vmatmul.mubr.msk.f32.vlgmr.msra.gmra.mxu0 %vm672_vm2, %v3395_v41 }
  0x7e   : > { %2833 = vmatprep.mubr.msk.f32.mxu0 %vm672_vm2, %v3399_v43 }
  0x7f   : > { %1462 = vperm.xlu0 %2989, %v1396_v26  }
  0x80   : > { %1477 = vperm.xlu1 %2990, %v1399_v27  }
  0x81   : > { %2834 = vmatmul.mubr.msk.f32.gmra.mxu0 %vm672_vm2, %v3409_v45 }
  0x82   : > { %2836 = vmatprep.mubr.msk.f32.mxu0 %vm672_vm2, %v3413_v47 }
  0x83   : > { %1472 = vperm.xlu0 %2989, %v1398_v28  }
  0x85   : > { %2837 = vmatmul.mubr.msk.f32.gmra.mxu0 %vm672_vm2, %v3423_v49 }
  0x86   : > { %2839 = vmatprep.mubr.msk.f32.mxu0 %vm672_vm2, %v3427_v51  ;;  %v3572_v51 = vld [vmem:[%s3944_s20] ss:$0 sm:$0xff] }
  0x89   : > { %2840 = vmatmul.mubr.msk.f32.gmra.mxu0 %vm672_vm2, %v3437_v53 }
  0x8a   : > { %2842 = vmatprep.mubr.msk.f32.mxu0 %vm672_vm2, %v3441_v55 }
  0x8d   : > { %2843 = vmatmul.mubr.msk.f32.gmra.mxu0 %vm672_vm2, %v3451_v57 }
  0x8e   : > { %2845 = vmatprep.mubr.msk.f32.mxu0 %vm672_vm2, %v3455_v59 }
  0x91   : > { %2846 = vmatmul.mubr.msk.f32.gmra.mxu0 %vm672_vm2, %v3465_v61 }
  0x92   : > { %2848 = vmatprep.mubr.msk.f32.mxu0 %vm672_vm2, %v3468_v62 }
  0x95   : > { %2849 = vmatmul.mubr.msk.f32.gmra.mxu0 %vm672_vm2, %v3476_v63 }
  0x96   : > { %2851 = vmatprep.mubr.msk.f32.mxu0 %vm672_vm2, %v3479_v0 }
  0x99   : > { %2852 = vmatmul.mubr.msk.f32.gmra.mxu0 %vm672_vm2, %v3486_v1 }
 0x108   : > { %v2704_v29 = vpop.f32.mrf.mxu0  ;;  %v3555_v30 = vpop.f32.mrf.mxu1 }
 0x10a   : > { %v787_v31 = vpop.f32.mrf.mxu0  ;;  %v3557_v32 = vpop.f32.mrf.mxu1 }
 0x10c   : > { %v2707_v33 = vpop.f32.mrf.mxu0  ;;  %v3559_v34 = vpop.f32.mrf.mxu1 }
 0x10e   : > { %v797_v35 = vpop.f32.mrf.mxu0  ;;  %v3561_v36 = vpop.f32.mrf.mxu1 }
 0x110   : > { %v2710_v37 = vpop.f32.mrf.mxu0  ;;  %v3563_v38 = vpop.f32.mrf.mxu1 }
 0x112   : > { %v807_v39 = vpop.f32.mrf.mxu0  ;;  %v3565_v40 = vpop.f32.mrf.mxu1 }
 0x115   : > { %v2713_v41 = vpop.f32.mrf.mxu0  ;;  %v2736_v42 = vpop.f32.mrf.mxu1 }
 0x116   : > { %v986_v49 = vadd.f32 %v2736_v42, %v2704_v29 }
 0x117   : > { %v817_v43 = vpop.f32.mrf.mxu0  ;;  %v980_v44 = vpop.f32.mrf.mxu1 }
 0x118   : > { %v981_v53 = vadd.f32 %v980_v44, %v787_v31 }
 0x119   : > { %v2716_v45 = vpop.f32.mrf.mxu0  ;;  %v2739_v46 = vpop.f32.mrf.mxu1 }
 0x11a   : > { %v996_v59 = vadd.f32 %v2739_v46, %v2707_v33 }
 0x11b   : > { %v3567_v47 = vpop.f32.mrf.mxu0  ;;  %v990_v48 = vpop.f32.mrf.mxu1 }
 0x11c   : > { %v991_v0 = vadd.f32 %v990_v48, %v797_v35 }
 0x11d   : > { %v2742_v50 = vpop.f32.mrf.mxu1  ;;  %v2768_v52 = vpop.f32.mrf.mxu0 }
 0x11e   : > { %v1273_v54 = vadd.f32 %v2768_v52, %v986_v49  ;;  %v1006_v4 = vadd.f32 %v2742_v50, %v2710_v37 }
 0x11f   : > { %v1000_v55 = vpop.f32.mrf.mxu1  ;;  %v1193_v56 = vpop.f32.mrf.mxu0 }
 0x120   : > { %v1293_v57 = vadd.f32 %v3572_v51, %v1273_v54  ;;  %v1272_v58 = vadd.f32 %v1193_v56, %v981_v53  ;;  %v1001_v12 = vadd.f32 %v1000_v55, %v807_v39 }
 0x121   : > { %v2745_v60 = vpop.f32.mrf.mxu1  ;;  %v2771_v61 = vpop.f32.mrf.mxu0 }
 0x122   : > { %vm1309_vm3 = vcmp.gt.f32.partialorder %v1293_v57, 0.0  ;;  %v1325_v62 = vmul.f32 0.2, %v1293_v57  ;;  %v1292_v63 = vadd.f32 %v3572_v51, %v1272_v58  ;;  %v1275_v1 = vadd.f32 %v2771_v61, %v996_v59 }
 0x123   : > { %v1010_v2 = vpop.f32.mrf.mxu1  ;;  %v1203_v3 = vpop.f32.mrf.mxu0  ;;  %v1016_v23 = vadd.f32 %v2745_v60, %v2713_v41 }
 0x124   : > { %vm1308_vm4 = vcmp.gt.f32.partialorder %v1292_v63, 0.0  ;;  %v1324_v5 = vmul.f32 0.2, %v1292_v63  ;;  %v1341_v7 = vsel %vm1309_vm3, %v1293_v57, %v1325_v62  ;;  %v1295_v8 = vadd.f32 %v3572_v51, %v1275_v1 }
 0x125   : > { %v1274_v9 = vadd.f32 %v1203_v3, %v991_v0  ;;  %v2748_v10 = vpop.f32.mrf.mxu1  ;;  %v2774_v11 = vpop.f32.mrf.mxu0  ;;  %v1361_v20 = vmul.f32 %v3579_v6, %v1341_v7  ;;  %v1011_v27 = vadd.f32 %v1010_v2, %v817_v43 }
 0x126   : > { %v1340_v13 = vsel %vm1308_vm4, %v1292_v63, %v1324_v5  ;;  %v1277_v14 = vadd.f32 %v2774_v11, %v1006_v4  ;;  %v1327_v15 = vmul.f32 0.2, %v1295_v8  ;;  %vm1311_vm5 = vcmp.gt.f32.partialorder %v1295_v8, 0.0 }
 0x127   : > { %v1294_v16 = vadd.f32 %v3572_v51, %v1274_v9  ;;  %v1020_v17 = vpop.f32.mrf.mxu1  ;;  %v1213_v18 = vpop.f32.mrf.mxu0  ;;  %v1360_v19 = vmul.f32 %v3579_v6, %v1340_v13  ;;  %v1026_v42 = vadd.f32 %v2748_v10, %v2716_v45  ;;  %vm2141_vm4 = vcmask 253952  }
 0x128   : > { %v1297_v21 = vadd.f32 %v3572_v51, %v1277_v14  ;;  %v1276_v22 = vadd.f32 %v1213_v18, %v1001_v12  ;;  %v1343_v29 = vsel %vm1311_vm5, %v1295_v8, %v1327_v15  ;;  %v1021_v50 = vadd.f32 %v1020_v17, %v3567_v47 }
 0x129   : > { %vm1310_vm6 = vcmp.gt.f32.partialorder %v1294_v16, 0.0  ;;  %v1326_v24 = vmul.f32 0.2, %v1294_v16  ;;  %v2751_v25 = vpop.f32.mrf.mxu1  ;;  %v2777_v26 = vpop.f32.mrf.mxu0  ;;  %2798 = vmatprep.mubr.msk.f32.mxu1 %vm672_vm2, %v1360_v19  ;;  %v1363_v54 = vmul.f32 %v3579_v6, %v1343_v29  ;;  %vm2136_vm5 = vcmask 523264  }
 0x12a   : > { %v1296_v28 = vadd.f32 %v3572_v51, %v1276_v22  ;;  %2799 = vmatmul.mubr.msk.f32.vlgmr.msra.gmra.mxu1 %vm672_vm2, %v1361_v20  ;;  %v1329_v33 = vmul.f32 0.2, %v1297_v21  ;;  %v1279_v35 = vadd.f32 %v2777_v26, %v1016_v23  ;;  %vm1313_vm7 = vcmp.gt.f32.partialorder %v1297_v21, 0.0 }
 0x12b   : > { %v1342_v31 = vsel %vm1310_vm6, %v1294_v16, %v1326_v24  ;;  %v1030_v37 = vpop.f32.mrf.mxu1  ;;  %v1223_v39 = vpop.f32.mrf.mxu0  ;;  %v1036_v61 = vadd.f32 %v2751_v25, %v3555_v30 }
 0x12c   : > { %vm1312_vm8 = vcmp.gt.f32.partialorder %v1296_v28, 0.0  ;;  %v1328_v41 = vmul.f32 0.2, %v1296_v28  ;;  %v1299_v44 = vadd.f32 %v3572_v51, %v1279_v35  ;;  %v1278_v46 = vadd.f32 %v1223_v39, %v1011_v27 }
 0x12d   : > { %v2754_v48 = vpop.f32.mrf.mxu1  ;;  %v2780_v49 = vpop.f32.mrf.mxu0  ;;  %v1362_v43 = vmul.f32 %v3579_v6, %v1342_v31  ;;  %v1345_v55 = vsel %vm1313_vm7, %v1297_v21, %v1329_v33  ;;  %v1031_v0 = vadd.f32 %v1030_v37, %v3557_v32 }
 0x12e   : > { %v1344_v52 = vsel %vm1312_vm8, %v1296_v28, %v1328_v41  ;;  %v1281_v53 = vadd.f32 %v2780_v49, %v1026_v42  ;;  %v1331_v56 = vmul.f32 0.2, %v1299_v44  ;;  %v1298_v45 = vadd.f32 %v3572_v51, %v1278_v46 }
 0x12f   : > { %2801 = vmatprep.mubr.msk.f32.mxu1 %vm672_vm2, %v1362_v43  ;;  %v1233_v57 = vpop.f32.mrf.mxu0  ;;  %v1364_v58 = vmul.f32 %v3579_v6, %v1344_v52  ;;  %vm1315_vm9 = vcmp.gt.f32.partialorder %v1299_v44, 0.0  ;;  %v1040_v60 = vpop.f32.mrf.mxu1  ;;  %v1365_v2 = vmul.f32 %v3579_v6, %v1345_v55  ;;  %v1046_v9 = vadd.f32 %v2754_v48, %v3559_v34 }
 0x130   : > { %v1301_v59 = vadd.f32 %v3572_v51, %v1281_v53  ;;  %2802 = vmatmul.mubr.msk.f32.gmra.mxu1 %vm672_vm2, %v1363_v54  ;;  %v1280_v47 = vadd.f32 %v1233_v57, %v1021_v50  ;;  %vm1314_vm10 = vcmp.gt.f32.partialorder %v1298_v45, 0.0  ;;  %v1330_v62 = vmul.f32 0.2, %v1298_v45  ;;  %v1403_v57 = vpop.permute.xlu0 %1402 }
 0x131   : > { %v2783_v63 = vpop.f32.mrf.mxu0  ;;  %2804 = vmatprep.mubr.msk.f32.mxu1 %vm672_vm2, %v1364_v58  ;;  %v1347_v3 = vsel %vm1315_vm9, %v1299_v44, %v1331_v56  ;;  %v2757_v10 = vpop.f32.mrf.mxu1  ;;  %v1041_v14 = vadd.f32 %v1040_v60, %v3561_v36 }
 0x132   : > { %v1300_v1 = vadd.f32 %v3572_v51, %v1280_v47  ;;  %v1346_v4 = vsel %vm1314_vm10, %v1298_v45, %v1330_v62  ;;  %v1333_v5 = vmul.f32 0.2, %v1301_v59  ;;  %v1283_v7 = vadd.f32 %v2783_v63, %v1036_v61  ;;  %v1413_v45 = vpop.permute.xlu1 %1412 }
 0x133   : > { %v1243_v8 = vpop.f32.mrf.mxu0  ;;  %vm1317_vm11 = vcmp.gt.f32.partialorder %v1301_v59, 0.0  ;;  %v1366_v13 = vmul.f32 %v3579_v6, %v1346_v4  ;;  %v1367_v17 = vmul.f32 %v3579_v6, %v1347_v3  ;;  %v1056_v22 = vadd.f32 %v2757_v10, %v3563_v38  ;;  %v1050_v23 = vpop.f32.mrf.mxu1 }
 0x134   : > { %vm1316_vm12 = vcmp.gt.f32.partialorder %v1300_v1, 0.0  ;;  %v1332_v30 = vmul.f32 0.2, %v1300_v1  ;;  %2805 = vmatmul.mubr.msk.f32.gmra.mxu1 %vm672_vm2, %v1365_v2  ;;  %v1303_v11 = vadd.f32 %v3572_v51, %v1283_v7  ;;  %v1282_v32 = vadd.f32 %v1243_v8, %v1031_v0 }
 0x135   : > { %v2786_v12 = vpop.f32.mrf.mxu0  ;;  %v1349_v18 = vsel %vm1317_vm11, %v1301_v59, %v1333_v5  ;;  %2807 = vmatprep.mubr.msk.f32.mxu1 %vm672_vm2, %v1366_v13  ;;  %v1051_v38 = vadd.f32 %v1050_v23, %v3565_v40  ;;  %v1408_v59 = vpop.permute.xlu0 %1407 }
 0x136   : > { %v1348_v15 = vsel %vm1316_vm12, %v1300_v1, %v1332_v30  ;;  %v1285_v16 = vadd.f32 %v2786_v12, %v1046_v9  ;;  %v1335_v34 = vmul.f32 0.2, %v1303_v11  ;;  %v1302_v19 = vadd.f32 %v3572_v51, %v1282_v32  ;;  %v1418_v58 = vpop.permute.xlu1 %1417 }
 0x137   : > { %v1253_v20 = vpop.f32.mrf.mxu0  ;;  %v1368_v21 = vmul.f32 %v3579_v6, %v1348_v15  ;;  %vm1319_vm13 = vcmp.gt.f32.partialorder %v1303_v11, 0.0  ;;  %v1369_v29 = vmul.f32 %v3579_v6, %v1349_v18 }
 0x138   : > { %v1305_v24 = vadd.f32 %v3572_v51, %v1285_v16  ;;  %2808 = vmatmul.mubr.msk.f32.gmra.mxu1 %vm672_vm2, %v1367_v17  ;;  %v1284_v36 = vadd.f32 %v1253_v20, %v1041_v14  ;;  %vm1318_vm14 = vcmp.gt.f32.partialorder %v1302_v19, 0.0  ;;  %v1334_v25 = vmul.f32 0.2, %v1302_v19 }
 0x139   : > { %v2789_v26 = vpop.f32.mrf.mxu0  ;;  %2810 = vmatprep.mubr.msk.f32.mxu1 %vm672_vm2, %v1368_v21  ;;  %v1351_v31 = vsel %vm1319_vm13, %v1303_v11, %v1335_v34  ;;  %v1423_v61 = vpop.permute.xlu0 %1422 }
 0x13a   : > { %v1304_v27 = vadd.f32 %v3572_v51, %v1284_v36  ;;  %v1287_v28 = vadd.f32 %v2789_v26, %v1056_v22  ;;  %v1350_v33 = vsel %vm1318_vm14, %v1302_v19, %v1334_v25  ;;  %v1337_v35 = vmul.f32 0.2, %v1305_v24  ;;  %v1428_v60 = vpop.permute.xlu1 %1427 }
 0x13b   : > { %v1263_v37 = vpop.f32.mrf.mxu0  ;;  %vm1321_vm15 = vcmp.gt.f32.partialorder %v1305_v24, 0.0  ;;  %v1370_v44 = vmul.f32 %v3579_v6, %v1350_v33  ;;  %v1371_v48 = vmul.f32 %v3579_v6, %v1351_v31 }
 0x13c   : > { %vm1320_vm0 = vcmp.gt.f32.partialorder %v1304_v27, 0.0  ;;  %v1336_v39 = vmul.f32 0.2, %v1304_v27  ;;  %v1307_v42 = vadd.f32 %v3572_v51, %v1287_v28  ;;  %2811 = vmatmul.mubr.msk.f32.gmra.mxu1 %vm672_vm2, %v1369_v29  ;;  %v1286_v41 = vadd.f32 %v1263_v37, %v1051_v38 }
 0x13d   : > { %v1353_v49 = vsel %vm1321_vm15, %v1305_v24, %v1337_v35  ;;  %2813 = vmatprep.mubr.msk.f32.mxu1 %vm672_vm2, %v1370_v44  ;;  %v1433_v1 = vpop.permute.xlu0 %1432 }
 0x13e   : > { %v1352_v46 = vsel %vm1320_vm0, %v1304_v27, %v1336_v39  ;;  %v1339_v43 = vmul.f32 0.2, %v1307_v42  ;;  %v1306_v40 = vadd.f32 %v3572_v51, %v1286_v41  ;;  %vm1323_vm1 = vcmp.gt.f32.partialorder %v1307_v42, 0.0  ;;  %v1438_v63 = vpop.permute.xlu1 %1437 }
 0x13f   : > { %v1372_v50 = vmul.f32 %v3579_v6, %v1352_v46  ;;  %v1373_v53 = vmul.f32 %v3579_v6, %v1353_v49 }
 0x140   : > { %2814 = vmatmul.mubr.msk.f32.gmra.mxu1 %vm672_vm2, %v1371_v48  ;;  %vm1322_vm3 = vcmp.gt.f32.partialorder %v1306_v40, 0.0  ;;  %v1338_v52 = vmul.f32 0.2, %v1306_v40  ;;  %v1355_v54 = vsel %vm1323_vm1, %v1307_v42, %v1339_v43 }
 0x141   : > { %2816 = vmatprep.mubr.msk.f32.mxu1 %vm672_vm2, %v1372_v50  ;;  %v1375_v51 = vmul.f32 %v3579_v6, %v1355_v54  ;;  %v1443_v7 = vpop.permute.xlu0 %1442 }
 0x142   : > { %v1354_v55 = vsel %vm1322_vm3, %v1306_v40, %v1338_v52  ;;  %v1448_v4 = vpop.permute.xlu1 %1447 }
 0x143   : > { %v1374_v56 = vmul.f32 %v3579_v6, %v1354_v55 }
 0x144   : > { %2817 = vmatmul.mubr.msk.f32.gmra.mxu1 %vm672_vm2, %v1373_v53 }
 0x145   : > { %2819 = vmatprep.mubr.msk.f32.mxu1 %vm672_vm2, %v1374_v56  ;;  %v1453_v10 = vpop.permute.xlu0 %1452 }
 0x146   : > { %v1458_v9 = vpop.permute.xlu1 %1457 }
 0x148   : > { %2820 = vmatmul.mubr.msk.f32.gmra.mxu1 %vm672_vm2, %v1375_v51 }
 0x149   : > { %v1463_v20 = vpop.permute.xlu0 %1462 }
 0x14a   : > { %v1468_v13 = vpop.permute.xlu1 %1467 }
 0x14d   : > { %v1473_v53 = vpop.permute.xlu0 %1472 }
 0x14e   : > { %v1478_v42 = vpop.permute.xlu1 %1477 }
 0x1ea   : > { %v2800_v47 = vpop.f32.mrf.mxu1 }
 0x1eb   : > { %v3636_v14 = vadd.f32 %v2800_v47, %v1408_v59 }
 0x1ec   : > { %v1594_v62 = vpop.f32.mrf.mxu1 }
 0x1ed   : > { %v3638_v15 = vadd.f32 %v1594_v62, %v1403_v57  ;;  %v1675_v27 = vsel %vm672_vm2, %v3636_v14, -inf }
 0x1ef   : > { %v1674_v28 = vsel %vm672_vm2, %v3638_v15, -inf }
 0x1f0   : > { %v2803_v0 = vpop.f32.mrf.mxu1 }
 0x1f1   : > { %v3648_v21 = vadd.f32 %v2803_v0, %v1418_v58 }
 0x1f2   : > { %v1604_v2 = vpop.f32.mrf.mxu1 }
 0x1f3   : > { %v3650_v22 = vadd.f32 %v1604_v2, %v1413_v45  ;;  %v1677_v41 = vsel %vm672_vm2, %v3648_v21, -inf }
 0x1f4   : > { %v2806_v3 = vpop.f32.mrf.mxu1 }
 0x1f5   : > { %v3640_v16 = vadd.f32 %v2806_v3, %v1428_v60  ;;  %v1676_v44 = vsel %vm672_vm2, %v3650_v22, -inf }
 0x1f6   : > { %v1614_v5 = vpop.f32.mrf.mxu1 }
 0x1f7   : > { %v3634_v12 = vadd.f32 %v1614_v5, %v1423_v61  ;;  %v1680_v29 = vsel %vm672_vm2, %v3640_v16, -inf }
 0x1f8   : > { %v2809_v8 = vpop.f32.mrf.mxu1  ;;  %v1681_v54 = vmax.f32 %v1675_v27, %v1680_v29 }
 0x1f9   : > { %v3642_v17 = vadd.f32 %v2809_v8, %v1438_v63  ;;  %v1678_v36 = vsel %vm672_vm2, %v3634_v12, -inf }
 0x1fa   : > { %v1624_v6 = vpop.f32.mrf.mxu1  ;;  %v1679_v46 = vmax.f32 %v1674_v28, %v1678_v36 }
 0x1fb   : > { %v3644_v34 = vadd.f32 %v1624_v6, %v1433_v1  ;;  %v1684_v31 = vsel %vm672_vm2, %v3642_v17, -inf  ;;  %v1716_v6 = vlaneseq }
 0x1fc   : > { %v2812_v30 = vpop.f32.mrf.mxu1  ;;  %v1685_v55 = vmax.f32 %v1677_v41, %v1684_v31 }
 0x1fd   : > { %v3652_v23 = vadd.f32 %v2812_v30, %v1448_v4  ;;  %v1682_v33 = vsel %vm672_vm2, %v3644_v34, -inf }
 0x1fe   : > { %v1634_v11 = vpop.f32.mrf.mxu1  ;;  %v1683_v56 = vmax.f32 %v1676_v44, %v1682_v33 }
 0x1ff   : > { %v3646_v19 = vadd.f32 %v1634_v11, %v1443_v7  ;;  %v1688_v48 = vsel %vm672_vm2, %v3652_v23, -inf }
 0x200   : > { %v2815_v32 = vpop.f32.mrf.mxu1  ;;  %v1689_v60 = vmax.f32 %v1681_v54, %v1688_v48 }
 0x201   : > { %v3656_v25 = vadd.f32 %v2815_v32, %v1458_v9  ;;  %v1686_v35 = vsel %vm672_vm2, %v3646_v19, -inf  ;;  %v3686_v32 = vld [vmem:[#allocation2] sm:$0x1] }
 0x202   : > { %v1644_v18 = vpop.f32.mrf.mxu1  ;;  %v1687_v51 = vmax.f32 %v1679_v46, %v1686_v35 }
 0x203   : > { %v3658_v26 = vadd.f32 %v1644_v18, %v1453_v10  ;;  %v1692_v43 = vsel %vm672_vm2, %v3656_v25, -inf  ;;  %v1717_v10 = vshrl.u32 %v1716_v6, 7  ;;  %v3784_v6 = vpop.f32.mrf.mxu0 }
 0x204   : > { %v2818_v24 = vpop.f32.mrf.mxu1  ;;  %v1693_v47 = vmax.f32 %v1685_v55, %v1692_v43 }
 0x205   : > { %v1660_v37 = vadd.f32 %v2818_v24, %v1468_v13  ;;  %v1690_v40 = vsel %vm672_vm2, %v3658_v26, -inf  ;;  %v3688_v18 = vsub.s32 0, %v1717_v10 }
 0x206   : > { %v1654_v38 = vpop.f32.mrf.mxu1  ;;  %v1691_v61 = vmax.f32 %v1683_v56, %v1690_v40 }
 0x207   : > { %v1655_v39 = vadd.f32 %v1654_v38, %v1463_v20  ;;  %v1696_v57 = vsel %vm672_vm2, %v1660_v37, -inf }
 0x208   : > { %v2821_v49 = vpop.f32.mrf.mxu1  ;;  %v1697_v0 = vmax.f32 %v1689_v60, %v1696_v57 }
 0x209   : > { %v1694_v50 = vsel %vm672_vm2, %v1655_v39, -inf  ;;  %v1670_v52 = vadd.f32 %v2821_v49, %v1478_v42 }
 0x20a   : > { %v1664_v45 = vpop.f32.mrf.mxu1  ;;  %v1695_v62 = vmax.f32 %v1687_v51, %v1694_v50 }
 0x20b   : > { %v1700_v58 = vsel %vm672_vm2, %v1670_v52, -inf  ;;  %v1665_v59 = vadd.f32 %v1664_v45, %v1473_v53 }
 0x20c   : > { %v1701_v1 = vmax.f32 %v1693_v47, %v1700_v58  ;;  %v1702_v3 = vmax.f32 %v1695_v62, %v1697_v0 }
 0x20d   : > { %v1698_v63 = vsel %vm672_vm2, %v1665_v59, -inf }
 0x20e   : > { %v1699_v2 = vmax.f32 %v1691_v61, %v1698_v63 }
 0x210   : > { %v1703_v4 = vmax.f32 %v1699_v2, %v1701_v1  ;;  %v3762_v1 = vld [vmem:[%s531_s13] sm:$0xff]  }
 0x211   : > { %v2558_v2 = vunpack.c.l.bf16 %v3762_v1 }
 0x212   : > { %v1704_v5 = vmax.f32 %v1702_v3, %v1703_v4 }
 0x213   : > { %2886 = vmatprep.mubr.f32.mxu1 %v2558_v2 }
 0x214   : > { %v1705_v7 = vrot.slane %v1704_v5, 4 }
 0x216   : > { %v1706_v8 = vmax.f32 %v1704_v5, %v1705_v7 }
 0x218   : > { %v1707_v9 = vrot.slane %v1706_v8, 2 }
 0x21a   : > { %v1708_v30 = vmax.f32 %v1706_v8, %v1707_v9  ;;  %v3786_v9 = vpop.f32.mrf.mxu0 }
 0x21c   : > { %v1709_v11 = vrot.slane %v1708_v30, 1 }
 0x21e   : > { %v1710_v13 = vmax.f32 %v1708_v30, %v1709_v11  ;;  %v3788_v30 = vpop.f32.mrf.mxu0 }
 0x220   : > { %v3691_v20 = vmax.f32 %v3686_v32, %v1710_v13  ;;  %v3790_v10 = vpop.f32.mrf.mxu0 }
 0x222   : > { %v1719_v24 = vrot.slane %v3691_v20, %v3688_v18  ;;  %2142 = vst.msk [vmem:[#allocation2] sm:$0x1] %vm2141_vm4, %v3691_v20  ;;  %v2838_v11 = vpop.f32.mrf.mxu0 }
 0x224   : > { %v1735_v36 = vsub.f32 %v1665_v59, %v1719_v24  ;;  %v1733_v28 = vsub.f32 %v1655_v39, %v1719_v24  ;;  %v1736_v29 = vsub.f32 %v1670_v52, %v1719_v24  ;;  %v1731_v31 = vsub.f32 %v3658_v26, %v1719_v24 }
 0x225   : > { %v1734_v33 = vsub.f32 %v1660_v37, %v1719_v24  ;;  %v1729_v41 = vsub.f32 %v3646_v19, %v1719_v24  ;;  %v1732_v46 = vsub.f32 %v3656_v25, %v1719_v24  ;;  %v1727_v39 = vsub.f32 %v3644_v34, %v1719_v24 }
 0x226   : > { %v1765_v27 = vmul.f32 1.442695, %v1735_v36  ;;  %v1761_v38 = vmul.f32 1.442695, %v1733_v28  ;;  %v1767_v35 = vmul.f32 1.442695, %v1736_v29  ;;  %v1730_v37 = vsub.f32 %v3652_v23, %v1719_v24 }
 0x227   : > { %v1757_v44 = vmul.f32 1.442695, %v1731_v31  ;;  %v1763_v48 = vmul.f32 1.442695, %v1734_v33  ;;  %v1753_v26 = vmul.f32 1.442695, %v1729_v41  ;;  %v1725_v19 = vsub.f32 %v3634_v12, %v1719_v24 }
 0x228   : > { %2991 = vpow2.f32 %v1765_v27  ;;  %v1759_v49 = vmul.f32 1.442695, %v1732_v46  ;;  %v1749_v43 = vmul.f32 1.442695, %v1727_v39  ;;  %v1728_v40 = vsub.f32 %v3642_v17, %v1719_v24  ;;  %v3797_v33 = vld [vmem:[%s3944_s20 + $0x2] ss:$0 sm:$0xff] }
 0x229   : > { %2993 = vpow2.f32 %v1761_v38  ;;  %v1755_v50 = vmul.f32 1.442695, %v1730_v37  ;;  %v1723_v25 = vsub.f32 %v3650_v22, %v1719_v24  ;;  %v1745_v52 = vmul.f32 1.442695, %v1725_v19 }
 0x22a   : > { %2995 = vpow2.f32 %v1767_v35  ;;  %v1726_v34 = vsub.f32 %v3640_v16, %v1719_v24  ;;  %v1751_v54 = vmul.f32 1.442695, %v1728_v40  ;;  %v1721_v12 = vsub.f32 %v3638_v15, %v1719_v24 }
 0x22b   : > { %2997 = vpow2.f32 %v1757_v44  ;;  %v1741_v17 = vmul.f32 1.442695, %v1723_v25  ;;  %v1724_v55 = vsub.f32 %v3648_v21, %v1719_v24  ;;  %v1722_v51 = vsub.f32 %v3636_v14, %v1719_v24 }
 0x22c   : > { %2999 = vpow2.f32 %v1763_v48  ;;  %v1747_v56 = vmul.f32 1.442695, %v1726_v34  ;;  %v1737_v45 = vmul.f32 1.442695, %v1721_v12  ;;  %v1712_v21 = vsub.f32 %v3686_v32, %v3691_v20  ;;  %v3792_v32 = vpop.f32.mrf.mxu0 }
 0x22d   : > { %3001 = vpow2.f32 %v1753_v26  ;;  %v1743_v57 = vmul.f32 1.442695, %v1724_v55  ;;  %v1739_v59 = vmul.f32 1.442695, %v1722_v51 }
 0x22e   : > { %3003 = vpow2.f32 %v1759_v49  ;;  %v1713_v60 = vmul.f32 1.442695, %v1712_v21  ;;  %v2841_v13 = vpop.f32.mrf.mxu0 }
 0x22f   : > { %3005 = vpow2.f32 %v1749_v43 }
 0x230   : > { %3007 = vpow2.f32 %v1755_v50  ;;  %v1873_v20 = vpop.f32.mrf.mxu0 }
 0x231   : > { %3009 = vpow2.f32 %v1745_v52  ;;  %v1874_v2 = vadd.f32 %v3797_v33, %v1873_v20 }
 0x232   : > { %3011 = vpow2.f32 %v1751_v54  ;;  %v2844_v24 = vpop.f32.mrf.mxu0 }
 0x233   : > { %3013 = vpow2.f32 %v1741_v17  ;;  %v1889_v12 = vadd.f32 %v2844_v24, %v3797_v33  ;;  %v1869_v24 = vadd.f32 %v2838_v11, %v3797_v33  ;;  %v1859_v11 = vadd.f32 %v3788_v30, %v3797_v33 }
 0x234   : > { %3015 = vpow2.f32 %v1747_v56  ;;  %v1883_v36 = vpop.f32.mrf.mxu0  ;;  %v1849_v30 = vadd.f32 %v3784_v6, %v3797_v33 }
 0x235   : > { %v3697_v42 = vpop.eup %2991  ;;  %3017 = vpow2.f32 %v1737_v45  ;;  %v1884_v51 = vadd.f32 %v3797_v33, %v1883_v36 }
 0x236   : > { %1982 = vrot.lane.b32.xlu1 %v3697_v42, %s3137_s19  ;;  %v3708_v53 = vpop.eup %2993  ;;  %3019 = vpow2.f32 %v1743_v57  ;;  %v2847_v27 = vpop.f32.mrf.mxu0  ;;  %v1879_v57 = vadd.f32 %v2841_v13, %v3797_v33 }
 0x237   : > { %v3711_v23 = vpop.eup %2995  ;;  %3021 = vpow2.f32 %v1739_v59  ;;  %v1899_v40 = vadd.f32 %v2847_v27, %v3797_v33 }
 0x238   : > { %1984 = vrot.lane.b32.xlu0 %v3711_v23, %s3137_s19  ;;  %v3718_v22 = vpop.eup %2997  ;;  %3023 = vpow2.f32 %v1713_v60  ;;  %v1893_v28 = vpop.f32.mrf.mxu0 }
 0x239   : > { %v3721_v16 = vpop.eup %2999  ;;  %v1894_v54 = vadd.f32 %v3797_v33, %v1893_v28  ;;  %v1864_v28 = vadd.f32 %v3797_v33, %v3792_v32 }
 0x23a   : > { %1978 = vrot.lane.b32.xlu1 %v3708_v53, %s3137_s19  ;;  %v3728_v15 = vpop.eup %3001  ;;  %v2850_v29 = vpop.f32.mrf.mxu0 }
 0x23b   : > { %v3732_v58 = vpop.eup %3003  ;;  %v1909_v48 = vadd.f32 %v2850_v29, %v3797_v33  ;;  %v1932_v45 = vmul.f32 %v3718_v22, %v1894_v54 }
 0x23c   : > { %1980 = vrot.lane.b32.xlu0 %v3721_v16, %s3137_s19  ;;  %v3738_v14 = vpop.eup %3005  ;;  %v1903_v31 = vpop.f32.mrf.mxu0  ;;  %v1933_v17 = vmul.f32 %v3732_v58, %v1899_v40  ;;  %v2121_v40 = vld [vmem:[#allocation3 + $0x8] sm:$0xff] }
 0x23d   : > { %v3740_v47 = vpop.eup %3007  ;;  %v1904_v49 = vadd.f32 %v3797_v33, %v1903_v31  ;;  %v1935_v50 = vmul.f32 %v3721_v16, %v1909_v48  ;;  %v1928_v20 = vmul.f32 %v3738_v14, %v1874_v2 }
 0x23e   : > { %1974 = vrot.lane.b32.xlu1 %v3718_v22, %s3137_s19  ;;  %v3746_v61 = vpop.eup %3009  ;;  %v2853_v38 = vpop.f32.mrf.mxu0  ;;  %v1931_v21 = vmul.f32 %v3740_v47, %v1889_v12 }
 0x23f   : > { %v3748_v62 = vpop.eup %3011  ;;  %v1919_v44 = vadd.f32 %v2853_v38, %v3797_v33  ;;  %v1854_v38 = vadd.f32 %v3797_v33, %v3790_v10  ;;  %v1926_v32 = vmul.f32 %v3746_v61, %v1864_v28  ;;  %v1844_v10 = vadd.f32 %v3797_v33, %v3786_v9 }
 0x240   : > { %1976 = vrot.lane.b32.xlu0 %v3732_v58, %s3137_s19  ;;  %v3754_v63 = vpop.eup %3013  ;;  %v1913_v41 = vpop.f32.mrf.mxu0  ;;  %v1929_v13 = vmul.f32 %v3748_v62, %v1879_v57 }
 0x241   : > { %v3756_v0 = vpop.eup %3015  ;;  %v1914_v46 = vadd.f32 %v3797_v33, %v1913_v41  ;;  %v1937_v39 = vmul.f32 %v3711_v23, %v1919_v44  ;;  %v1934_v23 = vmul.f32 %v3708_v53, %v1904_v49 }
 0x242   : > { %1970 = vrot.lane.b32.xlu1 %v3728_v15, %s3137_s19  ;;  %v3767_v3 = vpop.eup %3017 }
 0x243   : > { %v3769_v4 = vpop.eup %3019  ;;  %v1936_v19 = vmul.f32 %v3697_v42, %v1914_v46 }
 0x244   : > { %1972 = vrot.lane.b32.xlu0 %v3740_v47, %s3137_s19  ;;  %v3775_v5 = vpop.eup %3021 }
 0x245   : > { %v3777_v7 = vpop.eup %3023  ;;  %v1923_v48 = vmul.f32 %v3775_v5, %v1849_v30 }
 0x246   : > { %1966 = vrot.lane.b32.xlu1 %v3738_v14, %s3137_s19  ;;  %v2115_v8 = vrot.slane %v3777_v7, %v3688_v18 }
 0x248   : > { %1968 = vrot.lane.b32.xlu0 %v3748_v62, %s3137_s19  ;;  %v1927_v62 = vmul.f32 %v3756_v0, %v1869_v24 }
 0x24a   : > { %1962 = vrot.lane.b32.xlu1 %v3746_v61, %s3137_s19  ;;  %v1924_v61 = vmul.f32 %v3754_v63, %v1854_v38 }
 0x24c   : > { %1964 = vrot.lane.b32.xlu0 %v3756_v0, %s3137_s19  ;;  %v1925_v0 = vmul.f32 %v3769_v4, %v1859_v11 }
 0x24e   : > { %1958 = vrot.lane.b32.xlu1 %v3754_v63, %s3137_s19  ;;  %v2559_v63 = vunpack.c.h.bf16 %v3762_v1 }
 0x250   : > { %1960 = vrot.lane.b32.xlu0 %v3769_v4, %s3137_s19 }
 0x252   : > { %1954 = vrot.lane.b32.xlu1 %v3767_v3, %s3137_s19 }
 0x254   : > { %1956 = vrot.lane.b32.xlu0 %v3775_v5, %s3137_s19 }
 0x258   : > { %2116 = vrot.lane.b32.xlu0 %v2115_v8, %s3137_s19  ;;  %v1930_v8 = vmul.f32 %v3728_v15, %v1884_v51 }
 0x2a8   : > { %v1983_v35 = vpop.permute.xlu1 %1982 }
 0x2a9   : > { %v2016_v25 = vsel %vm672_vm2, %v1936_v19, %v1983_v35 }
 0x2aa   : > { %v1985_v37 = vpop.permute.xlu0 %1984 }
 0x2ab   : > { %v2017_v43 = vsel %vm672_vm2, %v1937_v39, %v1985_v37  ;;  %v1922_v37 = vmul.f32 %v3767_v3, %v1844_v10 }
 0x2ac   : > { %v1979_v26 = vpop.permute.xlu1 %1978  ;;  %2854 = vmatprep.subr.mxu1 %v2017_v43 }
 0x2ad   : > { %2855 = vmatpush3.msra.mxu1 %v2017_v43  ;;  %v2014_v55 = vsel %vm672_vm2, %v1934_v23, %v1979_v26  ;;  %v2565_v26 = vld [vmem:[%s531_s13 + $0x8] sm:$0xff]  }
 0x2ae   : > { %2856 = vmatprep.subr.mxu1 %v2016_v25  ;;  %v1981_v34 = vpop.permute.xlu0 %1980  ;;  %v2562_v5 = vunpack.c.l.bf16 %v2565_v26  ;;  %v2563_v49 = vunpack.c.h.bf16 %v2565_v26 }
 0x2af   : > { %2857 = vmatpush3.msra.mxu1 %v2016_v25  ;;  %v2015_v42 = vsel %vm672_vm2, %v1935_v50, %v1981_v34  ;;  %v2120_v50 = vld [vmem:[#allocation3] sm:$0xff] }
 0x2b0   : > { %v1975_v52 = vpop.permute.xlu1 %1974  ;;  %2858 = vmatprep.subr.mxu1 %v2015_v42 }
 0x2b1   : > { %2859 = vmatpush3.msra.mxu1 %v2015_v42  ;;  %v2012_v58 = vsel %vm672_vm2, %v1932_v45, %v1975_v52  ;;  %v2123_v52 = vld [vmem:[#allocation3 + $0x18] sm:$0xff]  ;;  %v2122_v42 = vld [vmem:[#allocation3 + $0x10] sm:$0xff] }
 0x2b2   : > { %2860 = vmatprep.subr.mxu1 %v2014_v55  ;;  %v1977_v16 = vpop.permute.xlu0 %1976 }
 0x2b3   : > { %2861 = vmatpush3.msra.mxu1 %v2014_v55  ;;  %v2013_v53 = vsel %vm672_vm2, %v1933_v17, %v1977_v16 }
 0x2b4   : > { %v1971_v56 = vpop.permute.xlu1 %1970  ;;  %2862 = vmatprep.subr.mxu1 %v2013_v53 }
 0x2b5   : > { %2863 = vmatpush3.msra.mxu1 %v2013_v53  ;;  %v2010_v47 = vsel %vm672_vm2, %v1930_v8, %v1971_v56 }
 0x2b6   : > { %2864 = vmatprep.subr.mxu1 %v2012_v58  ;;  %v1973_v60 = vpop.permute.xlu0 %1972 }
 0x2b7   : > { %2865 = vmatpush3.msra.mxu1 %v2012_v58  ;;  %v2011_v22 = vsel %vm672_vm2, %v1931_v21, %v1973_v60 }
 0x2b8   : > { %v1967_v59 = vpop.permute.xlu1 %1966  ;;  %2866 = vmatprep.subr.mxu1 %v2011_v22 }
 0x2b9   : > { %2867 = vmatpush3.msra.mxu1 %v2011_v22  ;;  %v2008_v29 = vsel %vm672_vm2, %v1928_v20, %v1967_v59 }
 0x2ba   : > { %2868 = vmatprep.subr.mxu1 %v2010_v47  ;;  %v1969_v36 = vpop.permute.xlu0 %1968 }
 0x2bb   : > { %2869 = vmatpush3.msra.mxu1 %v2010_v47  ;;  %v2009_v15 = vsel %vm672_vm2, %v1929_v13, %v1969_v36 }
 0x2bc   : > { %v1963_v27 = vpop.permute.xlu1 %1962  ;;  %2870 = vmatprep.subr.mxu1 %v2009_v15 }
 0x2bd   : > { %2871 = vmatpush3.msra.mxu1 %v2009_v15  ;;  %v2006_v41 = vsel %vm672_vm2, %v1926_v32, %v1963_v27 }
 0x2be   : > { %2872 = vmatprep.subr.mxu1 %v2008_v29  ;;  %v1965_v31 = vpop.permute.xlu0 %1964 }
 0x2bf   : > { %2873 = vmatpush3.msra.mxu1 %v2008_v29  ;;  %v2007_v14 = vsel %vm672_vm2, %v1927_v62, %v1965_v31 }
 0x2c0   : > { %2874 = vmatprep.subr.mxu1 %v2007_v14  ;;  %v1959_v35 = vpop.permute.xlu1 %1958 }
 0x2c1   : > { %2875 = vmatpush3.msra.mxu1 %v2007_v14  ;;  %v2004_v4 = vsel %vm672_vm2, %v1924_v61, %v1959_v35 }
 0x2c2   : > { %2876 = vmatprep.subr.mxu1 %v2006_v41  ;;  %v1961_v44 = vpop.permute.xlu0 %1960 }
 0x2c3   : > { %2877 = vmatpush3.msra.mxu1 %v2006_v41  ;;  %v2005_v46 = vsel %vm672_vm2, %v1925_v0, %v1961_v44 }
 0x2c4   : > { %2878 = vmatprep.subr.mxu1 %v2005_v46  ;;  %v1955_v39 = vpop.permute.xlu1 %1954 }
 0x2c5   : > { %2879 = vmatpush3.msra.mxu1 %v2005_v46  ;;  %v2002_v33 = vsel %vm672_vm2, %v1922_v37, %v1955_v39 }
 0x2c6   : > { %2880 = vmatprep.subr.mxu1 %v2004_v4  ;;  %v1957_v6 = vpop.permute.xlu0 %1956 }
 0x2c7   : > { %2881 = vmatpush3.msra.mxu1 %v2004_v4  ;;  %v2003_v9 = vsel %vm672_vm2, %v1923_v48, %v1957_v6 }
 0x2c8   : > { %2882 = vmatprep.subr.mxu1 %v2003_v9 }
 0x2c9   : > { %2883 = vmatpush3.msra.mxu1 %v2003_v9 }
 0x2ca   : > { %2884 = vmatprep.subr.mxu1 %v2002_v33  ;;  %v2117_v19 = vpop.permute.xlu0 %2116 }
 0x2cb   : > { %2885 = vmatpush3.msra.mxu1 %v2002_v33  ;;  %v2119_v3 = vsel %vm672_vm2, %v3777_v7, %v2117_v19 }
 0x2cc   : > { %2887 = vmatmul.mubr.f32.vlgmr.msra.gmra.mxu1 %v2559_v63  ;;  %v2127_v43 = vrot.slane %v2119_v3, %v3688_v18 }
 0x2cd   : > { %2889 = vmatprep.mubr.f32.mxu1 %v2562_v5 }
 0x2ce   : > { %v2129_v25 = vmul.f32 %v2127_v43, %v2121_v40  ;;  %v2128_v54 = vmul.f32 %v2127_v43, %v2120_v50  ;;  %v2131_v17 = vmul.f32 %v2127_v43, %v2123_v52  ;;  %v2130_v56 = vmul.f32 %v2127_v43, %v2122_v42 }
 0x2d0   : > { %2890 = vmatmul.mubr.f32.gmra.mxu1 %v2563_v49 }
 0x38c   : > { %v2888_v1 = vpop.f32.mrf.mxu1 }
 0x38d   : > { %v2133_v34 = vadd.f32 %v2888_v1, %v2129_v25 }
 0x38e   : > { %v2092_v23 = vpop.f32.mrf.mxu1 }
 0x38f   : > { %2138 = vst.msk [vmem:[#allocation3 + $0x8] sm:$0xff] %vm2136_vm5, %v2133_v34  ;;  %v2132_v12 = vadd.f32 %v2128_v54, %v2092_v23 }
 0x390   : > { %v2891_v55 = vpop.f32.mrf.mxu1 }
 0x391   : > { %2137 = vst.msk [vmem:[#allocation3] sm:$0xff] %vm2136_vm5, %v2132_v12  ;;  %v2135_v7 = vadd.f32 %v2891_v55, %v2131_v17  ;;  %2146 = sbr.rel (%p2538_p8) target bundleno = 1130 (0x46a), region = 125 }
 0x392   : > { %v2102_v18 = vpop.f32.mrf.mxu1 }
 0x393   : > { %2140 = vst.msk [vmem:[#allocation3 + $0x18] sm:$0xff] %vm2136_vm5, %v2135_v7  ;;  %v2134_v16 = vadd.f32 %v2130_v56, %v2102_v18 }
 0x395   : > { %2139 = vst.msk [vmem:[#allocation3 + $0x10] sm:$0xff] %vm2136_vm5, %v2134_v16 }
 0x396   : > { %v2190_v51 = vld [vmem:[%s3945_s17 + $0x18] sm:$0xff]  ;;  %v2189_v45 = vld [vmem:[%s3945_s17 + $0x10] sm:$0xff]  ;;  %v2188_v53 = vld [vmem:[%s3945_s17 + $0x8] sm:$0xff] }
 0x397   : > { %2892 = vmatprep.subr.mxu0 %v2190_v51  ;;  %2914 = vmatprep.subr.mxu1 %v2190_v51  ;;  %v2187_v57 = vld [vmem:[%s3945_s17] sm:$0xff]  ;;  %v2185_v60 = vld [vmem:[#allocation5 + $0x10] sm:$0xff]  ;;  %v2184_v2 = vld [vmem:[#allocation5 + $0x8] sm:$0xff] }
 0x398   : > { %2893 = vmatpush3.msra.mxu0 %v2190_v51  ;;  %2918 = vmatpush3.msra.mxu1 %v2190_v51  ;;  %v2147_v58 = vld [vmem:[#allocation3] sm:$0xff]  ;;  %v2186_v8 = vld [vmem:[#allocation5 + $0x18] sm:$0xff]  ;;  %v2148_v47 = vld [vmem:[#allocation3 + $0x8] sm:$0xff] }
 0x399   : > { %2894 = vmatprep.subr.mxu0 %v2189_v45  ;;  %2915 = vmatprep.subr.mxu1 %v2189_v45  ;;  %v2183_v59 = vld [vmem:[#allocation5] sm:$0xff]  ;;  %v2151_v24 = vadd.f32 1e-16, %v2147_v58  ;;  %v2152_v27 = vadd.f32 1e-16, %v2148_v47 }
 0x39a   : > { %2895 = vmatpush3.msra.mxu0 %v2189_v45  ;;  %2919 = vmatpush3.msra.mxu1 %v2189_v45  ;;  %v2150_v13 = vld [vmem:[#allocation3 + $0x18] sm:$0xff]  ;;  %v2539_v35 = vld [vmem:[%s3946_s24 + $0x3] ss:$0 sm:$0xff] }
 0x39b   : > { %2896 = vmatprep.subr.mxu0 %v2188_v53  ;;  %2916 = vmatprep.subr.mxu1 %v2188_v53  ;;  %v2154_v36 = vadd.f32 1e-16, %v2150_v13 }
 0x39c   : > { %v2149_v21 = vld [vmem:[#allocation3 + $0x10] sm:$0xff]  ;;  %2897 = vmatpush3.msra.mxu0 %v2188_v53  ;;  %2920 = vmatpush3.msra.mxu1 %v2188_v53 }
 0x39d   : > { %2898 = vmatprep.subr.mxu0 %v2187_v57  ;;  %2917 = vmatprep.subr.mxu1 %v2187_v57  ;;  %v2153_v22 = vadd.f32 1e-16, %v2149_v21 }
 0x39e   : > { %2899 = vmatpush3.msra.mxu0 %v2187_v57  ;;  %2921 = vmatpush3.msra.mxu1 %v2187_v57 }
 0x39f   : > { %2900 = vmatprep.mubr.msk.f32.mxu0 %vm672_vm2, %v2183_v59  ;;  %2903 = vmatprep.mubr.msk.f32.mxu1 %vm672_vm2, %v2185_v60 }
 0x3a0   : > { %2901 = vmatmul.mubr.msk.f32.vlgmr.msra.gmra.mxu0 %vm672_vm2, %v2184_v2  ;;  %2904 = vmatmul.mubr.msk.f32.vlgmr.msra.gmra.mxu1 %vm672_vm2, %v2186_v8 }
 0x3a1   : > { %2163 = vrot.lane.b32.xlu1 %v2153_v22, %s3138_s30  ;;  %2159 = vrot.lane.b32.xlu0 %v2151_v24, %s3138_s30 }
 0x3a5   : > { %2165 = vrot.lane.b32.xlu1 %v2154_v36, %s3138_s30  ;;  %2161 = vrot.lane.b32.xlu0 %v2152_v27, %s3138_s30 }
 0x413   : > { %v2164_v28 = vpop.permute.xlu1 %2163  ;;  %v2160_v20 = vpop.permute.xlu0 %2159 }
 0x417   : > { %v2166_v15 = vpop.permute.xlu1 %2165  ;;  %v2162_v11 = vpop.permute.xlu0 %2161 }
 0x418   : > { %3025 = vrcp.f32 %v2166_v15 }
 0x419   : > { %3027 = vrcp.f32 %v2162_v11 }
 0x41a   : > { %3029 = vrcp.f32 %v2164_v28 }
 0x41b   : > { %3031 = vrcp.f32 %v2160_v20 }
 0x425   : > { %v3026_v62 = vpop.eup %3025 }
 0x426   : > { %v3028_v29 = vpop.eup %3027  ;;  %v2178_v14 = vmul.f32 %v3026_v62, %v2150_v13 }
 0x427   : > { %v3030_v31 = vpop.eup %3029  ;;  %v2174_v32 = vmul.f32 %v3028_v29, %v2148_v47 }
 0x428   : > { %v3032_v38 = vpop.eup %3031  ;;  %v2176_v44 = vmul.f32 %v3030_v31, %v2149_v21  ;;  %v2182_v46 = vmax.f32 %v2178_v14, 0.0 }
 0x429   : > { %v2172_v41 = vmul.f32 %v3032_v38, %v2147_v58  ;;  %v2180_v10 = vmax.f32 %v2174_v32, 0.0 }
 0x42a   : > { %v2181_v33 = vmax.f32 %v2176_v44, 0.0 }
 0x42b   : > { %v2179_v63 = vmax.f32 %v2172_v41, 0.0 }
 0x460   : > { %v2902_v30 = vpop.f32.mrf.mxu0  ;;  %v2905_v0 = vpop.f32.mrf.mxu1 }
 0x461   : > { %v2280_v61 = vadd.f32 %v2902_v30, %v2539_v35  ;;  %v2290_v48 = vadd.f32 %v2905_v0, %v2539_v35 }
 0x462   : > { %v2274_v4 = vpop.f32.mrf.mxu0  ;;  %v2284_v6 = vpop.f32.mrf.mxu1 }
 0x463   : > { %v2294_v39 = vmax.f32 %v2280_v61, 0.0  ;;  %v2296_v26 = vmax.f32 %v2290_v48, 0.0  ;;  %v2275_v37 = vadd.f32 %v2539_v35, %v2274_v4  ;;  %v2285_v9 = vadd.f32 %v2539_v35, %v2284_v6 }
 0x465   : > { %v2298_v5 = vadd.f32 %v2294_v39, %v2180_v10  ;;  %v2300_v49 = vadd.f32 %v2296_v26, %v2182_v46  ;;  %v2293_v19 = vmax.f32 %v2275_v37, 0.0  ;;  %v2295_v3 = vmax.f32 %v2285_v9, 0.0 }
 0x467   : > { %2302 = vst.msk [vmem:[#allocation8 + $0x8] sm:$0xff] %vm672_vm2, %v2298_v5  ;;  %2304 = vst.msk [vmem:[#allocation8 + $0x18] sm:$0xff] %vm672_vm2, %v2300_v49  ;;  %v2297_v43 = vadd.f32 %v2293_v19, %v2179_v63  ;;  %v2299_v40 = vadd.f32 %v2295_v3, %v2181_v33 }
 0x469   : > { %2301 = vst.msk [vmem:[#allocation8] sm:$0xff] %vm672_vm2, %v2297_v43  ;;  %2303 = vst.msk [vmem:[#allocation8 + $0x10] sm:$0xff] %vm672_vm2, %v2299_v40 }
 0x46a PF: > { %s3947_s25 = sadd.s32 4294967295, %s3129_s29   ;;  %s3139_s22 = smov [#allocation8]  }
 0x46b   : > { %p3888_p9 = scmp.eq.s32.totalorder %s3947_s25, 2  ;;  %s2314_s15 = sshll.u32 %s3139_s22, 4  ;;  %s2315_s15 = int_to_ptr.vmem [resolvable:$true] %s2314_s15 }
 0x46c   : > { %s3059_s16 = scalar_lea.vmem %s2315_s15, 512  ;;  %p3066_p13 = scmp.lt.s32.totalorder %s2315_s15, %s2315_s15 }
 0x46d   : > { %p3060_p10 = scmp.ne.s32.totalorder %s2315_s15, %s3059_s16  ;;  %p3067_p0 = scmp.lt.s32.totalorder %s3059_s16, %s3059_s16 }
 0x46f   : > { %p3061_p11 = pnand %p3060_p10, %p3888_p9  ;;  %p3068_p1 = por %p3067_p0, %p3066_p13 }
 0x471   : > { %p3062_p12 = pneg %p3061_p11 }
 0x473   : > { %p3069_p2 = pnand %p3068_p1, %p3062_p12 }
 0x475   : > { %3072 = shalt.err (!%p3069_p2)
}
 0x476   : > { %s3140_s13 = smov 128   ;;  %s3141_s21 = smov 8  }
 0x477   : > { %s3949_s14 = sld [smem:[#allocation15_spill]] }
 0x47d   : > { %2927 = dma.vmem_to_hbm [thread:$0]  (%p3888_p9), %s2315_s15, 512, %s3949_s14, [#allocation7], %s3140_s13, %s3140_s13, %s3141_s21  }
 0x47e   : > { %3108 = dma.done.wait (%p3888_p9), [#allocation7], 512  }
 0x47f   : > { %3110 = vsyncadd (%p3888_p9), [#allocation7], 4294966784 }
 0x480 PF: > { %s25_s29 = sadd.s32 1, %s3129_s29   ;;  %s3950_s27 = sld [smem:[#allocation12_spill]] }
 0x481   : > { %p22_p4 = scmp.ge.s32.totalorder %s25_s29, 5   ;;  %s3951_s18 = sld [smem:[#allocation11_spill]] }
 0x482   : > { %s3952_s25 = smov %s3117_s26 }
 0x483   :  { %24 = sbr.rel (!%p22_p4) target bundleno = 8 (0x8), region = 172 }
 0x486   : > { %s3953_s26 = smov %s3950_s27  ;;  %s3954_s27 = smov %s3125_s28 }
 0x487   : > { %s3955_s28 = smov %s3951_s18 }
 0x488   :  { %2330 = vsyncpa [#allocation6], 1 }
 0x489   :  { %2332 = vsyncpa [#allocation6 + $0x1], 1 }
 0x48a   :  { %2333 = vsyncpa [#allocation7], 1 }
 0x48b   :  { %2335 = vsyncpa [#allocation7 + $0x1], 1 }

</bundles_post_ra>
